<compile_context>
chip_gen: v7x
topology: tpu7x:2x2x1
jax: 0.10.0
libtpu: 0.0.40
codegen_flags: <defaults>
</compile_context>

<pallas_src>
import numpy as np
import jax
import jax.numpy as jnp
from jax import lax
from jax.experimental import pallas as pl
from jax.experimental.pallas import tpu as pltpu

# LeNet-5 geometry (flatten-to-120 requires 28x28 spatial input).
_K = 5
_H = _W = 28
_C1, _C2, _C3 = 6, 16, 120
_H1, _W1 = 28, 28        # conv1 output ('same')
_H2, _W2 = 14, 14        # pool1 output
_H3, _W3 = 10, 10        # conv2 output ('valid')
_H4, _W4 = 5, 5          # pool2 output
_FC1, _NCLS = 84, 10
_TAIL = _C3 + _FC1 + 2 * _NCLS   # 224 = 120 | 84 | 10 | 10


def _round_up(n, m):
    return ((n + m - 1) // m) * m


# ----------------------------------------------------------------------------
# One-time host-side weight repacking (numpy)
# ----------------------------------------------------------------------------
def _conv_band_matrix(w, w_in, w_out):
    """kh-folded banded matmul matrix for a KxK conv in (H, W*C) layout.

    conv_out[h, x*Cout + o] = sum_kh X[h+kh, :] @ M[kh*w_in*Cin:(kh+1)*w_in*Cin, :]
    with X lanes ordered (w*Cin + c).
    """
    w = np.asarray(w, np.float32)                       # (Cout, Cin, K, K)
    cout, cin, k, _ = w.shape
    m = np.zeros((k, w_in * cin, w_out * cout), np.float32)
    for kh in range(k):
        for x in range(w_out):
            for kw in range(k):
                m[kh,
                  (x + kw) * cin:(x + kw + 1) * cin,
                  x * cout:(x + 1) * cout] = w[:, :, kh, kw].T
    return m.reshape(k * w_in * cin, w_out * cout)


def _col_pool_matrix(w_in, c, scale):
    """PW so that (height-pair-summed X) @ PW == scale * width-pooled X."""
    pw = np.zeros((w_in * c, (w_in // 2) * c), np.float32)
    for j in range(w_in // 2):
        for d in (0, 1):
            for ch in range(c):
                pw[(2 * j + d) * c + ch, j * c + ch] = scale
    return pw


def pack_params(params):
    """Repack PyTorch-layout parameters into MXU-friendly bf16 operands."""
    bf, f32 = jnp.bfloat16, jnp.float32
    return dict(
        m1=jnp.asarray(_conv_band_matrix(params["w1"], _W + 4, _W1), bf),    # (160*cin, 168)
        b1=jnp.asarray(np.tile(np.asarray(params["b1"], np.float32), _W1)[None, :], f32),
        pw1=jnp.asarray(_col_pool_matrix(_W1, _C1, 0.25), bf),               # (168, 84)
        m2=jnp.asarray(_conv_band_matrix(params["w2"], _W2, _W3), bf),       # (420, 160)
        b2=jnp.asarray(np.tile(np.asarray(params["b2"], np.float32), _W3)[None, :], f32),
        pw2=jnp.asarray(_col_pool_matrix(_W3, _C2, 0.25), bf),               # (160, 80)
        m3=jnp.asarray(_conv_band_matrix(params["w3"], _W4, 1), bf),         # (400, 120)
        b3=jnp.asarray(np.asarray(params["b3"], np.float32)[None, :], f32),
        fw1=jnp.asarray(np.asarray(params["fc1_w"], np.float32).T, bf),      # (120, 84)
        fb1=jnp.asarray(np.asarray(params["fc1_b"], np.float32)[None, :], f32),
        fw2=jnp.asarray(np.asarray(params["fc2_w"], np.float32).T, bf),      # (84, 10)
        fb2=jnp.asarray(np.asarray(params["fc2_b"], np.float32)[None, :], f32),
    )


# ----------------------------------------------------------------------------
# The fused Pallas kernel (one grid step == TB images through the whole net)
# ----------------------------------------------------------------------------
def _make_kernel(TB, cin, emit_features):
    WPC = (_W + 4) * cin      # padded input row width (lanes)
    L1 = _W1 * _C1            # 168
    L2 = _W2 * _C1            # 84
    L3 = _W3 * _C2            # 160
    L4 = _W4 * _C2            # 80

    def kernel(xp_ref, m1_ref, b1_ref, pw1_ref, m2_ref, b2_ref, pw2_ref,
               m3_ref, b3_ref, fw1_ref, fb1_ref, fw2_ref, fb2_ref, *rest):
        if emit_features:
            (x1_ref, x3_ref, x5_ref, x7_ref, tail_ref,
             s1_ref, s2_ref, s3_ref) = rest
        else:
            tail_ref, s1_ref, s2_ref, s3_ref = rest

        def mm(a, w_ref):
            # bf16 MXU operands, f32 accumulation.
            return jnp.dot(a.astype(jnp.bfloat16), w_ref[...],
                           preferred_element_type=jnp.float32)

        def row_pair_add(a, half_rows, lanes):
            # Height 2x pooling: free layout-preserving reshape (TB % 8 == 0)
            # plus one VPU add.
            a4 = a.reshape(half_rows, 2, TB, lanes)
            return (a4[:, 0] + a4[:, 1]).reshape(half_rows * TB, lanes)

        # ---- conv1 ('same'; input pre-padded).  Gather 5 shifted row slabs
        #      into a kh-folded operand -> a single full-depth MXU pass.
        xp = xp_ref[...].reshape((_H + 4) * TB, WPC)               # (32*TB, WPC) f32
        for kh in range(_K):
            s1_ref[:, kh * WPC:(kh + 1) * WPC] = xp[kh * TB:(kh + _H1) * TB, :]
        x1 = mm(s1_ref[...], m1_ref) + b1_ref[...]                  # (28*TB, 168) f32
        if emit_features:
            x1_ref[...] = x1.reshape(_H1, TB, L1)

        # ---- avg-pool 2x2 (0.25 folded into pw1, applied after the pair-add).
        x3 = mm(row_pair_add(x1, _H2, L1), pw1_ref)                 # (14*TB, 84) f32
        if emit_features:
            x3_ref[...] = x3.reshape(_H2, TB, L2)

        # ---- conv2 ('valid'), same kh-folded single-pass scheme.
        for kh in range(_K):
            s2_ref[:, kh * L2:(kh + 1) * L2] = x3[kh * TB:(kh + _H3) * TB, :]
        x5 = mm(s2_ref[...], m2_ref) + b2_ref[...]                  # (10*TB, 160) f32
        if emit_features:
            x5_ref[...] = x5.reshape(_H3, TB, L3)

        # ---- avg-pool 2x2.
        x7 = mm(row_pair_add(x5, _H4, L3), pw2_ref)                 # (5*TB, 80) f32
        if emit_features:
            x7_ref[...] = x7.reshape(_H4, TB, L4)

        # ---- conv3 (5x5 valid -> 1x1) == FC over the flattened 5x5x16 window,
        #      batched over all TB images.
        for kh in range(_K):
            s3_ref[:, kh * L4:(kh + 1) * L4] = x7[kh * TB:(kh + 1) * TB, :]
        x9 = mm(s3_ref[...], m3_ref) + b3_ref[...]                  # (TB, 120) f32

        # ---- fc1 -> fc2 -> log_softmax (dim=1), batched over TB.
        x12 = mm(x9, fw1_ref) + fb1_ref[...]                        # (TB, 84)
        x14 = mm(x12, fw2_ref) + fb2_ref[...]                       # (TB, 10)
        s = x14 - jnp.max(x14, axis=-1, keepdims=True)
        x15 = s - jnp.log(jnp.sum(jnp.exp(s), axis=-1, keepdims=True))

        if emit_features:
            # One lane-packed tail output (x9 | x12 | x14 | x15) -> single DMA.
            tail_ref[:, 0:_C3] = x9
            tail_ref[:, _C3:_C3 + _FC1] = x12
            tail_ref[:, _C3 + _FC1:_C3 + _FC1 + _NCLS] = x14
            tail_ref[:, _C3 + _FC1 + _NCLS:_TAIL] = x15
        else:
            tail_ref[...] = x15

    return kernel


# ----------------------------------------------------------------------------
# pallas_call wrapper
# ----------------------------------------------------------------------------
def _lenet_pallas(xp, packed, TB, emit_features):
    Hpad, B_pad, WPC = xp.shape
    cin = WPC // (_W + 4)
    G = B_pad // TB

    def const_spec(a):
        nd = a.ndim
        return pl.BlockSpec(a.shape, lambda g, _z=(0,) * nd: _z)

    in_specs = [pl.BlockSpec((Hpad, TB, WPC), lambda g: (0, g, 0))] + [
        const_spec(packed[k]) for k in
        ("m1", "b1", "pw1", "m2", "b2", "pw2", "m3", "b3",
         "fw1", "fb1", "fw2", "fb2")]

    if emit_features:
        out_shape = (
            jax.ShapeDtypeStruct((_H1, B_pad, _W1 * _C1), jnp.float32),
            jax.ShapeDtypeStruct((_H2, B_pad, _W2 * _C1), jnp.float32),
            jax.ShapeDtypeStruct((_H3, B_pad, _W3 * _C2), jnp.float32),
            jax.ShapeDtypeStruct((_H4, B_pad, _W4 * _C2), jnp.float32),
            jax.ShapeDtypeStruct((B_pad, _TAIL), jnp.float32),
        )
        out_specs = (
            pl.BlockSpec((_H1, TB, _W1 * _C1), lambda g: (0, g, 0)),
            pl.BlockSpec((_H2, TB, _W2 * _C1), lambda g: (0, g, 0)),
            pl.BlockSpec((_H3, TB, _W3 * _C2), lambda g: (0, g, 0)),
            pl.BlockSpec((_H4, TB, _W4 * _C2), lambda g: (0, g, 0)),
            pl.BlockSpec((TB, _TAIL), lambda g: (g, 0)),
        )
    else:
        out_shape = jax.ShapeDtypeStruct((B_pad, _NCLS), jnp.float32)
        out_specs = pl.BlockSpec((TB, _NCLS), lambda g: (g, 0))

    scratch_shapes = [
        pltpu.VMEM((_H1 * TB, _K * WPC), jnp.float32),        # conv1 kh-folded operand
        pltpu.VMEM((_H3 * TB, _K * _W2 * _C1), jnp.float32),  # conv2 kh-folded operand
        pltpu.VMEM((TB, _K * _W4 * _C2), jnp.float32),        # conv3 flattened window
    ]

    return pl.pallas_call(
        _make_kernel(TB, cin, emit_features),
        grid=(G,),
        in_specs=in_specs,
        out_specs=out_specs,
        out_shape=out_shape,
        scratch_shapes=scratch_shapes,
        compiler_params=pltpu.CompilerParams(
            dimension_semantics=("parallel",),       # batch blocks -> 2 TCs on v7x
            vmem_limit_bytes=32 * 1024 * 1024),
    )(xp,
      packed["m1"], packed["b1"], packed["pw1"],
      packed["m2"], packed["b2"], packed["pw2"],
      packed["m3"], packed["b3"],
      packed["fw1"], packed["fb1"], packed["fw2"], packed["fb2"])


def _pick_tb(B):
    return min(64, _round_up(max(B, 1), 8))


def _prep_input(x, TB):
    """NCHW -> zero-padded (H+4, B_pad, (W+4)*Cin) layout (batch on sublanes)."""
    B, cin, H, W = x.shape
    B_pad = _round_up(max(B, 1), TB)
    xp = jnp.pad(x.astype(jnp.float32),
                 ((0, B_pad - B), (0, 0), (2, 2), (2, 2)))
    xp = jnp.transpose(xp, (2, 0, 3, 1)).reshape(H + 4, B_pad, (W + 4) * cin)
    return xp, B_pad


@jax.jit
def lenet5_forward(x, packed):
    """Mirrors LeNet_5_N.forward: returns (feature_map, x15)."""
    B, cin, H, W = x.shape
    assert (H, W) == (_H, _W), "flatten to 120 features requires 28x28 input"
    TB = _pick_tb(B)
    xp, _ = _prep_input(x, TB)
    x1f, x3f, x5f, x7f, tail = _lenet_pallas(xp, packed, TB, emit_features=True)

    def nchw(a, h, w, c):
        return a[:, :B, :].reshape(h, B, w, c).transpose(1, 3, 0, 2)

    x1 = nchw(x1f, _H1, _W1, _C1)
    x3 = nchw(x3f, _H2, _W2, _C1)
    x5 = nchw(x5f, _H3, _W3, _C2)
    x7 = nchw(x7f, _H4, _W4, _C2)
    tail = tail[:B]
    x9 = tail[:, :_C3].reshape(B, _C3, 1, 1)
    x12 = tail[:, _C3:_C3 + _FC1]
    x14 = tail[:, _C3 + _FC1:_C3 + _FC1 + _NCLS]
    x15 = tail[:, _C3 + _FC1 + _NCLS:_TAIL]
    feature_map = [x1, x3, x5, x7, x9, x12, x14, x15]
    return feature_map, x15


@jax.jit
def lenet5_logits(x, packed):
    """Inference-only entry point: returns just x15 (no feature-map traffic)."""
    B = x.shape[0]
    TB = _pick_tb(B)
    xp, _ = _prep_input(x, TB)
    out = _lenet_pallas(xp, packed, TB, emit_features=False)
    return out[:B]


# ----------------------------------------------------------------------------
# Parameters / pure-JAX reference (self-check)
# ----------------------------------------------------------------------------
def init_params(key, input_channel):
    ks = jax.random.split(key, 10)

    def rnd(k, shape, scale):
        return scale * jax.random.normal(k, shape, jnp.float32)

    return {
        "w1": rnd(ks[0], (6, input_channel, 5, 5), 0.1),
        "b1": rnd(ks[1], (6,), 0.1),
        "w2": rnd(ks[2], (16, 6, 5, 5), 0.1),
        "b2": rnd(ks[3], (16,), 0.1),
        "w3": rnd(ks[4], (120, 16, 5, 5), 0.05),
        "b3": rnd(ks[5], (120,), 0.05),
        "fc1_w": rnd(ks[6], (84, 120), 0.05),
        "fc1_b": rnd(ks[7], (84,), 0.05),
        "fc2_w": rnd(ks[8], (10, 84), 0.05),
        "fc2_b": rnd(ks[9], (10,), 0.05),
    }


def _avg_pool_ref(a):
    return 0.25 * (a[:, :, 0::2, 0::2] + a[:, :, 0::2, 1::2]
                   + a[:, :, 1::2, 0::2] + a[:, :, 1::2, 1::2])


def lenet5_reference(x, params):
    dn = ("NCHW", "OIHW", "NCHW")

    def conv(a, w, pad):
        return lax.conv_general_dilated(a, w, window_strides=(1, 1),
                                        padding=pad, dimension_numbers=dn)

    x1 = conv(x, params["w1"], ((2, 2), (2, 2))) + params["b1"][None, :, None, None]
    x3 = _avg_pool_ref(x1)
    x5 = conv(x3, params["w2"], ((0, 0), (0, 0))) + params["b2"][None, :, None, None]
    x7 = _avg_pool_ref(x5)
    x9 = conv(x7, params["w3"], ((0, 0), (0, 0))) + params["b3"][None, :, None, None]
    x11 = x9.reshape(x9.shape[0], -1)
    x12 = x11 @ params["fc1_w"].T + params["fc1_b"]
    x14 = x12 @ params["fc2_w"].T + params["fc2_b"]
    x15 = jax.nn.log_softmax(x14, axis=1)
    return [x1, x3, x5, x7, x9, x12, x14, x15], x15


if __name__ == "__main__":
    B, C, H, W = 2, 1, 28, 28
    key = jax.random.PRNGKey(0)
    k_in, k_par = jax.random.split(key)
    x = jax.random.normal(k_in, (B, C, H, W), jnp.float32)
    params = init_params(k_par, C)
    packed = pack_params(params)          # one-time host-side weight repack

    feature_map, logprobs = lenet5_forward(x, packed)
    jax.block_until_ready(logprobs)
    jax.block_until_ready(feature_map)

    expected = [(B, 6, 28, 28), (B, 6, 14, 14), (B, 16, 10, 10), (B, 16, 5, 5),
                (B, 120, 1, 1), (B, 84), (B, 10), (B, 10)]
    assert [tuple(f.shape) for f in feature_map] == expected
    assert logprobs.shape == (B, 10)

    # Numerical self-check vs. a plain f32 JAX reference (bf16 MXU operands
    # with f32 accumulation -> loose tolerance).
    ref_fm, ref_lp = lenet5_reference(x, params)
    for got, ref in zip(feature_map, ref_fm):
        np.testing.assert_allclose(np.asarray(got), np.asarray(ref),
                                   rtol=4e-2, atol=4e-2)
    np.testing.assert_allclose(np.asarray(logprobs), np.asarray(ref_lp),
                               rtol=4e-2, atol=4e-2)

    # Inference-only entry point agrees with the full forward.
    lp2 = lenet5_logits(x, packed)
    jax.block_until_ready(lp2)
    np.testing.assert_allclose(np.asarray(lp2), np.asarray(logprobs),
                               rtol=1e-5, atol=1e-5)

    print("KERNEL_OK")
</pallas_src>

<mosaic_0001>
module attributes {stable_mosaic.version = 11 : i64} {
  func.func @kernel(%arg0: i32, %arg1: memref<32x8x32xf32, #tpu.memory_space<vmem>>, %arg2: memref<160x168xbf16, #tpu.memory_space<vmem>>, %arg3: memref<1x168xf32, #tpu.memory_space<vmem>>, %arg4: memref<168x84xbf16, #tpu.memory_space<vmem>>, %arg5: memref<420x160xbf16, #tpu.memory_space<vmem>>, %arg6: memref<1x160xf32, #tpu.memory_space<vmem>>, %arg7: memref<160x80xbf16, #tpu.memory_space<vmem>>, %arg8: memref<400x120xbf16, #tpu.memory_space<vmem>>, %arg9: memref<1x120xf32, #tpu.memory_space<vmem>>, %arg10: memref<120x84xbf16, #tpu.memory_space<vmem>>, %arg11: memref<1x84xf32, #tpu.memory_space<vmem>>, %arg12: memref<84x10xbf16, #tpu.memory_space<vmem>>, %arg13: memref<1x10xf32, #tpu.memory_space<vmem>>, %arg14: memref<28x8x168xf32, #tpu.memory_space<vmem>>, %arg15: memref<14x8x84xf32, #tpu.memory_space<vmem>>, %arg16: memref<10x8x160xf32, #tpu.memory_space<vmem>>, %arg17: memref<5x8x80xf32, #tpu.memory_space<vmem>>, %arg18: memref<8x224xf32, #tpu.memory_space<vmem>>, %arg19: memref<224x160xf32, #tpu.memory_space<vmem>>, %arg20: memref<80x420xf32, #tpu.memory_space<vmem>>, %arg21: memref<8x400xf32, #tpu.memory_space<vmem>>) attributes {dimension_semantics = [#tpu.dimension_semantics<parallel>], iteration_bounds = array<i64: 1>, scalar_prefetch = 0 : i64, scratch_operands = 3 : i64, tpu.core_type = #tpu.core_type<tc>, window_params = [{transform_indices = @transform_0, window_bounds = array<i64: 32, 8, 32>}, {pipeline_mode = #tpu.pipeline_mode<synchronous>, transform_indices = @transform_1, window_bounds = array<i64: 160, 168>}, {pipeline_mode = #tpu.pipeline_mode<synchronous>, transform_indices = @transform_2, window_bounds = array<i64: 1, 168>}, {pipeline_mode = #tpu.pipeline_mode<synchronous>, transform_indices = @transform_3, window_bounds = array<i64: 168, 84>}, {pipeline_mode = #tpu.pipeline_mode<synchronous>, transform_indices = @transform_4, window_bounds = array<i64: 420, 160>}, {pipeline_mode = #tpu.pipeline_mode<synchronous>, transform_indices = @transform_5, window_bounds = array<i64: 1, 160>}, {pipeline_mode = #tpu.pipeline_mode<synchronous>, transform_indices = @transform_6, window_bounds = array<i64: 160, 80>}, {pipeline_mode = #tpu.pipeline_mode<synchronous>, transform_indices = @transform_7, window_bounds = array<i64: 400, 120>}, {pipeline_mode = #tpu.pipeline_mode<synchronous>, transform_indices = @transform_8, window_bounds = array<i64: 1, 120>}, {pipeline_mode = #tpu.pipeline_mode<synchronous>, transform_indices = @transform_9, window_bounds = array<i64: 120, 84>}, {pipeline_mode = #tpu.pipeline_mode<synchronous>, transform_indices = @transform_10, window_bounds = array<i64: 1, 84>}, {pipeline_mode = #tpu.pipeline_mode<synchronous>, transform_indices = @transform_11, window_bounds = array<i64: 84, 10>}, {pipeline_mode = #tpu.pipeline_mode<synchronous>, transform_indices = @transform_12, window_bounds = array<i64: 1, 10>}, {transform_indices = @transform_13, window_bounds = array<i64: 28, 8, 168>}, {transform_indices = @transform_14, window_bounds = array<i64: 14, 8, 84>}, {transform_indices = @transform_15, window_bounds = array<i64: 10, 8, 160>}, {transform_indices = @transform_16, window_bounds = array<i64: 5, 8, 80>}, {transform_indices = @transform_17, window_bounds = array<i64: 8, 224>}]} {
    %c0 = arith.constant 0 : index
    %c0_0 = arith.constant 0 : index
    %c0_1 = arith.constant 0 : index
    %0 = vector.load %arg1[%c0, %c0_0, %c0_1] : memref<32x8x32xf32, #tpu.memory_space<vmem>>, vector<32x8x32xf32>
    %1 = vector.shape_cast %0 : vector<32x8x32xf32> to vector<256x32xf32>
    %2 = vector.extract_strided_slice %1 {offsets = [0, 0], sizes = [224, 32], strides = [1, 1]} : vector<256x32xf32> to vector<224x32xf32>
    %c0_2 = arith.constant 0 : index
    %c0_3 = arith.constant 0 : index
    %3 = vector.load %arg19[%c0_2, %c0_3] : memref<224x160xf32, #tpu.memory_space<vmem>>, vector<224x32xf32>
    tpu.vector_store %arg19[%c0_2, %c0_3], %2 {strides = array<i32>} : memref<224x160xf32, #tpu.memory_space<vmem>>, vector<224x32xf32>,
    %4 = vector.extract_strided_slice %1 {offsets = [8, 0], sizes = [224, 32], strides = [1, 1]} : vector<256x32xf32> to vector<224x32xf32>
    %c0_4 = arith.constant 0 : index
    %c32 = arith.constant 32 : index
    %5 = vector.load %arg19[%c0_4, %c32] : memref<224x160xf32, #tpu.memory_space<vmem>>, vector<224x32xf32>
    tpu.vector_store %arg19[%c0_4, %c32], %4 {strides = array<i32>} : memref<224x160xf32, #tpu.memory_space<vmem>>, vector<224x32xf32>,
    %6 = vector.extract_strided_slice %1 {offsets = [16, 0], sizes = [224, 32], strides = [1, 1]} : vector<256x32xf32> to vector<224x32xf32>
    %c0_5 = arith.constant 0 : index
    %c64 = arith.constant 64 : index
    %7 = vector.load %arg19[%c0_5, %c64] : memref<224x160xf32, #tpu.memory_space<vmem>>, vector<224x32xf32>
    tpu.vector_store %arg19[%c0_5, %c64], %6 {strides = array<i32>} : memref<224x160xf32, #tpu.memory_space<vmem>>, vector<224x32xf32>,
    %8 = vector.extract_strided_slice %1 {offsets = [24, 0], sizes = [224, 32], strides = [1, 1]} : vector<256x32xf32> to vector<224x32xf32>
    %c0_6 = arith.constant 0 : index
    %c96 = arith.constant 96 : index
    %9 = vector.load %arg19[%c0_6, %c96] : memref<224x160xf32, #tpu.memory_space<vmem>>, vector<224x32xf32>
    tpu.vector_store %arg19[%c0_6, %c96], %8 {strides = array<i32>} : memref<224x160xf32, #tpu.memory_space<vmem>>, vector<224x32xf32>,
    %10 = vector.extract_strided_slice %1 {offsets = [32, 0], sizes = [224, 32], strides = [1, 1]} : vector<256x32xf32> to vector<224x32xf32>
    %c0_7 = arith.constant 0 : index
    %c128 = arith.constant 128 : index
    %11 = vector.load %arg19[%c0_7, %c128] : memref<224x160xf32, #tpu.memory_space<vmem>>, vector<224x32xf32>
    tpu.vector_store %arg19[%c0_7, %c128], %10 {strides = array<i32>} : memref<224x160xf32, #tpu.memory_space<vmem>>, vector<224x32xf32>,
    %c0_8 = arith.constant 0 : index
    %c0_9 = arith.constant 0 : index
    %12 = vector.load %arg19[%c0_8, %c0_9] : memref<224x160xf32, #tpu.memory_space<vmem>>, vector<224x160xf32>
    %13 = arith.truncf %12 : vector<224x160xf32> to vector<224x160xbf16>
    %c0_10 = arith.constant 0 : index
    %c0_11 = arith.constant 0 : index
    %14 = vector.load %arg2[%c0_10, %c0_11] : memref<160x168xbf16, #tpu.memory_space<vmem>>, vector<160x168xbf16>
    %cst = arith.constant dense<0.000000e+00> : vector<224x168xf32>
    %15 = tpu.matmul %13, %14, %cst {dimension_numbers = #tpu.dot_dimension_numbers<[1], [0], [0], [1], [0, 0, 1, 1], [], []>} : vector<224x160xbf16>, vector<160x168xbf16>, vector<224x168xf32> -> vector<224x168xf32>
    %c0_12 = arith.constant 0 : index
    %c0_13 = arith.constant 0 : index
    %16 = vector.load %arg3[%c0_12, %c0_13] : memref<1x168xf32, #tpu.memory_space<vmem>>, vector<1x168xf32>
    %17 = vector.broadcast %16 : vector<1x168xf32> to vector<224x168xf32>
    %18 = arith.addf %15, %17 : vector<224x168xf32>
    %19 = vector.shape_cast %18 : vector<224x168xf32> to vector<28x8x168xf32>
    %c0_14 = arith.constant 0 : index
    %c0_15 = arith.constant 0 : index
    %c0_16 = arith.constant 0 : index
    %20 = vector.load %arg14[%c0_14, %c0_15, %c0_16] : memref<28x8x168xf32, #tpu.memory_space<vmem>>, vector<28x8x168xf32>
    tpu.vector_store %arg14[%c0_14, %c0_15, %c0_16], %19 {strides = array<i32>} : memref<28x8x168xf32, #tpu.memory_space<vmem>>, vector<28x8x168xf32>,
    %21 = vector.shape_cast %18 : vector<224x168xf32> to vector<14x2x8x168xf32>
    %22 = vector.extract_strided_slice %21 {offsets = [0, 0, 0, 0], sizes = [14, 1, 8, 168], strides = [1, 1, 1, 1]} : vector<14x2x8x168xf32> to vector<14x1x8x168xf32>
    %23 = vector.shape_cast %22 : vector<14x1x8x168xf32> to vector<14x8x168xf32>
    %24 = vector.extract_strided_slice %21 {offsets = [0, 1, 0, 0], sizes = [14, 1, 8, 168], strides = [1, 1, 1, 1]} : vector<14x2x8x168xf32> to vector<14x1x8x168xf32>
    %25 = vector.shape_cast %24 : vector<14x1x8x168xf32> to vector<14x8x168xf32>
    %26 = arith.addf %23, %25 : vector<14x8x168xf32>
    %27 = vector.shape_cast %26 : vector<14x8x168xf32> to vector<112x168xf32>
    %28 = arith.truncf %27 : vector<112x168xf32> to vector<112x168xbf16>
    %c0_17 = arith.constant 0 : index
    %c0_18 = arith.constant 0 : index
    %29 = vector.load %arg4[%c0_17, %c0_18] : memref<168x84xbf16, #tpu.memory_space<vmem>>, vector<168x84xbf16>
    %cst_19 = arith.constant dense<0.000000e+00> : vector<112x84xf32>
    %30 = tpu.matmul %28, %29, %cst_19 {dimension_numbers = #tpu.dot_dimension_numbers<[1], [0], [0], [1], [0, 0, 1, 1], [], []>} : vector<112x168xbf16>, vector<168x84xbf16>, vector<112x84xf32> -> vector<112x84xf32>
    %31 = vector.shape_cast %30 : vector<112x84xf32> to vector<14x8x84xf32>
    %c0_20 = arith.constant 0 : index
    %c0_21 = arith.constant 0 : index
    %c0_22 = arith.constant 0 : index
    %32 = vector.load %arg15[%c0_20, %c0_21, %c0_22] : memref<14x8x84xf32, #tpu.memory_space<vmem>>, vector<14x8x84xf32>
    tpu.vector_store %arg15[%c0_20, %c0_21, %c0_22], %31 {strides = array<i32>} : memref<14x8x84xf32, #tpu.memory_space<vmem>>, vector<14x8x84xf32>,
    %33 = vector.extract_strided_slice %30 {offsets = [0, 0], sizes = [80, 84], strides = [1, 1]} : vector<112x84xf32> to vector<80x84xf32>
    %c0_23 = arith.constant 0 : index
    %c0_24 = arith.constant 0 : index
    %34 = vector.load %arg20[%c0_23, %c0_24] : memref<80x420xf32, #tpu.memory_space<vmem>>, vector<80x84xf32>
    tpu.vector_store %arg20[%c0_23, %c0_24], %33 {strides = array<i32>} : memref<80x420xf32, #tpu.memory_space<vmem>>, vector<80x84xf32>,
    %35 = vector.extract_strided_slice %30 {offsets = [8, 0], sizes = [80, 84], strides = [1, 1]} : vector<112x84xf32> to vector<80x84xf32>
    %c0_25 = arith.constant 0 : index
    %c84 = arith.constant 84 : index
    %36 = vector.load %arg20[%c0_25, %c84] : memref<80x420xf32, #tpu.memory_space<vmem>>, vector<80x84xf32>
    tpu.vector_store %arg20[%c0_25, %c84], %35 {strides = array<i32>} : memref<80x420xf32, #tpu.memory_space<vmem>>, vector<80x84xf32>,
    %37 = vector.extract_strided_slice %30 {offsets = [16, 0], sizes = [80, 84], strides = [1, 1]} : vector<112x84xf32> to vector<80x84xf32>
    %c0_26 = arith.constant 0 : index
    %c168 = arith.constant 168 : index
    %38 = vector.load %arg20[%c0_26, %c168] : memref<80x420xf32, #tpu.memory_space<vmem>>, vector<80x84xf32>
    tpu.vector_store %arg20[%c0_26, %c168], %37 {strides = array<i32>} : memref<80x420xf32, #tpu.memory_space<vmem>>, vector<80x84xf32>,
    %39 = vector.extract_strided_slice %30 {offsets = [24, 0], sizes = [80, 84], strides = [1, 1]} : vector<112x84xf32> to vector<80x84xf32>
    %c0_27 = arith.constant 0 : index
    %c252 = arith.constant 252 : index
    %40 = vector.load %arg20[%c0_27, %c252] : memref<80x420xf32, #tpu.memory_space<vmem>>, vector<80x84xf32>
    tpu.vector_store %arg20[%c0_27, %c252], %39 {strides = array<i32>} : memref<80x420xf32, #tpu.memory_space<vmem>>, vector<80x84xf32>,
    %41 = vector.extract_strided_slice %30 {offsets = [32, 0], sizes = [80, 84], strides = [1, 1]} : vector<112x84xf32> to vector<80x84xf32>
    %c0_28 = arith.constant 0 : index
    %c336 = arith.constant 336 : index
    %42 = vector.load %arg20[%c0_28, %c336] : memref<80x420xf32, #tpu.memory_space<vmem>>, vector<80x84xf32>
    tpu.vector_store %arg20[%c0_28, %c336], %41 {strides = array<i32>} : memref<80x420xf32, #tpu.memory_space<vmem>>, vector<80x84xf32>,
    %c0_29 = arith.constant 0 : index
    %c0_30 = arith.constant 0 : index
    %43 = vector.load %arg20[%c0_29, %c0_30] : memref<80x420xf32, #tpu.memory_space<vmem>>, vector<80x420xf32>
    %44 = arith.truncf %43 : vector<80x420xf32> to vector<80x420xbf16>
    %c0_31 = arith.constant 0 : index
    %c0_32 = arith.constant 0 : index
    %45 = vector.load %arg5[%c0_31, %c0_32] : memref<420x160xbf16, #tpu.memory_space<vmem>>, vector<420x160xbf16>
    %cst_33 = arith.constant dense<0.000000e+00> : vector<80x160xf32>
    %46 = tpu.matmul %44, %45, %cst_33 {dimension_numbers = #tpu.dot_dimension_numbers<[1], [0], [0], [1], [0, 0, 1, 1], [], []>} : vector<80x420xbf16>, vector<420x160xbf16>, vector<80x160xf32> -> vector<80x160xf32>
    %c0_34 = arith.constant 0 : index
    %c0_35 = arith.constant 0 : index
    %47 = vector.load %arg6[%c0_34, %c0_35] : memref<1x160xf32, #tpu.memory_space<vmem>>, vector<1x160xf32>
    %48 = vector.broadcast %47 : vector<1x160xf32> to vector<80x160xf32>
    %49 = arith.addf %46, %48 : vector<80x160xf32>
    %50 = vector.shape_cast %49 : vector<80x160xf32> to vector<10x8x160xf32>
    %c0_36 = arith.constant 0 : index
    %c0_37 = arith.constant 0 : index
    %c0_38 = arith.constant 0 : index
    %51 = vector.load %arg16[%c0_36, %c0_37, %c0_38] : memref<10x8x160xf32, #tpu.memory_space<vmem>>, vector<10x8x160xf32>
    tpu.vector_store %arg16[%c0_36, %c0_37, %c0_38], %50 {strides = array<i32>} : memref<10x8x160xf32, #tpu.memory_space<vmem>>, vector<10x8x160xf32>,
    %52 = vector.shape_cast %49 : vector<80x160xf32> to vector<5x2x8x160xf32>
    %53 = vector.extract_strided_slice %52 {offsets = [0, 0, 0, 0], sizes = [5, 1, 8, 160], strides = [1, 1, 1, 1]} : vector<5x2x8x160xf32> to vector<5x1x8x160xf32>
    %54 = vector.shape_cast %53 : vector<5x1x8x160xf32> to vector<5x8x160xf32>
    %55 = vector.extract_strided_slice %52 {offsets = [0, 1, 0, 0], sizes = [5, 1, 8, 160], strides = [1, 1, 1, 1]} : vector<5x2x8x160xf32> to vector<5x1x8x160xf32>
    %56 = vector.shape_cast %55 : vector<5x1x8x160xf32> to vector<5x8x160xf32>
    %57 = arith.addf %54, %56 : vector<5x8x160xf32>
    %58 = vector.shape_cast %57 : vector<5x8x160xf32> to vector<40x160xf32>
    %59 = arith.truncf %58 : vector<40x160xf32> to vector<40x160xbf16>
    %c0_39 = arith.constant 0 : index
    %c0_40 = arith.constant 0 : index
    %60 = vector.load %arg7[%c0_39, %c0_40] : memref<160x80xbf16, #tpu.memory_space<vmem>>, vector<160x80xbf16>
    %cst_41 = arith.constant dense<0.000000e+00> : vector<40x80xf32>
    %61 = tpu.matmul %59, %60, %cst_41 {dimension_numbers = #tpu.dot_dimension_numbers<[1], [0], [0], [1], [0, 0, 1, 1], [], []>} : vector<40x160xbf16>, vector<160x80xbf16>, vector<40x80xf32> -> vector<40x80xf32>
    %62 = vector.shape_cast %61 : vector<40x80xf32> to vector<5x8x80xf32>
    %c0_42 = arith.constant 0 : index
    %c0_43 = arith.constant 0 : index
    %c0_44 = arith.constant 0 : index
    %63 = vector.load %arg17[%c0_42, %c0_43, %c0_44] : memref<5x8x80xf32, #tpu.memory_space<vmem>>, vector<5x8x80xf32>
    tpu.vector_store %arg17[%c0_42, %c0_43, %c0_44], %62 {strides = array<i32>} : memref<5x8x80xf32, #tpu.memory_space<vmem>>, vector<5x8x80xf32>,
    %64 = vector.extract_strided_slice %61 {offsets = [0, 0], sizes = [8, 80], strides = [1, 1]} : vector<40x80xf32> to vector<8x80xf32>
    %c0_45 = arith.constant 0 : index
    %c0_46 = arith.constant 0 : index
    %65 = vector.load %arg21[%c0_45, %c0_46] : memref<8x400xf32, #tpu.memory_space<vmem>>, vector<8x80xf32>
    tpu.vector_store %arg21[%c0_45, %c0_46], %64 {strides = array<i32>} : memref<8x400xf32, #tpu.memory_space<vmem>>, vector<8x80xf32>,
    %66 = vector.extract_strided_slice %61 {offsets = [8, 0], sizes = [8, 80], strides = [1, 1]} : vector<40x80xf32> to vector<8x80xf32>
    %c0_47 = arith.constant 0 : index
    %c80 = arith.constant 80 : index
    %67 = vector.load %arg21[%c0_47, %c80] : memref<8x400xf32, #tpu.memory_space<vmem>>, vector<8x80xf32>
    tpu.vector_store %arg21[%c0_47, %c80], %66 {strides = array<i32>} : memref<8x400xf32, #tpu.memory_space<vmem>>, vector<8x80xf32>,
    %68 = vector.extract_strided_slice %61 {offsets = [16, 0], sizes = [8, 80], strides = [1, 1]} : vector<40x80xf32> to vector<8x80xf32>
    %c0_48 = arith.constant 0 : index
    %c160 = arith.constant 160 : index
    %69 = vector.load %arg21[%c0_48, %c160] : memref<8x400xf32, #tpu.memory_space<vmem>>, vector<8x80xf32>
    tpu.vector_store %arg21[%c0_48, %c160], %68 {strides = array<i32>} : memref<8x400xf32, #tpu.memory_space<vmem>>, vector<8x80xf32>,
    %70 = vector.extract_strided_slice %61 {offsets = [24, 0], sizes = [8, 80], strides = [1, 1]} : vector<40x80xf32> to vector<8x80xf32>
    %c0_49 = arith.constant 0 : index
    %c240 = arith.constant 240 : index
    %71 = vector.load %arg21[%c0_49, %c240] : memref<8x400xf32, #tpu.memory_space<vmem>>, vector<8x80xf32>
    tpu.vector_store %arg21[%c0_49, %c240], %70 {strides = array<i32>} : memref<8x400xf32, #tpu.memory_space<vmem>>, vector<8x80xf32>,
    %72 = vector.extract_strided_slice %61 {offsets = [32, 0], sizes = [8, 80], strides = [1, 1]} : vector<40x80xf32> to vector<8x80xf32>
    %c0_50 = arith.constant 0 : index
    %c320 = arith.constant 320 : index
    %73 = vector.load %arg21[%c0_50, %c320] : memref<8x400xf32, #tpu.memory_space<vmem>>, vector<8x80xf32>
    tpu.vector_store %arg21[%c0_50, %c320], %72 {strides = array<i32>} : memref<8x400xf32, #tpu.memory_space<vmem>>, vector<8x80xf32>,
    %c0_51 = arith.constant 0 : index
    %c0_52 = arith.constant 0 : index
    %74 = vector.load %arg21[%c0_51, %c0_52] : memref<8x400xf32, #tpu.memory_space<vmem>>, vector<8x400xf32>
    %75 = arith.truncf %74 : vector<8x400xf32> to vector<8x400xbf16>
    %c0_53 = arith.constant 0 : index
    %c0_54 = arith.constant 0 : index
    %76 = vector.load %arg8[%c0_53, %c0_54] : memref<400x120xbf16, #tpu.memory_space<vmem>>, vector<400x120xbf16>
    %cst_55 = arith.constant dense<0.000000e+00> : vector<8x120xf32>
    %77 = tpu.matmul %75, %76, %cst_55 {dimension_numbers = #tpu.dot_dimension_numbers<[1], [0], [0], [1], [0, 0, 1, 1], [], []>} : vector<8x400xbf16>, vector<400x120xbf16>, vector<8x120xf32> -> vector<8x120xf32>
    %c0_56 = arith.constant 0 : index
    %c0_57 = arith.constant 0 : index
    %78 = vector.load %arg9[%c0_56, %c0_57] : memref<1x120xf32, #tpu.memory_space<vmem>>, vector<1x120xf32>
    %79 = vector.broadcast %78 : vector<1x120xf32> to vector<8x120xf32>
    %80 = arith.addf %77, %79 : vector<8x120xf32>
    %81 = arith.truncf %80 : vector<8x120xf32> to vector<8x120xbf16>
    %c0_58 = arith.constant 0 : index
    %c0_59 = arith.constant 0 : index
    %82 = vector.load %arg10[%c0_58, %c0_59] : memref<120x84xbf16, #tpu.memory_space<vmem>>, vector<120x84xbf16>
    %cst_60 = arith.constant dense<0.000000e+00> : vector<8x84xf32>
    %83 = tpu.matmul %81, %82, %cst_60 {dimension_numbers = #tpu.dot_dimension_numbers<[1], [0], [0], [1], [0, 0, 1, 1], [], []>} : vector<8x120xbf16>, vector<120x84xbf16>, vector<8x84xf32> -> vector<8x84xf32>
    %c0_61 = arith.constant 0 : index
    %c0_62 = arith.constant 0 : index
    %84 = vector.load %arg11[%c0_61, %c0_62] : memref<1x84xf32, #tpu.memory_space<vmem>>, vector<1x84xf32>
    %85 = vector.broadcast %84 : vector<1x84xf32> to vector<8x84xf32>
    %86 = arith.addf %83, %85 : vector<8x84xf32>
    %87 = arith.truncf %86 : vector<8x84xf32> to vector<8x84xbf16>
    %c0_63 = arith.constant 0 : index
    %c0_64 = arith.constant 0 : index
    %88 = vector.load %arg12[%c0_63, %c0_64] : memref<84x10xbf16, #tpu.memory_space<vmem>>, vector<84x10xbf16>
    %cst_65 = arith.constant dense<0.000000e+00> : vector<8x10xf32>
    %89 = tpu.matmul %87, %88, %cst_65 {dimension_numbers = #tpu.dot_dimension_numbers<[1], [0], [0], [1], [0, 0, 1, 1], [], []>} : vector<8x84xbf16>, vector<84x10xbf16>, vector<8x10xf32> -> vector<8x10xf32>
    %c0_66 = arith.constant 0 : index
    %c0_67 = arith.constant 0 : index
    %90 = vector.load %arg13[%c0_66, %c0_67] : memref<1x10xf32, #tpu.memory_space<vmem>>, vector<1x10xf32>
    %91 = vector.broadcast %90 : vector<1x10xf32> to vector<8x10xf32>
    %92 = arith.addf %89, %91 : vector<8x10xf32>
    %cst_68 = arith.constant dense<0xFF800000> : vector<8xf32>
    %93 = vector.multi_reduction <maximumf>, %92, %cst_68 [1] : vector<8x10xf32> to vector<8xf32>
    %94 = vector.shape_cast %93 : vector<8xf32> to vector<8x1xf32>
    %95 = vector.broadcast %94 : vector<8x1xf32> to vector<8x10xf32>
    %96 = arith.subf %92, %95 : vector<8x10xf32>
    %97 = math.exp %96 : vector<8x10xf32>
    %cst_69 = arith.constant dense<0.000000e+00> : vector<8xf32>
    %98 = vector.multi_reduction <add>, %97, %cst_69 [1] : vector<8x10xf32> to vector<8xf32>
    %99 = vector.shape_cast %98 : vector<8xf32> to vector<8x1xf32>
    %100 = math.log %99 : vector<8x1xf32>
    %101 = vector.broadcast %100 : vector<8x1xf32> to vector<8x10xf32>
    %102 = arith.subf %96, %101 : vector<8x10xf32>
    %c0_70 = arith.constant 0 : index
    %c0_71 = arith.constant 0 : index
    %103 = vector.load %arg18[%c0_70, %c0_71] : memref<8x224xf32, #tpu.memory_space<vmem>>, vector<8x120xf32>
    tpu.vector_store %arg18[%c0_70, %c0_71], %80 {strides = array<i32>} : memref<8x224xf32, #tpu.memory_space<vmem>>, vector<8x120xf32>,
    %c0_72 = arith.constant 0 : index
    %c120 = arith.constant 120 : index
    %104 = vector.load %arg18[%c0_72, %c120] : memref<8x224xf32, #tpu.memory_space<vmem>>, vector<8x84xf32>
    tpu.vector_store %arg18[%c0_72, %c120], %86 {strides = array<i32>} : memref<8x224xf32, #tpu.memory_space<vmem>>, vector<8x84xf32>,
    %c0_73 = arith.constant 0 : index
    %c204 = arith.constant 204 : index
    %105 = vector.load %arg18[%c0_73, %c204] : memref<8x224xf32, #tpu.memory_space<vmem>>, vector<8x10xf32>
    tpu.vector_store %arg18[%c0_73, %c204], %92 {strides = array<i32>} : memref<8x224xf32, #tpu.memory_space<vmem>>, vector<8x10xf32>,
    %c0_74 = arith.constant 0 : index
    %c214 = arith.constant 214 : index
    %106 = vector.load %arg18[%c0_74, %c214] : memref<8x224xf32, #tpu.memory_space<vmem>>, vector<8x10xf32>
    tpu.vector_store %arg18[%c0_74, %c214], %102 {strides = array<i32>} : memref<8x224xf32, #tpu.memory_space<vmem>>, vector<8x10xf32>,
    return
  }
  func.func @transform_0(%arg0: i32) -> (i32, i32, i32) {
    %c0_i32 = arith.constant 0 : i32
    %c0_i32_0 = arith.constant 0 : i32
    %c0_i32_1 = arith.constant 0 : i32
    return %c0_i32, %arg0, %c0_i32_0 : i32, i32, i32
  }
  func.func @transform_1(%arg0: i32) -> (i32, i32) {
    %c0_i32 = arith.constant 0 : i32
    %c0_i32_0 = arith.constant 0 : i32
    %c0_i32_1 = arith.constant 0 : i32
    return %c0_i32, %c0_i32_0 : i32, i32
  }
  func.func @transform_2(%arg0: i32) -> (i32, i32) {
    %c0_i32 = arith.constant 0 : i32
    %c0_i32_0 = arith.constant 0 : i32
    %c0_i32_1 = arith.constant 0 : i32
    return %c0_i32, %c0_i32_0 : i32, i32
  }
  func.func @transform_3(%arg0: i32) -> (i32, i32) {
    %c0_i32 = arith.constant 0 : i32
    %c0_i32_0 = arith.constant 0 : i32
    %c0_i32_1 = arith.constant 0 : i32
    return %c0_i32, %c0_i32_0 : i32, i32
  }
  func.func @transform_4(%arg0: i32) -> (i32, i32) {
    %c0_i32 = arith.constant 0 : i32
    %c0_i32_0 = arith.constant 0 : i32
    %c0_i32_1 = arith.constant 0 : i32
    return %c0_i32, %c0_i32_0 : i32, i32
  }
  func.func @transform_5(%arg0: i32) -> (i32, i32) {
    %c0_i32 = arith.constant 0 : i32
    %c0_i32_0 = arith.constant 0 : i32
    %c0_i32_1 = arith.constant 0 : i32
    return %c0_i32, %c0_i32_0 : i32, i32
  }
  func.func @transform_6(%arg0: i32) -> (i32, i32) {
    %c0_i32 = arith.constant 0 : i32
    %c0_i32_0 = arith.constant 0 : i32
    %c0_i32_1 = arith.constant 0 : i32
    return %c0_i32, %c0_i32_0 : i32, i32
  }
  func.func @transform_7(%arg0: i32) -> (i32, i32) {
    %c0_i32 = arith.constant 0 : i32
    %c0_i32_0 = arith.constant 0 : i32
    %c0_i32_1 = arith.constant 0 : i32
    return %c0_i32, %c0_i32_0 : i32, i32
  }
  func.func @transform_8(%arg0: i32) -> (i32, i32) {
    %c0_i32 = arith.constant 0 : i32
    %c0_i32_0 = arith.constant 0 : i32
    %c0_i32_1 = arith.constant 0 : i32
    return %c0_i32, %c0_i32_0 : i32, i32
  }
  func.func @transform_9(%arg0: i32) -> (i32, i32) {
    %c0_i32 = arith.constant 0 : i32
    %c0_i32_0 = arith.constant 0 : i32
    %c0_i32_1 = arith.constant 0 : i32
    return %c0_i32, %c0_i32_0 : i32, i32
  }
  func.func @transform_10(%arg0: i32) -> (i32, i32) {
    %c0_i32 = arith.constant 0 : i32
    %c0_i32_0 = arith.constant 0 : i32
    %c0_i32_1 = arith.constant 0 : i32
    return %c0_i32, %c0_i32_0 : i32, i32
  }
  func.func @transform_11(%arg0: i32) -> (i32, i32) {
    %c0_i32 = arith.constant 0 : i32
    %c0_i32_0 = arith.constant 0 : i32
    %c0_i32_1 = arith.constant 0 : i32
    return %c0_i32, %c0_i32_0 : i32, i32
  }
  func.func @transform_12(%arg0: i32) -> (i32, i32) {
    %c0_i32 = arith.constant 0 : i32
    %c0_i32_0 = arith.constant 0 : i32
    %c0_i32_1 = arith.constant 0 : i32
    return %c0_i32, %c0_i32_0 : i32, i32
  }
  func.func @transform_13(%arg0: i32) -> (i32, i32, i32) {
    %c0_i32 = arith.constant 0 : i32
    %c0_i32_0 = arith.constant 0 : i32
    %c0_i32_1 = arith.constant 0 : i32
    return %c0_i32, %arg0, %c0_i32_0 : i32, i32, i32
  }
  func.func @transform_14(%arg0: i32) -> (i32, i32, i32) {
    %c0_i32 = arith.constant 0 : i32
    %c0_i32_0 = arith.constant 0 : i32
    %c0_i32_1 = arith.constant 0 : i32
    return %c0_i32, %arg0, %c0_i32_0 : i32, i32, i32
  }
  func.func @transform_15(%arg0: i32) -> (i32, i32, i32) {
    %c0_i32 = arith.constant 0 : i32
    %c0_i32_0 = arith.constant 0 : i32
    %c0_i32_1 = arith.constant 0 : i32
    return %c0_i32, %arg0, %c0_i32_0 : i32, i32, i32
  }
  func.func @transform_16(%arg0: i32) -> (i32, i32, i32) {
    %c0_i32 = arith.constant 0 : i32
    %c0_i32_0 = arith.constant 0 : i32
    %c0_i32_1 = arith.constant 0 : i32
    return %c0_i32, %arg0, %c0_i32_0 : i32, i32, i32
  }
  func.func @transform_17(%arg0: i32) -> (i32, i32) {
    %c0_i32 = arith.constant 0 : i32
    %c0_i32_0 = arith.constant 0 : i32
    return %arg0, %c0_i32 : i32, i32
  }
}

</mosaic_0001>

<bundles_post_ra>
// kernel: lenet5_forward.1
= control target key start
LH: loop header
LB: loop body
LE: loop exit
PB: predicated region body
PF: predicated region fallthrough
CT: control target
= control target key end

     0   :  { %vm82_vm0 = vcmask 261120   ;;  %s3299_s30 = smov 64   ;;  %s3300_s18 = smov 32   ;;  %vm223_vm1 = vcmask 523520   ;;  %vm337_vm2 = vcmask 785920   ;;  %vm451_vm3 = vcmask 1048320   ;;  %s5006_s0 = inlined_call_operand.vmem [shape: f32[32,8,32], index: 0, kind: input, shape index: {}]   ;;  %s5007_s1 = inlined_call_operand.vmem [shape: bf16[160,168], index: 1, kind: input, shape index: {}]   ;;  %s5008_s3 = inlined_call_operand.vmem [shape: bf16[168,84], index: 3, kind: input, shape index: {}]   ;;  %s5009_s2 = inlined_call_operand.vmem [shape: f32[1,168], index: 2, kind: input, shape index: {}]   ;;  %s5010_s13 = inlined_call_operand.vmem [shape: f32[28,8,168], index: 13, kind: output, shape index: {0}]   ;;  %s5011_s4 = inlined_call_operand.vmem [shape: bf16[420,160], index: 4, kind: input, shape index: {}]   ;;  %s5012_s14 = inlined_call_operand.vmem [shape: f32[14,8,84], index: 14, kind: output, shape index: {1}]   ;;  %s5013_s6 = inlined_call_operand.vmem [shape: bf16[160,80], index: 6, kind: input, shape index: {}]   ;;  %s5014_s5 = inlined_call_operand.vmem [shape: f32[1,160], index: 5, kind: input, shape index: {}]   ;;  %s5015_s15 = inlined_call_operand.vmem [shape: f32[10,8,160], index: 15, kind: output, shape index: {2}]   ;;  %s5016_s7 = inlined_call_operand.vmem [shape: bf16[400,120], index: 7, kind: input, shape index: {}]   ;;  %s5017_s16 = inlined_call_operand.vmem [shape: f32[5,8,80], index: 16, kind: output, shape index: {3}]   ;;  %s5018_s9 = inlined_call_operand.vmem [shape: bf16[120,84], index: 9, kind: input, shape index: {}]   ;;  %s5019_s11 = inlined_call_operand.vmem [shape: bf16[84,10], index: 11, kind: input, shape index: {}]   ;;  %s5020_s8 = inlined_call_operand.vmem [shape: f32[1,120], index: 8, kind: input, shape index: {}]   ;;  %s5021_s17 = inlined_call_operand.vmem [shape: f32[8,224], index: 17, kind: output, shape index: {4}]   ;;  %s5022_s10 = inlined_call_operand.vmem [shape: f32[1,84], index: 10, kind: input, shape index: {}]   ;;  %s5023_s12 = inlined_call_operand.vmem [shape: f32[1,10], index: 12, kind: input, shape index: {}]  }
   0x1   :  { %5026 = sst [smem:[#allocation5_spill]] %s5006_s0  ;;  %vm1143_vm4 = vcmask 1043456   ;;  %vm940_vm5 = vcmask 326656   ;;  %vm1236_vm6 = vcmask 687104   ;;  %s3303_s20 = smov 84   ;;  %vm1301_vm7 = vcmask 1048224  }
   0x2   :  { %5027 = sst [smem:[#allocation6_spill]] %s5007_s1  ;;  %s5028_s26 = sld [smem:[#allocation5_spill]]  ;;  %vm1353_vm8 = vcmask 1015104   ;;  %vm1395_vm9 = vcmask 1048544   ;;  %vm1397_vm10 = vcmask 654336   ;;  %vm1875_vm11 = vcmask 1041408  }
   0x3   :  { %s5029_s27 = sld [smem:[#allocation6_spill]]  ;;  %s3301_s1 = smov 96   ;;  %vm1448_vm12 = vcmask 1048192   ;;  %vm1450_vm13 = vcmask 293888   ;;  %vm2245_vm14 = vcmask 916736   ;;  %vm2251_vm15 = vcmask 1048448  }
   0x4   :  { %s3304_s28 = smov 40   ;;  %s3312_s21 = smov 86  }
   0x8   :  { %v52_v0 = vld [vmem:[%s5028_s26 + $0x10] sm:$0xff]  ;;  %v51_v1 = vld [vmem:[%s5028_s26 + $0x8] sm:$0xff]  ;;  %v3412_v2 = vld [vmem:[%s5028_s26 + $0x18] sm:$0xff] }
   0x9   :  { %253 = vrot.lane.b32.xlu1 %v52_v0, %s3299_s30  ;;  %139 = vrot.lane.b32.xlu0 %v51_v1, %s3300_s18  ;;  %84 = vst.msk [vmem:[#allocation2 + $0x10] sm:$0xff] %vm82_vm0, %v51_v1  ;;  %85 = vst.msk [vmem:[#allocation2 + $0x20] sm:$0xff] %vm82_vm0, %v52_v0  ;;  %v3423_v3 = vld [vmem:[%s5028_s26 + $0x20] sm:$0xff]  ;;  %v3428_v4 = vld [vmem:[%s5028_s26 + $0x28] sm:$0xff] }
   0xa   :  { %86 = vst.msk [vmem:[#allocation2 + $0x30] sm:$0xff] %vm82_vm0, %v3412_v2  ;;  %480 = vst.msk [vmem:[#allocation2 + $0x8] sm:$0xff] %vm82_vm0, %v3423_v3  ;;  %v3441_v5 = vld [vmem:[%s5028_s26 + $0x30] sm:$0xff]  ;;  %v3446_v6 = vld [vmem:[%s5028_s26 + $0x38] sm:$0xff] }
   0xb   :  { %87 = vst.msk [vmem:[#allocation2 + $0x40] sm:$0xff] %vm82_vm0, %v3423_v3  ;;  %481 = vst.msk [vmem:[#allocation2 + $0x18] sm:$0xff] %vm82_vm0, %v3428_v4  ;;  %v3451_v7 = vld [vmem:[%s5028_s26 + $0x40] sm:$0xff]  ;;  %v3468_v8 = vld [vmem:[%s5028_s26 + $0x48] sm:$0xff] }
   0xc   :  { %88 = vst.msk [vmem:[#allocation2 + $0x50] sm:$0xff] %vm82_vm0, %v3428_v4  ;;  %482 = vst.msk [vmem:[#allocation2 + $0x28] sm:$0xff] %vm82_vm0, %v3441_v5  ;;  %v3473_v9 = vld [vmem:[%s5028_s26 + $0x50] sm:$0xff]  ;;  %v3478_v10 = vld [vmem:[%s5028_s26 + $0x58] sm:$0xff] }
   0xd   :  { %89 = vst.msk [vmem:[#allocation2 + $0x60] sm:$0xff] %vm82_vm0, %v3441_v5  ;;  %483 = vst.msk [vmem:[#allocation2 + $0x38] sm:$0xff] %vm82_vm0, %v3446_v6  ;;  %v3495_v11 = vld [vmem:[%s5028_s26 + $0x60] sm:$0xff]  ;;  %v3500_v12 = vld [vmem:[%s5028_s26 + $0x68] sm:$0xff]  ;;  %255 = vrot.lane.b32.xlu1 %v3412_v2, %s3299_s30  ;;  %141 = vrot.lane.b32.xlu0 %v52_v0, %s3300_s18 }
   0xe   :  { %90 = vst.msk [vmem:[#allocation2 + $0x70] sm:$0xff] %vm82_vm0, %v3446_v6  ;;  %484 = vst.msk [vmem:[#allocation2 + $0x48] sm:$0xff] %vm82_vm0, %v3451_v7  ;;  %v3505_v13 = vld [vmem:[%s5028_s26 + $0x70] sm:$0xff]  ;;  %v3525_v14 = vld [vmem:[%s5028_s26 + $0x78] sm:$0xff] }
   0xf   :  { %91 = vst.msk [vmem:[#allocation2 + $0x80] sm:$0xff] %vm82_vm0, %v3451_v7  ;;  %485 = vst.msk [vmem:[#allocation2 + $0x58] sm:$0xff] %vm82_vm0, %v3468_v8  ;;  %v3530_v15 = vld [vmem:[%s5028_s26 + $0x80] sm:$0xff]  ;;  %v3543_v16 = vld [vmem:[%s5028_s26 + $0x88] sm:$0xff] }
  0x10   :  { %92 = vst.msk [vmem:[#allocation2 + $0x90] sm:$0xff] %vm82_vm0, %v3468_v8  ;;  %486 = vst.msk [vmem:[#allocation2 + $0x68] sm:$0xff] %vm82_vm0, %v3473_v9  ;;  %v3548_v17 = vld [vmem:[%s5028_s26 + $0x90] sm:$0xff]  ;;  %v3126_v18 = vld [vmem:[%s5029_s27 + $0x4] ss:$8 sps:$4 sm:$0xff]  }
  0x11   :  { %93 = vst.msk [vmem:[#allocation2 + $0xa0] sm:$0xff] %vm82_vm0, %v3473_v9  ;;  %487 = vst.msk [vmem:[#allocation2 + $0x78] sm:$0xff] %vm82_vm0, %v3478_v10  ;;  %v3128_v19 = vld [vmem:[%s5029_s27] ss:$8 sps:$4 sm:$0xff]   ;;  %v3129_v20 = vld [vmem:[%s5029_s27 + $0x14] ss:$8 sps:$4 sm:$0xff]   ;;  %369 = vrot.lane.b32.xlu1 %v3423_v3, %s3301_s1  ;;  %367 = vrot.lane.b32.xlu0 %v3412_v2, %s3301_s1 }
  0x12   :  { %94 = vst.msk [vmem:[#allocation2 + $0xb0] sm:$0xff] %vm82_vm0, %v3478_v10  ;;  %488 = vst.msk [vmem:[#allocation2 + $0x88] sm:$0xff] %vm82_vm0, %v3495_v11  ;;  %v3574_v21 = vld [vmem:[%s5028_s26 + $0x98] sm:$0xff]  ;;  %766 = vmatprep.subr.bf16.mxu0 %v3126_v18  ;;  %v3586_v23 = vld [vmem:[%s5028_s26 + $0xa0] sm:$0xff] }
  0x13   :  { %95 = vst.msk [vmem:[#allocation2 + $0xc0] sm:$0xff] %vm82_vm0, %v3495_v11  ;;  %489 = vst.msk [vmem:[#allocation2 + $0x98] sm:$0xff] %vm82_vm0, %v3500_v12  ;;  %v3131_v22 = vld [vmem:[%s5029_s27 + $0x10] ss:$8 sps:$4 sm:$0xff]   ;;  %767 = vmatpush1.bf16.msra.mxu0 %v3128_v19  ;;  %v509_v24 = vld [vmem:[#allocation2 + $0x8] sm:$0xff] }
  0x14   :  { %96 = vst.msk [vmem:[#allocation2 + $0xd0] sm:$0xff] %vm82_vm0, %v3500_v12  ;;  %490 = vst.msk [vmem:[#allocation2 + $0xa8] sm:$0xff] %vm82_vm0, %v3505_v13  ;;  %768 = vmatprep.subr.bf16.mxu0 %v3129_v20  ;;  %v3132_v25 = vld [vmem:[%s5029_s27 + $0x24] ss:$8 sps:$4 sm:$0xff]   ;;  %v511_v26 = vld [vmem:[#allocation2 + $0x18] sm:$0xff] }
  0x15   :  { %97 = vst.msk [vmem:[#allocation2 + $0xe0] sm:$0xff] %vm82_vm0, %v3505_v13  ;;  %491 = vst.msk [vmem:[#allocation2 + $0xb8] sm:$0xff] %vm82_vm0, %v3525_v14  ;;  %145 = vrot.lane.b32.xlu1 %v3423_v3, %s3300_s18  ;;  %143 = vrot.lane.b32.xlu0 %v3412_v2, %s3300_s18  ;;  %v3602_v27 = vld [vmem:[%s5028_s26 + $0xa8] sm:$0xff]  ;;  %v565_v28 = vpack.c.bf16 %v511_v26, %v509_v24  ;;  %v3135_v30 = vld [vmem:[%s5029_s27 + $0x34] ss:$8 sps:$4 sm:$0xff]  }
  0x16   :  { %98 = vst.msk [vmem:[#allocation2 + $0xf0] sm:$0xff] %vm82_vm0, %v3525_v14  ;;  %492 = vst.msk [vmem:[#allocation2 + $0xc8] sm:$0xff] %vm82_vm0, %v3530_v15  ;;  %v3134_v29 = vld [vmem:[%s5029_s27 + $0x20] ss:$8 sps:$4 sm:$0xff]   ;;  %v3620_v32 = vld [vmem:[%s5028_s26 + $0xb0] sm:$0xff] }
  0x17   :  { %99 = vst.msk [vmem:[#allocation2 + $0x100] sm:$0xff] %vm82_vm0, %v3530_v15  ;;  %493 = vst.msk [vmem:[#allocation2 + $0xd8] sm:$0xff] %vm82_vm0, %v3543_v16  ;;  %769 = vmatpush1.bf16.msra.mxu0 %v3131_v22  ;;  %v50_v31 = vld [vmem:[%s5028_s26] sm:$0xff]  ;;  %2848 = vmatprep.mubr.msk.bf16.mxu0 %vm82_vm0, %v565_v28  ;;  %v3137_v33 = vld [vmem:[%s5029_s27 + $0x30] ss:$8 sps:$4 sm:$0xff]  }
  0x18   :  { %100 = vst.msk [vmem:[#allocation2 + $0x110] sm:$0xff] %vm82_vm0, %v3543_v16  ;;  %494 = vst.msk [vmem:[#allocation2 + $0xe8] sm:$0xff] %vm82_vm0, %v3548_v17  ;;  %770 = vmatprep.subr.bf16.mxu0 %v3132_v25  ;;  %v3138_v34 = vld [vmem:[%s5029_s27 + $0x44] ss:$8 sps:$4 sm:$0xff]   ;;  %v3641_v35 = vld [vmem:[%s5028_s26 + $0xb8] sm:$0xff] }
  0x19   :  { %101 = vst.msk [vmem:[#allocation2 + $0x120] sm:$0xff] %vm82_vm0, %v3548_v17  ;;  %495 = vst.msk [vmem:[#allocation2 + $0xf8] sm:$0xff] %vm82_vm0, %v3574_v21  ;;  %259 = vrot.lane.b32.xlu1 %v3428_v4, %s3299_s30  ;;  %257 = vrot.lane.b32.xlu0 %v3423_v3, %s3299_s30  ;;  %v3654_v36 = vld [vmem:[%s5028_s26 + $0xc0] sm:$0xff]  ;;  %v3141_v38 = vld [vmem:[%s5029_s27 + $0x54] ss:$8 sps:$4 sm:$0xff]  }
  0x1a   :  { %102 = vst.msk [vmem:[#allocation2 + $0x130] sm:$0xff] %vm82_vm0, %v3574_v21  ;;  %496 = vst.msk [vmem:[#allocation2 + $0x108] sm:$0xff] %vm82_vm0, %v3586_v23  ;;  %v3140_v37 = vld [vmem:[%s5029_s27 + $0x40] ss:$8 sps:$4 sm:$0xff]   ;;  %v3678_v40 = vld [vmem:[%s5028_s26 + $0xd0] sm:$0xff] }
  0x1b   :  { %103 = vst.msk [vmem:[#allocation2 + $0x140] sm:$0xff] %vm82_vm0, %v3586_v23  ;;  %497 = vst.msk [vmem:[#allocation2 + $0x118] sm:$0xff] %vm82_vm0, %v3602_v27  ;;  %771 = vmatpush1.bf16.msra.mxu0 %v3134_v29  ;;  %v3669_v39 = vld [vmem:[%s5028_s26 + $0xc8] sm:$0xff]  ;;  %v3683_v41 = vld [vmem:[%s5028_s26 + $0xd8] sm:$0xff] }
  0x1c   :  { %104 = vst.msk [vmem:[#allocation2 + $0x150] sm:$0xff] %vm82_vm0, %v3602_v27  ;;  %83 = vst.msk [vmem:[#allocation2] sm:$0xff] %vm82_vm0, %v50_v31  ;;  %772 = vmatprep.subr.bf16.mxu0 %v3135_v30  ;;  %v3688_v42 = vld [vmem:[%s5028_s26 + $0xe0] sm:$0xff]  ;;  %v3143_v43 = vld [vmem:[%s5029_s27 + $0x50] ss:$8 sps:$4 sm:$0xff]  }
  0x1d   :  { %498 = vst.msk [vmem:[#allocation2 + $0x128] sm:$0xff] %vm82_vm0, %v3620_v32  ;;  %105 = vst.msk [vmem:[#allocation2 + $0x160] sm:$0xff] %vm82_vm0, %v3620_v32  ;;  %373 = vrot.lane.b32.xlu1 %v3441_v5, %s3301_s1  ;;  %371 = vrot.lane.b32.xlu0 %v3428_v4, %s3301_s1  ;;  %v3144_v44 = vld [vmem:[%s5029_s27 + $0x64] ss:$8 sps:$4 sm:$0xff]   ;;  %v3146_v45 = vld [vmem:[%s5029_s27 + $0x60] ss:$8 sps:$4 sm:$0xff]  }
  0x1e   :  { %499 = vst.msk [vmem:[#allocation2 + $0x138] sm:$0xff] %vm82_vm0, %v3641_v35  ;;  %106 = vst.msk [vmem:[#allocation2 + $0x170] sm:$0xff] %vm82_vm0, %v3641_v35  ;;  %v3147_v46 = vld [vmem:[%s5029_s27 + $0x74] ss:$8 sps:$4 sm:$0xff]   ;;  %v3723_v47 = vld [vmem:[%s5028_s26 + $0xe8] sm:$0xff] }
  0x1f   :  { %773 = vmatpush1.bf16.msra.mxu0 %v3137_v33  ;;  %500 = vst.msk [vmem:[#allocation2 + $0x148] sm:$0xff] %vm82_vm0, %v3654_v36  ;;  %107 = vst.msk [vmem:[#allocation2 + $0x180] sm:$0xff] %vm82_vm0, %v3654_v36  ;;  %v3149_v48 = vld [vmem:[%s5029_s27 + $0x70] ss:$8 sps:$4 sm:$0xff]   ;;  %v3150_v49 = vld [vmem:[%s5029_s27 + $0x84] ss:$8 sps:$4 sm:$0xff]  }
  0x20   :  { %774 = vmatprep.subr.bf16.mxu0 %v3138_v34  ;;  %501 = vst.msk [vmem:[#allocation2 + $0x158] sm:$0xff] %vm82_vm0, %v3669_v39  ;;  %108 = vst.msk [vmem:[#allocation2 + $0x190] sm:$0xff] %vm82_vm0, %v3669_v39  ;;  %v3740_v50 = vld [vmem:[%s5028_s26 + $0xf0] sm:$0xff]  ;;  %v3152_v51 = vld [vmem:[%s5029_s27 + $0x80] ss:$8 sps:$4 sm:$0xff]  }
  0x21   :  { %149 = vrot.lane.b32.xlu1 %v3441_v5, %s3300_s18  ;;  %147 = vrot.lane.b32.xlu0 %v3428_v4, %s3300_s18  ;;  %502 = vst.msk [vmem:[#allocation2 + $0x168] sm:$0xff] %vm82_vm0, %v3678_v40  ;;  %109 = vst.msk [vmem:[#allocation2 + $0x1a0] sm:$0xff] %vm82_vm0, %v3678_v40  ;;  %v3153_v52 = vld [vmem:[%s5029_s27 + $0x94] ss:$8 sps:$4 sm:$0xff]   ;;  %v3155_v53 = vld [vmem:[%s5029_s27 + $0x90] ss:$8 sps:$4 sm:$0xff]  }
  0x22   :  { %503 = vst.msk [vmem:[#allocation2 + $0x178] sm:$0xff] %vm82_vm0, %v3683_v41  ;;  %110 = vst.msk [vmem:[#allocation2 + $0x1b0] sm:$0xff] %vm82_vm0, %v3683_v41  ;;  %v513_v62 = vld [vmem:[#allocation2 + $0x28] sm:$0xff]  ;;  %v515_v63 = vld [vmem:[#allocation2 + $0x38] sm:$0xff]  ;;  %s3305_s27 = smov 124  }
  0x23   :  { %504 = vst.msk [vmem:[#allocation2 + $0x188] sm:$0xff] %vm82_vm0, %v3688_v42  ;;  %775 = vmatpush1.bf16.msra.mxu0 %v3140_v37  ;;  %505 = vst.msk [vmem:[#allocation2 + $0x198] sm:$0xff] %vm82_vm0, %v3723_v47  ;;  %v567_v4 = vpack.c.bf16 %v515_v63, %v513_v62  ;;  %v81_v20 = vld [vmem:[%s5028_s26 + $0xf8] sm:$0xff]  ;;  %v525_v33 = vld [vmem:[#allocation2 + $0x88] sm:$0xff] }
  0x24   :  { %776 = vmatprep.subr.bf16.mxu0 %v3141_v38  ;;  %506 = vst.msk [vmem:[#allocation2 + $0x1a8] sm:$0xff] %vm82_vm0, %v3740_v50  ;;  %507 = vst.msk [vmem:[#allocation2 + $0x1b8] sm:$0xff] %vm82_vm0, %v81_v20  ;;  %v523_v24 = vld [vmem:[#allocation2 + $0x78] sm:$0xff]  ;;  %v3156_v37 = vld [vmem:[%s5008_s3] sm:$0xff]  }
  0x25   :  { %263 = vrot.lane.b32.xlu1 %v3446_v6, %s3299_s30  ;;  %261 = vrot.lane.b32.xlu0 %v3441_v5, %s3299_s30  ;;  %v527_v38 = vld [vmem:[#allocation2 + $0x98] sm:$0xff] }
  0x27   :  { %777 = vmatpush1.bf16.msra.mxu0 %v3143_v43 }
  0x28   :  { %778 = vmatprep.subr.bf16.mxu0 %v3144_v44  ;;  %v573_v44 = vpack.c.bf16 %v527_v38, %v525_v33 }
  0x29   :  { %377 = vrot.lane.b32.xlu1 %v3451_v7, %s3301_s1  ;;  %375 = vrot.lane.b32.xlu0 %v3446_v6, %s3301_s1 }
  0x2b   :  { %779 = vmatpush1.bf16.msra.mxu0 %v3146_v45 }
  0x2c   :  { %780 = vmatprep.subr.bf16.mxu0 %v3147_v46  ;;  %v3158_v46 = vld [vmem:[%s5008_s3 + $0x10] sm:$0xff]  }
  0x2d   :  { %153 = vrot.lane.b32.xlu1 %v3451_v7, %s3300_s18  ;;  %151 = vrot.lane.b32.xlu0 %v3446_v6, %s3300_s18 }
  0x2f   :  { %781 = vmatpush1.bf16.msra.mxu0 %v3149_v48 }
  0x30   :  { %782 = vmatprep.subr.bf16.mxu0 %v3150_v49  ;;  %v3159_v49 = vld [vmem:[%s5008_s3 + $0x18] sm:$0xff]  }
  0x31   :  { %267 = vrot.lane.b32.xlu1 %v3468_v8, %s3299_s30  ;;  %265 = vrot.lane.b32.xlu0 %v3451_v7, %s3299_s30 }
  0x33   :  { %783 = vmatpush1.bf16.msra.mxu0 %v3152_v51 }
  0x34   :  { %784 = vmatprep.subr.bf16.mxu0 %v3153_v52  ;;  %v529_v52 = vld [vmem:[#allocation2 + $0xa8] sm:$0xff] }
  0x35   :  { %381 = vrot.lane.b32.xlu1 %v3473_v9, %s3301_s1  ;;  %379 = vrot.lane.b32.xlu0 %v3468_v8, %s3301_s1 }
  0x37   :  { %785 = vmatpush1.bf16.msra.mxu0 %v3155_v53  ;;  %v531_v53 = vld [vmem:[#allocation2 + $0xb8] sm:$0xff] }
  0x39   :  { %157 = vrot.lane.b32.xlu1 %v3473_v9, %s3300_s18  ;;  %155 = vrot.lane.b32.xlu0 %v3468_v8, %s3300_s18 }
  0x3d   :  { %271 = vrot.lane.b32.xlu1 %v3478_v10, %s3299_s30  ;;  %269 = vrot.lane.b32.xlu0 %v3473_v9, %s3299_s30 }
  0x41   :  { %385 = vrot.lane.b32.xlu1 %v3495_v11, %s3301_s1  ;;  %383 = vrot.lane.b32.xlu0 %v3478_v10, %s3301_s1 }
  0x45   :  { %161 = vrot.lane.b32.xlu1 %v3495_v11, %s3300_s18  ;;  %159 = vrot.lane.b32.xlu0 %v3478_v10, %s3300_s18  ;;  %v517_v10 = vld [vmem:[#allocation2 + $0x48] sm:$0xff] }
  0x49   :  { %275 = vrot.lane.b32.xlu1 %v3500_v12, %s3299_s30  ;;  %273 = vrot.lane.b32.xlu0 %v3495_v11, %s3299_s30  ;;  %v519_v11 = vld [vmem:[#allocation2 + $0x58] sm:$0xff] }
  0x4d   :  { %389 = vrot.lane.b32.xlu1 %v3505_v13, %s3301_s1  ;;  %387 = vrot.lane.b32.xlu0 %v3500_v12, %s3301_s1 }
  0x51   :  { %165 = vrot.lane.b32.xlu1 %v3505_v13, %s3300_s18  ;;  %163 = vrot.lane.b32.xlu0 %v3500_v12, %s3300_s18 }
  0x55   :  { %279 = vrot.lane.b32.xlu1 %v3525_v14, %s3299_s30  ;;  %277 = vrot.lane.b32.xlu0 %v3505_v13, %s3299_s30 }
  0x59   :  { %393 = vrot.lane.b32.xlu1 %v3530_v15, %s3301_s1  ;;  %391 = vrot.lane.b32.xlu0 %v3525_v14, %s3301_s1 }
  0x5d   :  { %169 = vrot.lane.b32.xlu1 %v3530_v15, %s3300_s18  ;;  %167 = vrot.lane.b32.xlu0 %v3525_v14, %s3300_s18 }
  0x61   :  { %283 = vrot.lane.b32.xlu1 %v3543_v16, %s3299_s30  ;;  %281 = vrot.lane.b32.xlu0 %v3530_v15, %s3299_s30 }
  0x65   :  { %397 = vrot.lane.b32.xlu1 %v3548_v17, %s3301_s1  ;;  %395 = vrot.lane.b32.xlu0 %v3543_v16, %s3301_s1 }
  0x69   :  { %173 = vrot.lane.b32.xlu1 %v3548_v17, %s3300_s18  ;;  %171 = vrot.lane.b32.xlu0 %v3543_v16, %s3300_s18  ;;  %v569_v16 = vpack.c.bf16 %v519_v11, %v517_v10 }
  0x6d   :  { %287 = vrot.lane.b32.xlu1 %v3574_v21, %s3299_s30  ;;  %285 = vrot.lane.b32.xlu0 %v3548_v17, %s3299_s30 }
  0x71   :  { %401 = vrot.lane.b32.xlu1 %v3586_v23, %s3301_s1  ;;  %399 = vrot.lane.b32.xlu0 %v3574_v21, %s3301_s1 }
  0x75   :  { %177 = vrot.lane.b32.xlu1 %v3586_v23, %s3300_s18  ;;  %175 = vrot.lane.b32.xlu0 %v3574_v21, %s3300_s18 }
  0x79   :  { %291 = vrot.lane.b32.xlu1 %v3602_v27, %s3299_s30  ;;  %289 = vrot.lane.b32.xlu0 %v3586_v23, %s3299_s30  ;;  %v521_v23 = vld [vmem:[#allocation2 + $0x68] sm:$0xff] }
  0x7a   :  { %v571_v29 = vpack.c.bf16 %v523_v24, %v521_v23 }
  0x7b   :  { %v254_v54 = vpop.permute.xlu1 %253  ;;  %v140_v55 = vpop.permute.xlu0 %139 }
  0x7c   :  { %224 = vst.msk [vmem:[#allocation2] sm:$0xff] %vm223_vm1, %v140_v55 }
  0x7d   :  { %405 = vrot.lane.b32.xlu1 %v3620_v32, %s3301_s1  ;;  %403 = vrot.lane.b32.xlu0 %v3602_v27, %s3301_s1  ;;  %338 = vst.msk [vmem:[#allocation2] sm:$0xff] %vm337_vm2, %v254_v54  ;;  %v3160_v54 = vld [vmem:[%s5008_s3 + $0x20] sm:$0xff]  }
  0x7f   :  { %v256_v56 = vpop.permute.xlu1 %255  ;;  %v142_v57 = vpop.permute.xlu0 %141 }
  0x80   :  { %225 = vst.msk [vmem:[#allocation2 + $0x10] sm:$0xff] %vm223_vm1, %v142_v57 }
  0x81   :  { %181 = vrot.lane.b32.xlu1 %v3620_v32, %s3300_s18  ;;  %179 = vrot.lane.b32.xlu0 %v3602_v27, %s3300_s18  ;;  %339 = vst.msk [vmem:[#allocation2 + $0x10] sm:$0xff] %vm337_vm2, %v256_v56 }
  0x83   :  { %v370_v58 = vpop.permute.xlu1 %369  ;;  %v368_v59 = vpop.permute.xlu0 %367 }
  0x84   :  { %453 = vst.msk [vmem:[#allocation2 + $0x10] sm:$0xff] %vm451_vm3, %v370_v58  ;;  %452 = vst.msk [vmem:[#allocation2] sm:$0xff] %vm451_vm3, %v368_v59  ;;  %v575_v59 = vpack.c.bf16 %v531_v53, %v529_v52  ;;  %v3165_v52 = vld [vmem:[%s5008_s3 + $0x48] sm:$0xff]   ;;  %v3166_v53 = vld [vmem:[%s5008_s3 + $0x50] ss:$0 sps:$4 sm:$0xff]  }
  0x85   :  { %295 = vrot.lane.b32.xlu1 %v3641_v35, %s3299_s30  ;;  %293 = vrot.lane.b32.xlu0 %v3620_v32, %s3299_s30 }
  0x87   :  { %v146_v60 = vpop.permute.xlu1 %145  ;;  %v144_v61 = vpop.permute.xlu0 %143 }
  0x88   :  { %227 = vst.msk [vmem:[#allocation2 + $0x30] sm:$0xff] %vm223_vm1, %v146_v60  ;;  %226 = vst.msk [vmem:[#allocation2 + $0x20] sm:$0xff] %vm223_vm1, %v144_v61 }
  0x89   :  { %409 = vrot.lane.b32.xlu1 %v3654_v36, %s3301_s1  ;;  %407 = vrot.lane.b32.xlu0 %v3641_v35, %s3301_s1 }
  0x8b   :  { %v260_v0 = vpop.permute.xlu1 %259  ;;  %v258_v1 = vpop.permute.xlu0 %257  ;;  %v508_v2 = vld [vmem:[#allocation2] sm:$0xff]  ;;  %v510_v3 = vld [vmem:[#allocation2 + $0x10] sm:$0xff] }
  0x8c   :  { %341 = vst.msk [vmem:[#allocation2 + $0x30] sm:$0xff] %vm337_vm2, %v260_v0  ;;  %340 = vst.msk [vmem:[#allocation2 + $0x20] sm:$0xff] %vm337_vm2, %v258_v1  ;;  %v564_v5 = vpack.c.bf16 %v510_v3, %v508_v2  ;;  %v533_v1 = vld [vmem:[#allocation2 + $0xc8] sm:$0xff]  ;;  %v535_v2 = vld [vmem:[#allocation2 + $0xd8] sm:$0xff] }
  0x8d   :  { %185 = vrot.lane.b32.xlu1 %v3654_v36, %s3300_s18  ;;  %183 = vrot.lane.b32.xlu0 %v3641_v35, %s3300_s18 }
  0x8e   :  { %799 = vmatmul.mubr.bf16.vlgmr.msra.gmra.mrb[0].mxu0 %v564_v5 }
  0x8f   :  { %v374_v6 = vpop.permute.xlu1 %373  ;;  %v372_v7 = vpop.permute.xlu0 %371  ;;  %2849 = vmatprep.mubr.msk.bf16.mxu0 %vm82_vm0, %v567_v4 }
  0x90   :  { %455 = vst.msk [vmem:[#allocation2 + $0x30] sm:$0xff] %vm451_vm3, %v374_v6  ;;  %454 = vst.msk [vmem:[#allocation2 + $0x20] sm:$0xff] %vm451_vm3, %v372_v7  ;;  %v577_v7 = vpack.c.bf16 %v535_v2, %v533_v1 }
  0x91   :  { %299 = vrot.lane.b32.xlu1 %v3669_v39, %s3299_s30  ;;  %297 = vrot.lane.b32.xlu0 %v3654_v36, %s3299_s30  ;;  %v3302_v36 = vmov 0  }
  0x92   :  { %1147 = vmatprep.subr.bf16.mxu1 %v3302_v36  ;;  %2173 = vmatprep.subr.bf16.mxu0 %v3302_v36 }
  0x93   :  { %v150_v8 = vpop.permute.xlu1 %149  ;;  %v148_v9 = vpop.permute.xlu0 %147  ;;  %1148 = vmatpush1.bf16.msra.mxu1 %v3156_v37  ;;  %v3162_v37 = vld [vmem:[%s5008_s3 + $0x30] sm:$0xff]  }
  0x94   :  { %229 = vst.msk [vmem:[#allocation2 + $0x50] sm:$0xff] %vm223_vm1, %v150_v8  ;;  %228 = vst.msk [vmem:[#allocation2 + $0x40] sm:$0xff] %vm223_vm1, %v148_v9  ;;  %1149 = vmatprep.subr.bf16.mxu1 %v3302_v36 }
  0x95   :  { %413 = vrot.lane.b32.xlu1 %v3678_v40, %s3301_s1  ;;  %411 = vrot.lane.b32.xlu0 %v3669_v39, %s3301_s1 }
  0x97   :  { %v264_v12 = vpop.permute.xlu1 %263  ;;  %v262_v13 = vpop.permute.xlu0 %261  ;;  %v512_v14 = vld [vmem:[#allocation2 + $0x20] sm:$0xff]  ;;  %v514_v15 = vld [vmem:[#allocation2 + $0x30] sm:$0xff] }
  0x98   :  { %343 = vst.msk [vmem:[#allocation2 + $0x50] sm:$0xff] %vm337_vm2, %v264_v12  ;;  %342 = vst.msk [vmem:[#allocation2 + $0x40] sm:$0xff] %vm337_vm2, %v262_v13  ;;  %v566_v17 = vpack.c.bf16 %v514_v15, %v512_v14  ;;  %v537_v13 = vld [vmem:[#allocation2 + $0xe8] sm:$0xff]  ;;  %v539_v14 = vld [vmem:[#allocation2 + $0xf8] sm:$0xff] }
  0x99   :  { %189 = vrot.lane.b32.xlu1 %v3678_v40, %s3300_s18  ;;  %187 = vrot.lane.b32.xlu0 %v3669_v39, %s3300_s18  ;;  %v3157_v39 = vld [vmem:[%s5008_s3 + $0x8] sm:$0xff]  }
  0x9a   :  { %809 = vmatmul.mubr.bf16.gmra.mrb[4].mxu0 %v566_v17  ;;  %1150 = vmatpush1.bf16.msra.mxu1 %v3157_v39 }
  0x9b   :  { %v378_v18 = vpop.permute.xlu1 %377  ;;  %v376_v19 = vpop.permute.xlu0 %375  ;;  %2850 = vmatprep.mubr.msk.bf16.mxu0 %vm82_vm0, %v569_v16  ;;  %1151 = vmatprep.subr.bf16.mxu1 %v3302_v36 }
  0x9c   :  { %457 = vst.msk [vmem:[#allocation2 + $0x50] sm:$0xff] %vm451_vm3, %v378_v18  ;;  %456 = vst.msk [vmem:[#allocation2 + $0x40] sm:$0xff] %vm451_vm3, %v376_v19  ;;  %v579_v19 = vpack.c.bf16 %v539_v14, %v537_v13 }
  0x9d   :  { %303 = vrot.lane.b32.xlu1 %v3683_v41, %s3299_s30  ;;  %301 = vrot.lane.b32.xlu0 %v3678_v40, %s3299_s30 }
  0x9e   :  { %1152 = vmatpush1.bf16.msra.mxu1 %v3158_v46 }
  0x9f   :  { %v154_v21 = vpop.permute.xlu1 %153  ;;  %v152_v22 = vpop.permute.xlu0 %151  ;;  %1153 = vmatprep.subr.bf16.mxu1 %v3302_v36 }
  0xa0   :  { %231 = vst.msk [vmem:[#allocation2 + $0x70] sm:$0xff] %vm223_vm1, %v154_v21  ;;  %230 = vst.msk [vmem:[#allocation2 + $0x60] sm:$0xff] %vm223_vm1, %v152_v22 }
  0xa1   :  { %417 = vrot.lane.b32.xlu1 %v3688_v42, %s3301_s1  ;;  %415 = vrot.lane.b32.xlu0 %v3683_v41, %s3301_s1 }
  0xa2   :  { %1154 = vmatpush1.bf16.msra.mxu1 %v3159_v49 }
  0xa3   :  { %v268_v25 = vpop.permute.xlu1 %267  ;;  %v266_v26 = vpop.permute.xlu0 %265  ;;  %v516_v27 = vld [vmem:[#allocation2 + $0x40] sm:$0xff]  ;;  %v518_v28 = vld [vmem:[#allocation2 + $0x50] sm:$0xff]  ;;  %1155 = vmatprep.subr.bf16.mxu1 %v3302_v36 }
  0xa4   :  { %345 = vst.msk [vmem:[#allocation2 + $0x70] sm:$0xff] %vm337_vm2, %v268_v25  ;;  %344 = vst.msk [vmem:[#allocation2 + $0x60] sm:$0xff] %vm337_vm2, %v266_v26  ;;  %v568_v30 = vpack.c.bf16 %v518_v28, %v516_v27  ;;  %v541_v25 = vld [vmem:[#allocation2 + $0x108] sm:$0xff]  ;;  %v543_v26 = vld [vmem:[#allocation2 + $0x118] sm:$0xff] }
  0xa5   :  { %193 = vrot.lane.b32.xlu1 %v3688_v42, %s3300_s18  ;;  %191 = vrot.lane.b32.xlu0 %v3683_v41, %s3300_s18 }
  0xa6   :  { %819 = vmatmul.mubr.bf16.gmra.mrb[8].mxu0 %v568_v30  ;;  %1156 = vmatpush1.bf16.msra.mxu1 %v3160_v54 }
  0xa7   :  { %v382_v31 = vpop.permute.xlu1 %381  ;;  %v380_v32 = vpop.permute.xlu0 %379  ;;  %2851 = vmatprep.mubr.msk.bf16.mxu0 %vm82_vm0, %v571_v29  ;;  %1157 = vmatprep.subr.bf16.mxu1 %v3302_v36 }
  0xa8   :  { %459 = vst.msk [vmem:[#allocation2 + $0x70] sm:$0xff] %vm451_vm3, %v382_v31  ;;  %458 = vst.msk [vmem:[#allocation2 + $0x60] sm:$0xff] %vm451_vm3, %v380_v32  ;;  %v581_v31 = vpack.c.bf16 %v543_v26, %v541_v25  ;;  %v3161_v32 = vld [vmem:[%s5008_s3 + $0x28] sm:$0xff]  }
  0xa9   :  { %307 = vrot.lane.b32.xlu1 %v3723_v47, %s3299_s30  ;;  %305 = vrot.lane.b32.xlu0 %v3688_v42, %s3299_s30 }
  0xaa   :  { %1158 = vmatpush1.bf16.msra.mxu1 %v3161_v32 }
  0xab   :  { %v158_v34 = vpop.permute.xlu1 %157  ;;  %v156_v35 = vpop.permute.xlu0 %155  ;;  %1159 = vmatprep.subr.bf16.mxu1 %v3302_v36 }
  0xac   :  { %233 = vst.msk [vmem:[#allocation2 + $0x90] sm:$0xff] %vm223_vm1, %v158_v34  ;;  %232 = vst.msk [vmem:[#allocation2 + $0x80] sm:$0xff] %vm223_vm1, %v156_v35 }
  0xad   :  { %421 = vrot.lane.b32.xlu1 %v3740_v50, %s3301_s1  ;;  %419 = vrot.lane.b32.xlu0 %v3723_v47, %s3301_s1 }
  0xae   :  { %1160 = vmatpush1.bf16.msra.mxu1 %v3162_v37 }
  0xaf   :  { %v272_v40 = vpop.permute.xlu1 %271  ;;  %v270_v41 = vpop.permute.xlu0 %269  ;;  %v520_v42 = vld [vmem:[#allocation2 + $0x60] sm:$0xff]  ;;  %v522_v43 = vld [vmem:[#allocation2 + $0x70] sm:$0xff]  ;;  %1161 = vmatprep.subr.bf16.mxu1 %v3302_v36 }
  0xb0   :  { %347 = vst.msk [vmem:[#allocation2 + $0x90] sm:$0xff] %vm337_vm2, %v272_v40  ;;  %346 = vst.msk [vmem:[#allocation2 + $0x80] sm:$0xff] %vm337_vm2, %v270_v41  ;;  %v570_v45 = vpack.c.bf16 %v522_v43, %v520_v42  ;;  %v3163_v40 = vld [vmem:[%s5008_s3 + $0x38] sm:$0xff]   ;;  %v545_v41 = vld [vmem:[#allocation2 + $0x128] sm:$0xff] }
  0xb1   :  { %v547_v42 = vld [vmem:[#allocation2 + $0x138] sm:$0xff] }
  0xb2   :  { %829 = vmatmul.mubr.bf16.gmra.mrb[12].mxu0 %v570_v45  ;;  %1162 = vmatpush1.bf16.msra.mxu1 %v3163_v40 }
  0xb3   :  { %v386_v47 = vpop.permute.xlu1 %385  ;;  %v384_v48 = vpop.permute.xlu0 %383  ;;  %2852 = vmatprep.mubr.msk.bf16.mxu0 %vm82_vm0, %v573_v44  ;;  %1163 = vmatprep.subr.bf16.mxu1 %v3302_v36 }
  0xb4   :  { %461 = vst.msk [vmem:[#allocation2 + $0x90] sm:$0xff] %vm451_vm3, %v386_v47  ;;  %460 = vst.msk [vmem:[#allocation2 + $0x80] sm:$0xff] %vm451_vm3, %v384_v48  ;;  %v583_v47 = vpack.c.bf16 %v547_v42, %v545_v41  ;;  %v3164_v48 = vld [vmem:[%s5008_s3 + $0x40] sm:$0xff]   ;;  %s3306_s3 = smov 80  }
  0xb6   :  { %1164 = vmatpush1.bf16.msra.mxu1 %v3164_v48 }
  0xb7   :  { %v162_v50 = vpop.permute.xlu1 %161  ;;  %v160_v51 = vpop.permute.xlu0 %159  ;;  %1165 = vmatprep.subr.bf16.mxu1 %v3302_v36 }
  0xb8   :  { %235 = vst.msk [vmem:[#allocation2 + $0xb0] sm:$0xff] %vm223_vm1, %v162_v50  ;;  %234 = vst.msk [vmem:[#allocation2 + $0xa0] sm:$0xff] %vm223_vm1, %v160_v51 }
  0xba   :  { %1166 = vmatpush1.bf16.msra.mxu1 %v3165_v52 }
  0xbb   :  { %v276_v55 = vpop.permute.xlu1 %275  ;;  %v274_v56 = vpop.permute.xlu0 %273  ;;  %v524_v57 = vld [vmem:[#allocation2 + $0x80] sm:$0xff]  ;;  %v526_v58 = vld [vmem:[#allocation2 + $0x90] sm:$0xff]  ;;  %1167 = vmatprep.subr.bf16.mxu1 %v3302_v36 }
  0xbc   :  { %349 = vst.msk [vmem:[#allocation2 + $0xb0] sm:$0xff] %vm337_vm2, %v276_v55  ;;  %348 = vst.msk [vmem:[#allocation2 + $0xa0] sm:$0xff] %vm337_vm2, %v274_v56  ;;  %v572_v60 = vpack.c.bf16 %v526_v58, %v524_v57  ;;  %v549_v56 = vld [vmem:[#allocation2 + $0x148] sm:$0xff]  ;;  %v551_v57 = vld [vmem:[#allocation2 + $0x158] sm:$0xff]  ;;  %v1145_v58 = vsel %vm1143_vm4, %v3166_v53, 0 }
  0xbe   :  { %839 = vmatmul.mubr.bf16.gmra.mrb[16].mxu0 %v572_v60  ;;  %1168 = vmatpush1.bf16.msra.mxu1 %v1145_v58 }
  0xbf   :  { %v390_v61 = vpop.permute.xlu1 %389  ;;  %v388_v62 = vpop.permute.xlu0 %387  ;;  %2853 = vmatprep.mubr.msk.bf16.mxu0 %vm82_vm0, %v575_v59 }
  0xc0   :  { %463 = vst.msk [vmem:[#allocation2 + $0xb0] sm:$0xff] %vm451_vm3, %v390_v61  ;;  %462 = vst.msk [vmem:[#allocation2 + $0xa0] sm:$0xff] %vm451_vm3, %v388_v62 }
  0xc3   :  { %v166_v63 = vpop.permute.xlu1 %165  ;;  %v164_v0 = vpop.permute.xlu0 %163 }
  0xc4   :  { %237 = vst.msk [vmem:[#allocation2 + $0xd0] sm:$0xff] %vm223_vm1, %v166_v63  ;;  %236 = vst.msk [vmem:[#allocation2 + $0xc0] sm:$0xff] %vm223_vm1, %v164_v0  ;;  %v585_v63 = vpack.c.bf16 %v551_v57, %v549_v56 }
  0xc7   :  { %v280_v3 = vpop.permute.xlu1 %279  ;;  %v278_v4 = vpop.permute.xlu0 %277  ;;  %v528_v5 = vld [vmem:[#allocation2 + $0xa0] sm:$0xff]  ;;  %v530_v6 = vld [vmem:[#allocation2 + $0xb0] sm:$0xff] }
  0xc8   :  { %351 = vst.msk [vmem:[#allocation2 + $0xd0] sm:$0xff] %vm337_vm2, %v280_v3  ;;  %350 = vst.msk [vmem:[#allocation2 + $0xc0] sm:$0xff] %vm337_vm2, %v278_v4  ;;  %v574_v8 = vpack.c.bf16 %v530_v6, %v528_v5  ;;  %v553_v5 = vld [vmem:[#allocation2 + $0x168] sm:$0xff]  ;;  %v555_v6 = vld [vmem:[#allocation2 + $0x178] sm:$0xff] }
  0xca   :  { %849 = vmatmul.mubr.bf16.gmra.mrb[20].mxu0 %v574_v8 }
  0xcb   :  { %v394_v9 = vpop.permute.xlu1 %393  ;;  %v392_v10 = vpop.permute.xlu0 %391  ;;  %2854 = vmatprep.mubr.msk.bf16.mxu0 %vm82_vm0, %v577_v7 }
  0xcc   :  { %465 = vst.msk [vmem:[#allocation2 + $0xd0] sm:$0xff] %vm451_vm3, %v394_v9  ;;  %464 = vst.msk [vmem:[#allocation2 + $0xc0] sm:$0xff] %vm451_vm3, %v392_v10 }
  0xcf   :  { %v170_v11 = vpop.permute.xlu1 %169  ;;  %v168_v12 = vpop.permute.xlu0 %167 }
  0xd0   :  { %239 = vst.msk [vmem:[#allocation2 + $0xf0] sm:$0xff] %vm223_vm1, %v170_v11  ;;  %238 = vst.msk [vmem:[#allocation2 + $0xe0] sm:$0xff] %vm223_vm1, %v168_v12  ;;  %v587_v11 = vpack.c.bf16 %v555_v6, %v553_v5 }
  0xd3   :  { %v284_v15 = vpop.permute.xlu1 %283  ;;  %v282_v16 = vpop.permute.xlu0 %281  ;;  %v532_v17 = vld [vmem:[#allocation2 + $0xc0] sm:$0xff]  ;;  %v534_v18 = vld [vmem:[#allocation2 + $0xd0] sm:$0xff] }
  0xd4   :  { %353 = vst.msk [vmem:[#allocation2 + $0xf0] sm:$0xff] %vm337_vm2, %v284_v15  ;;  %352 = vst.msk [vmem:[#allocation2 + $0xe0] sm:$0xff] %vm337_vm2, %v282_v16  ;;  %v576_v20 = vpack.c.bf16 %v534_v18, %v532_v17  ;;  %v557_v17 = vld [vmem:[#allocation2 + $0x188] sm:$0xff]  ;;  %v559_v18 = vld [vmem:[#allocation2 + $0x198] sm:$0xff] }
  0xd6   :  { %859 = vmatmul.mubr.bf16.gmra.mrb[24].mxu0 %v576_v20 }
  0xd7   :  { %v398_v21 = vpop.permute.xlu1 %397  ;;  %v396_v22 = vpop.permute.xlu0 %395  ;;  %2855 = vmatprep.mubr.msk.bf16.mxu0 %vm82_vm0, %v579_v19 }
  0xd8   :  { %467 = vst.msk [vmem:[#allocation2 + $0xf0] sm:$0xff] %vm451_vm3, %v398_v21  ;;  %466 = vst.msk [vmem:[#allocation2 + $0xe0] sm:$0xff] %vm451_vm3, %v396_v22 }
  0xdb   :  { %v174_v23 = vpop.permute.xlu1 %173  ;;  %v172_v24 = vpop.permute.xlu0 %171 }
  0xdc   :  { %241 = vst.msk [vmem:[#allocation2 + $0x110] sm:$0xff] %vm223_vm1, %v174_v23  ;;  %240 = vst.msk [vmem:[#allocation2 + $0x100] sm:$0xff] %vm223_vm1, %v172_v24  ;;  %v589_v23 = vpack.c.bf16 %v559_v18, %v557_v17 }
  0xdf   :  { %v288_v27 = vpop.permute.xlu1 %287  ;;  %v286_v28 = vpop.permute.xlu0 %285  ;;  %v536_v29 = vld [vmem:[#allocation2 + $0xe0] sm:$0xff]  ;;  %v538_v30 = vld [vmem:[#allocation2 + $0xf0] sm:$0xff] }
  0xe0   :  { %355 = vst.msk [vmem:[#allocation2 + $0x110] sm:$0xff] %vm337_vm2, %v288_v27  ;;  %354 = vst.msk [vmem:[#allocation2 + $0x100] sm:$0xff] %vm337_vm2, %v286_v28  ;;  %v578_v33 = vpack.c.bf16 %v538_v30, %v536_v29  ;;  %v561_v29 = vld [vmem:[#allocation2 + $0x1a8] sm:$0xff]  ;;  %v563_v30 = vld [vmem:[#allocation2 + $0x1b8] sm:$0xff] }
  0xe2   :  { %869 = vmatmul.mubr.bf16.gmra.mrb[28].mxu0 %v578_v33 }
  0xe3   :  { %v402_v34 = vpop.permute.xlu1 %401  ;;  %v400_v35 = vpop.permute.xlu0 %399  ;;  %2856 = vmatprep.mubr.msk.bf16.mxu0 %vm82_vm0, %v581_v31 }
  0xe4   :  { %469 = vst.msk [vmem:[#allocation2 + $0x110] sm:$0xff] %vm451_vm3, %v402_v34  ;;  %468 = vst.msk [vmem:[#allocation2 + $0x100] sm:$0xff] %vm451_vm3, %v400_v35  ;;  %v591_v35 = vpack.c.bf16 %v563_v30, %v561_v29 }
  0xe7   :  { %v178_v38 = vpop.permute.xlu1 %177  ;;  %v176_v39 = vpop.permute.xlu0 %175 }
  0xe8   :  { %243 = vst.msk [vmem:[#allocation2 + $0x130] sm:$0xff] %vm223_vm1, %v178_v38  ;;  %242 = vst.msk [vmem:[#allocation2 + $0x120] sm:$0xff] %vm223_vm1, %v176_v39 }
  0xeb   :  { %v292_v43 = vpop.permute.xlu1 %291  ;;  %v290_v44 = vpop.permute.xlu0 %289  ;;  %v540_v45 = vld [vmem:[#allocation2 + $0x100] sm:$0xff]  ;;  %v542_v46 = vld [vmem:[#allocation2 + $0x110] sm:$0xff] }
  0xec   :  { %357 = vst.msk [vmem:[#allocation2 + $0x130] sm:$0xff] %vm337_vm2, %v292_v43  ;;  %356 = vst.msk [vmem:[#allocation2 + $0x120] sm:$0xff] %vm337_vm2, %v290_v44  ;;  %v580_v49 = vpack.c.bf16 %v542_v46, %v540_v45  ;;  %v614_v43 = vlaneseq  ;;  %v612_v46 = vld [vmem:[%s5009_s2] sm:$0x3] }
  0xee   :  { %879 = vmatmul.mubr.bf16.gmra.mrb[32].mxu0 %v580_v49  ;;  %v4032_v44 = vshrl.u32 %v614_v43, 7 }
  0xef   :  { %v406_v50 = vpop.permute.xlu1 %405  ;;  %v404_v51 = vpop.permute.xlu0 %403  ;;  %2857 = vmatprep.mubr.msk.bf16.mxu0 %vm82_vm0, %v583_v47 }
  0xf0   :  { %471 = vst.msk [vmem:[#allocation2 + $0x130] sm:$0xff] %vm451_vm3, %v406_v50  ;;  %470 = vst.msk [vmem:[#allocation2 + $0x120] sm:$0xff] %vm451_vm3, %v404_v51  ;;  %v616_v45 = vsub.s32 0, %v4032_v44  ;;  %v620_v47 = vsub.s32 1, %v4032_v44 }
  0xf2   :  { %v4041_v48 = vrot.slane %v612_v46, %v616_v45  ;;  %v4045_v49 = vrot.slane %v612_v46, %v620_v47 }
  0xf3   :  { %v182_v54 = vpop.permute.xlu1 %181  ;;  %v180_v55 = vpop.permute.xlu0 %179 }
  0xf4   :  { %245 = vst.msk [vmem:[#allocation2 + $0x150] sm:$0xff] %vm223_vm1, %v182_v54  ;;  %244 = vst.msk [vmem:[#allocation2 + $0x140] sm:$0xff] %vm223_vm1, %v180_v55 }
  0xf7   :  { %v296_v59 = vpop.permute.xlu1 %295  ;;  %v294_v60 = vpop.permute.xlu0 %293  ;;  %v544_v61 = vld [vmem:[#allocation2 + $0x120] sm:$0xff]  ;;  %v546_v62 = vld [vmem:[#allocation2 + $0x130] sm:$0xff] }
  0xf8   :  { %359 = vst.msk [vmem:[#allocation2 + $0x150] sm:$0xff] %vm337_vm2, %v296_v59  ;;  %358 = vst.msk [vmem:[#allocation2 + $0x140] sm:$0xff] %vm337_vm2, %v294_v60  ;;  %v582_v0 = vpack.c.bf16 %v546_v62, %v544_v61 }
  0xfa   :  { %889 = vmatmul.mubr.bf16.gmra.mrb[36].mxu0 %v582_v0 }
  0xfb   :  { %v410_v1 = vpop.permute.xlu1 %409  ;;  %v408_v2 = vpop.permute.xlu0 %407  ;;  %2858 = vmatprep.mubr.msk.bf16.mxu0 %vm82_vm0, %v585_v63 }
  0xfc   :  { %473 = vst.msk [vmem:[#allocation2 + $0x150] sm:$0xff] %vm451_vm3, %v410_v1  ;;  %472 = vst.msk [vmem:[#allocation2 + $0x140] sm:$0xff] %vm451_vm3, %v408_v2 }
  0xff   :  { %v186_v3 = vpop.permute.xlu1 %185  ;;  %v184_v4 = vpop.permute.xlu0 %183 }
 0x100   :  { %247 = vst.msk [vmem:[#allocation2 + $0x170] sm:$0xff] %vm223_vm1, %v186_v3  ;;  %246 = vst.msk [vmem:[#allocation2 + $0x160] sm:$0xff] %vm223_vm1, %v184_v4 }
 0x103   :  { %v300_v7 = vpop.permute.xlu1 %299  ;;  %v298_v8 = vpop.permute.xlu0 %297  ;;  %v548_v9 = vld [vmem:[#allocation2 + $0x140] sm:$0xff]  ;;  %v550_v10 = vld [vmem:[#allocation2 + $0x150] sm:$0xff] }
 0x104   :  { %361 = vst.msk [vmem:[#allocation2 + $0x170] sm:$0xff] %vm337_vm2, %v300_v7  ;;  %360 = vst.msk [vmem:[#allocation2 + $0x160] sm:$0xff] %vm337_vm2, %v298_v8  ;;  %v584_v12 = vpack.c.bf16 %v550_v10, %v548_v9 }
 0x106   :  { %899 = vmatmul.mubr.bf16.gmra.mrb[40].mxu0 %v584_v12 }
 0x107   :  { %v414_v13 = vpop.permute.xlu1 %413  ;;  %v412_v14 = vpop.permute.xlu0 %411  ;;  %2859 = vmatprep.mubr.msk.bf16.mxu0 %vm82_vm0, %v587_v11 }
 0x108   :  { %475 = vst.msk [vmem:[#allocation2 + $0x170] sm:$0xff] %vm451_vm3, %v414_v13  ;;  %474 = vst.msk [vmem:[#allocation2 + $0x160] sm:$0xff] %vm451_vm3, %v412_v14 }
 0x10b   :  { %v190_v15 = vpop.permute.xlu1 %189  ;;  %v188_v16 = vpop.permute.xlu0 %187 }
 0x10c   :  { %249 = vst.msk [vmem:[#allocation2 + $0x190] sm:$0xff] %vm223_vm1, %v190_v15  ;;  %248 = vst.msk [vmem:[#allocation2 + $0x180] sm:$0xff] %vm223_vm1, %v188_v16 }
 0x10f   :  { %v304_v19 = vpop.permute.xlu1 %303  ;;  %v302_v20 = vpop.permute.xlu0 %301  ;;  %v552_v21 = vld [vmem:[#allocation2 + $0x160] sm:$0xff]  ;;  %v554_v22 = vld [vmem:[#allocation2 + $0x170] sm:$0xff] }
 0x110   :  { %363 = vst.msk [vmem:[#allocation2 + $0x190] sm:$0xff] %vm337_vm2, %v304_v19  ;;  %362 = vst.msk [vmem:[#allocation2 + $0x180] sm:$0xff] %vm337_vm2, %v302_v20  ;;  %v586_v24 = vpack.c.bf16 %v554_v22, %v552_v21 }
 0x112   :  { %909 = vmatmul.mubr.bf16.gmra.mrb[44].mxu0 %v586_v24 }
 0x113   :  { %v418_v25 = vpop.permute.xlu1 %417  ;;  %v416_v26 = vpop.permute.xlu0 %415  ;;  %2860 = vmatprep.mubr.msk.bf16.mxu0 %vm82_vm0, %v589_v23 }
 0x114   :  { %477 = vst.msk [vmem:[#allocation2 + $0x190] sm:$0xff] %vm451_vm3, %v418_v25  ;;  %476 = vst.msk [vmem:[#allocation2 + $0x180] sm:$0xff] %vm451_vm3, %v416_v26 }
 0x117   :  { %v194_v27 = vpop.permute.xlu1 %193  ;;  %v192_v28 = vpop.permute.xlu0 %191 }
 0x118   :  { %251 = vst.msk [vmem:[#allocation2 + $0x1b0] sm:$0xff] %vm223_vm1, %v194_v27  ;;  %250 = vst.msk [vmem:[#allocation2 + $0x1a0] sm:$0xff] %vm223_vm1, %v192_v28  ;;  %vm2253_vm1 = vcmask 523264  }
 0x11b   :  { %v308_v31 = vpop.permute.xlu1 %307  ;;  %v306_v32 = vpop.permute.xlu0 %305  ;;  %v556_v33 = vld [vmem:[#allocation2 + $0x180] sm:$0xff]  ;;  %v558_v34 = vld [vmem:[#allocation2 + $0x190] sm:$0xff] }
 0x11c   :  { %365 = vst.msk [vmem:[#allocation2 + $0x1b0] sm:$0xff] %vm337_vm2, %v308_v31  ;;  %364 = vst.msk [vmem:[#allocation2 + $0x1a0] sm:$0xff] %vm337_vm2, %v306_v32  ;;  %v588_v37 = vpack.c.bf16 %v558_v34, %v556_v33  ;;  %vm2259_vm2 = vcmask 1048064  }
 0x11e   :  { %919 = vmatmul.mubr.bf16.gmra.mrb[48].mxu0 %v588_v37 }
 0x11f   :  { %v422_v38 = vpop.permute.xlu1 %421  ;;  %v420_v39 = vpop.permute.xlu0 %419  ;;  %2861 = vmatprep.mubr.msk.bf16.mxu0 %vm82_vm0, %v591_v35 }
 0x120   :  { %479 = vst.msk [vmem:[#allocation2 + $0x1b0] sm:$0xff] %vm451_vm3, %v422_v38  ;;  %478 = vst.msk [vmem:[#allocation2 + $0x1a0] sm:$0xff] %vm451_vm3, %v420_v39  ;;  %vm2261_vm3 = vcmask 130048  }
 0x127   :  { %v560_v40 = vld [vmem:[#allocation2 + $0x1a0] sm:$0xff]  ;;  %v562_v41 = vld [vmem:[#allocation2 + $0x1b0] sm:$0xff] }
 0x128   :  { %v590_v42 = vpack.c.bf16 %v562_v41, %v560_v40 }
 0x12a   :  { %929 = vmatmul.mubr.bf16.gmra.mrb[52].mxu0 %v590_v42 }
 0x161   :  { %v800_v50 = vpop.f32.mrb[0].mxu0 }
 0x162   :  { %v801_v51 = vadd.f32 %v800_v50, %v4041_v48  ;;  %v802_v52 = vpop.f32.mrb[1].mxu0 }
 0x163   :  { %v803_v53 = vadd.f32 %v802_v52, %v4045_v49  ;;  %v804_v54 = vpop.f32.mrb[2].mxu0 }
 0x164   :  { %939 = vst [vmem:[%s5010_s13] sm:$0xff] %v801_v51  ;;  %v805_v55 = vadd.f32 %v804_v54, %v4041_v48  ;;  %v806_v56 = vpop.f32.mrb[3].mxu0 }
 0x165   :  { %941 = vst.msk [vmem:[%s5010_s13 + $0x8] sm:$0xff] %vm940_vm5, %v803_v53  ;;  %v807_v57 = vadd.f32 %v806_v56, %v4045_v49 }
 0x166   :  { %942 = vst [vmem:[%s5010_s13 + $0x10] sm:$0xff] %v805_v55  ;;  %v996_v58 = vadd.f32 %v805_v55, %v801_v51 }
 0x167   :  { %943 = vst.msk [vmem:[%s5010_s13 + $0x18] sm:$0xff] %vm940_vm5, %v807_v57  ;;  %v997_v59 = vadd.f32 %v807_v57, %v803_v53 }
 0x16d   :  { %v810_v60 = vpop.f32.mrb[4].mxu0 }
 0x16e   :  { %v811_v61 = vadd.f32 %v810_v60, %v4041_v48  ;;  %v812_v62 = vpop.f32.mrb[5].mxu0 }
 0x16f   :  { %v813_v63 = vadd.f32 %v812_v62, %v4045_v49  ;;  %v814_v0 = vpop.f32.mrb[6].mxu0 }
 0x170   :  { %944 = vst [vmem:[%s5010_s13 + $0x20] sm:$0xff] %v811_v61  ;;  %v815_v1 = vadd.f32 %v814_v0, %v4041_v48  ;;  %v816_v2 = vpop.f32.mrb[7].mxu0 }
 0x171   :  { %945 = vst.msk [vmem:[%s5010_s13 + $0x28] sm:$0xff] %vm940_vm5, %v813_v63  ;;  %v817_v3 = vadd.f32 %v816_v2, %v4045_v49 }
 0x172   :  { %946 = vst [vmem:[%s5010_s13 + $0x30] sm:$0xff] %v815_v1  ;;  %v998_v4 = vadd.f32 %v815_v1, %v811_v61 }
 0x173   :  { %947 = vst.msk [vmem:[%s5010_s13 + $0x38] sm:$0xff] %vm940_vm5, %v817_v3  ;;  %v999_v5 = vadd.f32 %v817_v3, %v813_v63 }
 0x174   :  { %v1024_v6 = vpack.c.bf16 %v998_v4, %v996_v58 }
 0x175   :  { %v1025_v7 = vpack.c.bf16 %v999_v5, %v997_v59 }
 0x177   :  { %2873 = vmatprep.mubr.msk.bf16.mxu1 %vm940_vm5, %v1025_v7 }
 0x178   :  { %1180 = vmatmul.mubr.bf16.vlgmr.msra.gmra.mrb[0].mxu1 %v1024_v6 }
 0x179   :  { %v820_v8 = vpop.f32.mrb[8].mxu0 }
 0x17a   :  { %v821_v9 = vadd.f32 %v820_v8, %v4041_v48  ;;  %v822_v10 = vpop.f32.mrb[9].mxu0 }
 0x17b   :  { %v823_v11 = vadd.f32 %v822_v10, %v4045_v49  ;;  %v824_v12 = vpop.f32.mrb[10].mxu0 }
 0x17c   :  { %948 = vst [vmem:[%s5010_s13 + $0x40] sm:$0xff] %v821_v9  ;;  %v825_v13 = vadd.f32 %v824_v12, %v4041_v48  ;;  %v826_v14 = vpop.f32.mrb[11].mxu0 }
 0x17d   :  { %949 = vst.msk [vmem:[%s5010_s13 + $0x48] sm:$0xff] %vm940_vm5, %v823_v11  ;;  %v827_v15 = vadd.f32 %v826_v14, %v4045_v49 }
 0x17e   :  { %950 = vst [vmem:[%s5010_s13 + $0x50] sm:$0xff] %v825_v13  ;;  %v1000_v16 = vadd.f32 %v825_v13, %v821_v9 }
 0x17f   :  { %951 = vst.msk [vmem:[%s5010_s13 + $0x58] sm:$0xff] %vm940_vm5, %v827_v15  ;;  %v1001_v17 = vadd.f32 %v827_v15, %v823_v11 }
 0x185   :  { %v830_v18 = vpop.f32.mrb[12].mxu0 }
 0x186   :  { %v831_v19 = vadd.f32 %v830_v18, %v4041_v48  ;;  %v832_v20 = vpop.f32.mrb[13].mxu0 }
 0x187   :  { %v833_v21 = vadd.f32 %v832_v20, %v4045_v49  ;;  %v834_v22 = vpop.f32.mrb[14].mxu0 }
 0x188   :  { %952 = vst [vmem:[%s5010_s13 + $0x60] sm:$0xff] %v831_v19  ;;  %v835_v23 = vadd.f32 %v834_v22, %v4041_v48  ;;  %v836_v24 = vpop.f32.mrb[15].mxu0 }
 0x189   :  { %953 = vst.msk [vmem:[%s5010_s13 + $0x68] sm:$0xff] %vm940_vm5, %v833_v21  ;;  %v837_v25 = vadd.f32 %v836_v24, %v4045_v49 }
 0x18a   :  { %954 = vst [vmem:[%s5010_s13 + $0x70] sm:$0xff] %v835_v23  ;;  %v1002_v26 = vadd.f32 %v835_v23, %v831_v19 }
 0x18b   :  { %955 = vst.msk [vmem:[%s5010_s13 + $0x78] sm:$0xff] %vm940_vm5, %v837_v25  ;;  %v1003_v27 = vadd.f32 %v837_v25, %v833_v21 }
 0x18c   :  { %v1026_v28 = vpack.c.bf16 %v1002_v26, %v1000_v16 }
 0x18d   :  { %v1027_v29 = vpack.c.bf16 %v1003_v27, %v1001_v17 }
 0x18f   :  { %2874 = vmatprep.mubr.msk.bf16.mxu1 %vm940_vm5, %v1027_v29 }
 0x190   :  { %1188 = vmatmul.mubr.bf16.gmra.mrb[4].mxu1 %v1026_v28 }
 0x191   :  { %v840_v30 = vpop.f32.mrb[16].mxu0 }
 0x192   :  { %v841_v31 = vadd.f32 %v840_v30, %v4041_v48  ;;  %v842_v32 = vpop.f32.mrb[17].mxu0 }
 0x193   :  { %v843_v33 = vadd.f32 %v842_v32, %v4045_v49  ;;  %v844_v34 = vpop.f32.mrb[18].mxu0 }
 0x194   :  { %956 = vst [vmem:[%s5010_s13 + $0x80] sm:$0xff] %v841_v31  ;;  %v845_v35 = vadd.f32 %v844_v34, %v4041_v48  ;;  %v846_v37 = vpop.f32.mrb[19].mxu0 }
 0x195   :  { %957 = vst.msk [vmem:[%s5010_s13 + $0x88] sm:$0xff] %vm940_vm5, %v843_v33  ;;  %v847_v38 = vadd.f32 %v846_v37, %v4045_v49 }
 0x196   :  { %958 = vst [vmem:[%s5010_s13 + $0x90] sm:$0xff] %v845_v35  ;;  %v1004_v39 = vadd.f32 %v845_v35, %v841_v31 }
 0x197   :  { %959 = vst.msk [vmem:[%s5010_s13 + $0x98] sm:$0xff] %vm940_vm5, %v847_v38  ;;  %v1005_v40 = vadd.f32 %v847_v38, %v843_v33 }
 0x19d   :  { %v850_v41 = vpop.f32.mrb[20].mxu0 }
 0x19e   :  { %v851_v42 = vadd.f32 %v850_v41, %v4041_v48  ;;  %v852_v43 = vpop.f32.mrb[21].mxu0 }
 0x19f   :  { %v853_v46 = vadd.f32 %v852_v43, %v4045_v49  ;;  %v854_v50 = vpop.f32.mrb[22].mxu0 }
 0x1a0   :  { %960 = vst [vmem:[%s5010_s13 + $0xa0] sm:$0xff] %v851_v42  ;;  %v855_v51 = vadd.f32 %v854_v50, %v4041_v48  ;;  %v856_v52 = vpop.f32.mrb[23].mxu0 }
 0x1a1   :  { %961 = vst.msk [vmem:[%s5010_s13 + $0xa8] sm:$0xff] %vm940_vm5, %v853_v46  ;;  %v857_v53 = vadd.f32 %v856_v52, %v4045_v49 }
 0x1a2   :  { %962 = vst [vmem:[%s5010_s13 + $0xb0] sm:$0xff] %v855_v51  ;;  %v1006_v54 = vadd.f32 %v855_v51, %v851_v42 }
 0x1a3   :  { %963 = vst.msk [vmem:[%s5010_s13 + $0xb8] sm:$0xff] %vm940_vm5, %v857_v53  ;;  %v1007_v55 = vadd.f32 %v857_v53, %v853_v46 }
 0x1a4   :  { %v1028_v56 = vpack.c.bf16 %v1006_v54, %v1004_v39 }
 0x1a5   :  { %v1029_v57 = vpack.c.bf16 %v1007_v55, %v1005_v40 }
 0x1a7   :  { %2875 = vmatprep.mubr.msk.bf16.mxu1 %vm940_vm5, %v1029_v57 }
 0x1a8   :  { %1196 = vmatmul.mubr.bf16.gmra.mrb[8].mxu1 %v1028_v56 }
 0x1a9   :  { %v860_v58 = vpop.f32.mrb[24].mxu0 }
 0x1aa   :  { %v861_v59 = vadd.f32 %v860_v58, %v4041_v48  ;;  %v862_v60 = vpop.f32.mrb[25].mxu0 }
 0x1ab   :  { %v863_v61 = vadd.f32 %v862_v60, %v4045_v49  ;;  %v864_v62 = vpop.f32.mrb[26].mxu0 }
 0x1ac   :  { %964 = vst [vmem:[%s5010_s13 + $0xc0] sm:$0xff] %v861_v59  ;;  %v865_v63 = vadd.f32 %v864_v62, %v4041_v48  ;;  %v866_v0 = vpop.f32.mrb[27].mxu0 }
 0x1ad   :  { %965 = vst.msk [vmem:[%s5010_s13 + $0xc8] sm:$0xff] %vm940_vm5, %v863_v61  ;;  %v867_v1 = vadd.f32 %v866_v0, %v4045_v49 }
 0x1ae   :  { %966 = vst [vmem:[%s5010_s13 + $0xd0] sm:$0xff] %v865_v63  ;;  %v1008_v2 = vadd.f32 %v865_v63, %v861_v59 }
 0x1af   :  { %967 = vst.msk [vmem:[%s5010_s13 + $0xd8] sm:$0xff] %vm940_vm5, %v867_v1  ;;  %v1009_v3 = vadd.f32 %v867_v1, %v863_v61 }
 0x1b5   :  { %v870_v4 = vpop.f32.mrb[28].mxu0 }
 0x1b6   :  { %v871_v5 = vadd.f32 %v870_v4, %v4041_v48  ;;  %v872_v6 = vpop.f32.mrb[29].mxu0 }
 0x1b7   :  { %v873_v7 = vadd.f32 %v872_v6, %v4045_v49  ;;  %v874_v8 = vpop.f32.mrb[30].mxu0 }
 0x1b8   :  { %968 = vst [vmem:[%s5010_s13 + $0xe0] sm:$0xff] %v871_v5  ;;  %v875_v9 = vadd.f32 %v874_v8, %v4041_v48  ;;  %v876_v10 = vpop.f32.mrb[31].mxu0 }
 0x1b9   :  { %969 = vst.msk [vmem:[%s5010_s13 + $0xe8] sm:$0xff] %vm940_vm5, %v873_v7  ;;  %v877_v11 = vadd.f32 %v876_v10, %v4045_v49 }
 0x1ba   :  { %970 = vst [vmem:[%s5010_s13 + $0xf0] sm:$0xff] %v875_v9  ;;  %v1010_v12 = vadd.f32 %v875_v9, %v871_v5 }
 0x1bb   :  { %971 = vst.msk [vmem:[%s5010_s13 + $0xf8] sm:$0xff] %vm940_vm5, %v877_v11  ;;  %v1011_v13 = vadd.f32 %v877_v11, %v873_v7 }
 0x1bc   :  { %v1030_v14 = vpack.c.bf16 %v1010_v12, %v1008_v2 }
 0x1bd   :  { %v1031_v15 = vpack.c.bf16 %v1011_v13, %v1009_v3 }
 0x1bf   :  { %2876 = vmatprep.mubr.msk.bf16.mxu1 %vm940_vm5, %v1031_v15 }
 0x1c0   :  { %1204 = vmatmul.mubr.bf16.gmra.mrb[12].mxu1 %v1030_v14 }
 0x1c1   :  { %v880_v16 = vpop.f32.mrb[32].mxu0 }
 0x1c2   :  { %v881_v17 = vadd.f32 %v880_v16, %v4041_v48  ;;  %v882_v18 = vpop.f32.mrb[33].mxu0 }
 0x1c3   :  { %v883_v19 = vadd.f32 %v882_v18, %v4045_v49  ;;  %v884_v20 = vpop.f32.mrb[34].mxu0 }
 0x1c4   :  { %972 = vst [vmem:[%s5010_s13 + $0x100] sm:$0xff] %v881_v17  ;;  %v885_v21 = vadd.f32 %v884_v20, %v4041_v48  ;;  %v886_v22 = vpop.f32.mrb[35].mxu0 }
 0x1c5   :  { %973 = vst.msk [vmem:[%s5010_s13 + $0x108] sm:$0xff] %vm940_vm5, %v883_v19  ;;  %v887_v23 = vadd.f32 %v886_v22, %v4045_v49 }
 0x1c6   :  { %974 = vst [vmem:[%s5010_s13 + $0x110] sm:$0xff] %v885_v21  ;;  %v1012_v24 = vadd.f32 %v885_v21, %v881_v17 }
 0x1c7   :  { %975 = vst.msk [vmem:[%s5010_s13 + $0x118] sm:$0xff] %vm940_vm5, %v887_v23  ;;  %v1013_v25 = vadd.f32 %v887_v23, %v883_v19  ;;  %v3169_v23 = vld [vmem:[%s5011_s4 + $0x4] ss:$8 sps:$4 sm:$0xff]  }
 0x1c8   :  { %1882 = vmatprep.subr.bf16.mxu1 %v3169_v23 }
 0x1cd   :  { %v890_v26 = vpop.f32.mrb[36].mxu0 }
 0x1ce   :  { %v891_v27 = vadd.f32 %v890_v26, %v4041_v48  ;;  %v892_v28 = vpop.f32.mrb[37].mxu0  ;;  %v3175_v26 = vld [vmem:[%s5011_s4 + $0x24] ss:$8 sps:$4 sm:$0xff]  }
 0x1cf   :  { %v893_v29 = vadd.f32 %v892_v28, %v4045_v49  ;;  %v894_v30 = vpop.f32.mrb[38].mxu0  ;;  %v3178_v28 = vld [vmem:[%s5011_s4 + $0x34] ss:$8 sps:$4 sm:$0xff]  }
 0x1d0   :  { %976 = vst [vmem:[%s5010_s13 + $0x120] sm:$0xff] %v891_v27  ;;  %v895_v31 = vadd.f32 %v894_v30, %v4041_v48  ;;  %v896_v32 = vpop.f32.mrb[39].mxu0  ;;  %v3179_v30 = vld [vmem:[%s5011_s4 + $0x40] ss:$8 sps:$4 sm:$0xff]  }
 0x1d1   :  { %977 = vst.msk [vmem:[%s5010_s13 + $0x128] sm:$0xff] %vm940_vm5, %v893_v29  ;;  %v897_v33 = vadd.f32 %v896_v32, %v4045_v49 }
 0x1d2   :  { %978 = vst [vmem:[%s5010_s13 + $0x130] sm:$0xff] %v895_v31  ;;  %v1014_v34 = vadd.f32 %v895_v31, %v891_v27  ;;  %v3173_v27 = vld [vmem:[%s5011_s4 + $0x20] ss:$8 sps:$4 sm:$0xff]   ;;  %v3181_v31 = vld [vmem:[%s5011_s4 + $0x44] ss:$8 sps:$4 sm:$0xff]  }
 0x1d3   :  { %979 = vst.msk [vmem:[%s5010_s13 + $0x138] sm:$0xff] %vm940_vm5, %v897_v33  ;;  %v1015_v35 = vadd.f32 %v897_v33, %v893_v29  ;;  %v3176_v29 = vld [vmem:[%s5011_s4 + $0x30] ss:$8 sps:$4 sm:$0xff]  }
 0x1d4   :  { %v1032_v37 = vpack.c.bf16 %v1014_v34, %v1012_v24  ;;  %v3170_v24 = vld [vmem:[%s5011_s4 + $0x10] ss:$8 sps:$4 sm:$0xff]  }
 0x1d5   :  { %v1033_v38 = vpack.c.bf16 %v1015_v35, %v1013_v25  ;;  %v3172_v25 = vld [vmem:[%s5011_s4 + $0x14] ss:$8 sps:$4 sm:$0xff]   ;;  %v3182_v34 = vld [vmem:[%s5011_s4 + $0x50] ss:$8 sps:$4 sm:$0xff]  }
 0x1d6   :  { %v3184_v35 = vld [vmem:[%s5011_s4 + $0x54] ss:$8 sps:$4 sm:$0xff]  }
 0x1d7   :  { %2877 = vmatprep.mubr.msk.bf16.mxu1 %vm940_vm5, %v1033_v38 }
 0x1d8   :  { %1212 = vmatmul.mubr.bf16.gmra.mrb[16].mxu1 %v1032_v37 }
 0x1d9   :  { %v900_v39 = vpop.f32.mrb[40].mxu0 }
 0x1da   :  { %v901_v40 = vadd.f32 %v900_v39, %v4041_v48  ;;  %v902_v41 = vpop.f32.mrb[41].mxu0  ;;  %v3185_v39 = vld [vmem:[%s5011_s4 + $0x60] ss:$8 sps:$4 sm:$0xff]  }
 0x1db   :  { %v903_v42 = vadd.f32 %v902_v41, %v4045_v49  ;;  %v904_v43 = vpop.f32.mrb[42].mxu0  ;;  %v3188_v41 = vld [vmem:[%s5011_s4 + $0x70] ss:$8 sps:$4 sm:$0xff]  }
 0x1dc   :  { %980 = vst [vmem:[%s5010_s13 + $0x140] sm:$0xff] %v901_v40  ;;  %v905_v46 = vadd.f32 %v904_v43, %v4041_v48  ;;  %v906_v50 = vpop.f32.mrb[43].mxu0  ;;  %v3191_v43 = vld [vmem:[%s5011_s4 + $0x80] ss:$8 sps:$4 sm:$0xff]  }
 0x1dd   :  { %981 = vst.msk [vmem:[%s5010_s13 + $0x148] sm:$0xff] %vm940_vm5, %v903_v42  ;;  %v907_v51 = vadd.f32 %v906_v50, %v4045_v49  ;;  %v3196_v50 = vld [vmem:[%s5011_s4 + $0x94] ss:$8 sps:$4 sm:$0xff]  }
 0x1de   :  { %982 = vst [vmem:[%s5010_s13 + $0x150] sm:$0xff] %v905_v46  ;;  %v1016_v52 = vadd.f32 %v905_v46, %v901_v40  ;;  %v3187_v40 = vld [vmem:[%s5011_s4 + $0x64] ss:$8 sps:$4 sm:$0xff]  }
 0x1df   :  { %983 = vst.msk [vmem:[%s5010_s13 + $0x158] sm:$0xff] %vm940_vm5, %v907_v51  ;;  %v1017_v53 = vadd.f32 %v907_v51, %v903_v42  ;;  %v3190_v42 = vld [vmem:[%s5011_s4 + $0x74] ss:$8 sps:$4 sm:$0xff]   ;;  %v3193_v46 = vld [vmem:[%s5011_s4 + $0x84] ss:$8 sps:$4 sm:$0xff]  }
 0x1e0   :  { %v3194_v51 = vld [vmem:[%s5011_s4 + $0x90] ss:$8 sps:$4 sm:$0xff]  }
 0x1e5   :  { %v910_v54 = vpop.f32.mrb[44].mxu0 }
 0x1e6   :  { %v911_v55 = vadd.f32 %v910_v54, %v4041_v48  ;;  %v912_v56 = vpop.f32.mrb[45].mxu0 }
 0x1e7   :  { %v913_v57 = vadd.f32 %v912_v56, %v4045_v49  ;;  %v914_v58 = vpop.f32.mrb[46].mxu0  ;;  %v3200_v56 = vld [vmem:[%s5011_s4 + $0xb0] ss:$8 sps:$4 sm:$0xff]  }
 0x1e8   :  { %984 = vst [vmem:[%s5010_s13 + $0x160] sm:$0xff] %v911_v55  ;;  %v915_v59 = vadd.f32 %v914_v58, %v4041_v48  ;;  %v916_v60 = vpop.f32.mrb[47].mxu0 }
 0x1e9   :  { %985 = vst.msk [vmem:[%s5010_s13 + $0x168] sm:$0xff] %vm940_vm5, %v913_v57  ;;  %v917_v61 = vadd.f32 %v916_v60, %v4045_v49  ;;  %v3203_v60 = vld [vmem:[%s5011_s4 + $0xc0] ss:$8 sps:$4 sm:$0xff]  }
 0x1ea   :  { %986 = vst [vmem:[%s5010_s13 + $0x170] sm:$0xff] %v915_v59  ;;  %v1018_v62 = vadd.f32 %v915_v59, %v911_v55 }
 0x1eb   :  { %987 = vst.msk [vmem:[%s5010_s13 + $0x178] sm:$0xff] %vm940_vm5, %v917_v61  ;;  %v1019_v63 = vadd.f32 %v917_v61, %v913_v57  ;;  %v3202_v57 = vld [vmem:[%s5011_s4 + $0xb4] ss:$8 sps:$4 sm:$0xff]   ;;  %v3205_v61 = vld [vmem:[%s5011_s4 + $0xc4] ss:$8 sps:$4 sm:$0xff]  }
 0x1ec   :  { %v1034_v0 = vpack.c.bf16 %v1018_v62, %v1016_v52  ;;  %v3197_v52 = vld [vmem:[%s5011_s4 + $0xa0] ss:$8 sps:$4 sm:$0xff]   ;;  %v3206_v62 = vld [vmem:[%s5011_s4 + $0xd0] ss:$8 sps:$4 sm:$0xff]  }
 0x1ed   :  { %v1035_v1 = vpack.c.bf16 %v1019_v63, %v1017_v53  ;;  %v3199_v53 = vld [vmem:[%s5011_s4 + $0xa4] ss:$8 sps:$4 sm:$0xff]   ;;  %v3208_v63 = vld [vmem:[%s5011_s4 + $0xd4] ss:$8 sps:$4 sm:$0xff]  }
 0x1ef   :  { %2878 = vmatprep.mubr.msk.bf16.mxu1 %vm940_vm5, %v1035_v1  ;;  %v3211_v1 = vld [vmem:[%s5011_s4 + $0xe4] ss:$8 sps:$4 sm:$0xff]  }
 0x1f0   :  { %1220 = vmatmul.mubr.bf16.gmra.mrb[20].mxu1 %v1034_v0  ;;  %v3209_v0 = vld [vmem:[%s5011_s4 + $0xe0] ss:$8 sps:$4 sm:$0xff]  }
 0x1f1   :  { %v920_v2 = vpop.f32.mrb[48].mxu0 }
 0x1f2   :  { %v921_v3 = vadd.f32 %v920_v2, %v4041_v48  ;;  %v922_v4 = vpop.f32.mrb[49].mxu0  ;;  %v3212_v2 = vld [vmem:[%s5011_s4 + $0xf0] ss:$8 sps:$4 sm:$0xff]  }
 0x1f3   :  { %v923_v5 = vadd.f32 %v922_v4, %v4045_v49  ;;  %v924_v6 = vpop.f32.mrb[50].mxu0 }
 0x1f4   :  { %988 = vst [vmem:[%s5010_s13 + $0x180] sm:$0xff] %v921_v3  ;;  %v925_v7 = vadd.f32 %v924_v6, %v4041_v48  ;;  %v926_v8 = vpop.f32.mrb[51].mxu0 }
 0x1f5   :  { %989 = vst.msk [vmem:[%s5010_s13 + $0x188] sm:$0xff] %vm940_vm5, %v923_v5  ;;  %v927_v9 = vadd.f32 %v926_v8, %v4045_v49 }
 0x1f6   :  { %990 = vst [vmem:[%s5010_s13 + $0x190] sm:$0xff] %v925_v7  ;;  %v1020_v10 = vadd.f32 %v925_v7, %v921_v3  ;;  %v3214_v3 = vld [vmem:[%s5011_s4 + $0xf4] ss:$8 sps:$4 sm:$0xff]  }
 0x1f7   :  { %991 = vst.msk [vmem:[%s5010_s13 + $0x198] sm:$0xff] %vm940_vm5, %v927_v9  ;;  %v1021_v11 = vadd.f32 %v927_v9, %v923_v5 }
 0x1fd   :  { %v930_v12 = vpop.f32.mrb[52].mxu0 }
 0x1fe   :  { %v931_v13 = vadd.f32 %v930_v12, %v4041_v48  ;;  %v932_v14 = vpop.f32.mrb[53].mxu0  ;;  %v3217_v12 = vld [vmem:[%s5011_s4 + $0x104] ss:$8 sps:$4 sm:$0xff]  }
 0x1ff   :  { %v933_v15 = vadd.f32 %v932_v14, %v4045_v49  ;;  %v934_v16 = vpop.f32.mrb[54].mxu0 }
 0x200   :  { %992 = vst [vmem:[%s5010_s13 + $0x1a0] sm:$0xff] %v931_v13  ;;  %v935_v17 = vadd.f32 %v934_v16, %v4041_v48  ;;  %v936_v18 = vpop.f32.mrb[55].mxu0 }
 0x201   :  { %993 = vst.msk [vmem:[%s5010_s13 + $0x1a8] sm:$0xff] %vm940_vm5, %v933_v15  ;;  %v937_v19 = vadd.f32 %v936_v18, %v4045_v49  ;;  %v3167_v49 = vld [vmem:[%s5011_s4] ss:$8 sps:$4 sm:$0xff]  }
 0x202   :  { %994 = vst [vmem:[%s5010_s13 + $0x1b0] sm:$0xff] %v935_v17  ;;  %v1022_v20 = vadd.f32 %v935_v17, %v931_v13  ;;  %1883 = vmatpush1.bf16.msra.mxu1 %v3167_v49 }
 0x203   :  { %995 = vst.msk [vmem:[%s5010_s13 + $0x1b8] sm:$0xff] %vm940_vm5, %v937_v19  ;;  %v1023_v21 = vadd.f32 %v937_v19, %v933_v15  ;;  %1884 = vmatprep.subr.bf16.mxu1 %v3172_v25 }
 0x204   :  { %v1036_v48 = vpack.c.bf16 %v1022_v20, %v1020_v10 }
 0x205   :  { %v1037_v22 = vpack.c.bf16 %v1023_v21, %v1021_v11 }
 0x206   :  { %1885 = vmatpush1.bf16.msra.mxu1 %v3170_v24 }
 0x207   :  { %2879 = vmatprep.mubr.msk.bf16.mxu1 %vm940_vm5, %v1037_v22  ;;  %1886 = vmatprep.subr.bf16.mxu1 %v3175_v26 }
 0x208   :  { %1228 = vmatmul.mubr.bf16.gmra.mrb[24].mxu1 %v1036_v48 }
 0x20a   :  { %1887 = vmatpush1.bf16.msra.mxu1 %v3173_v27 }
 0x20b   :  { %1888 = vmatprep.subr.bf16.mxu1 %v3178_v28 }
 0x20e   :  { %1889 = vmatpush1.bf16.msra.mxu1 %v3176_v29 }
 0x20f   :  { %1890 = vmatprep.subr.bf16.mxu1 %v3181_v31 }
 0x212   :  { %1891 = vmatpush1.bf16.msra.mxu1 %v3179_v30 }
 0x213   :  { %1892 = vmatprep.subr.bf16.mxu1 %v3184_v35 }
 0x216   :  { %1893 = vmatpush1.bf16.msra.mxu1 %v3182_v34 }
 0x217   :  { %1894 = vmatprep.subr.bf16.mxu1 %v3187_v40 }
 0x21a   :  { %1895 = vmatpush1.bf16.msra.mxu1 %v3185_v39 }
 0x21b   :  { %1896 = vmatprep.subr.bf16.mxu1 %v3190_v42 }
 0x21e   :  { %1897 = vmatpush1.bf16.msra.mxu1 %v3188_v41  ;;  %v3215_v41 = vld [vmem:[%s5011_s4 + $0x100] ss:$8 sps:$4 sm:$0xff]  }
 0x21f   :  { %1898 = vmatprep.subr.bf16.mxu1 %v3193_v46  ;;  %v3218_v46 = vld [vmem:[%s5011_s4 + $0x110] ss:$8 sps:$4 sm:$0xff]  }
 0x222   :  { %1899 = vmatpush1.bf16.msra.mxu1 %v3191_v43  ;;  %v3220_v43 = vld [vmem:[%s5011_s4 + $0x114] ss:$8 sps:$4 sm:$0xff]  }
 0x223   :  { %1900 = vmatprep.subr.bf16.mxu1 %v3196_v50  ;;  %v3223_v50 = vld [vmem:[%s5011_s4 + $0x124] ss:$8 sps:$4 sm:$0xff]  }
 0x226   :  { %1901 = vmatpush1.bf16.msra.mxu1 %v3194_v51  ;;  %v3221_v51 = vld [vmem:[%s5011_s4 + $0x120] ss:$8 sps:$4 sm:$0xff]  }
 0x227   :  { %1902 = vmatprep.subr.bf16.mxu1 %v3199_v53  ;;  %v3224_v53 = vld [vmem:[%s5011_s4 + $0x130] ss:$8 sps:$4 sm:$0xff]  }
 0x22a   :  { %1903 = vmatpush1.bf16.msra.mxu1 %v3197_v52  ;;  %v3226_v52 = vld [vmem:[%s5011_s4 + $0x134] ss:$8 sps:$4 sm:$0xff]  }
 0x22b   :  { %1904 = vmatprep.subr.bf16.mxu1 %v3202_v57 }
 0x22e   :  { %1905 = vmatpush1.bf16.msra.mxu1 %v3200_v56  ;;  %v3247_v56 = vld [vmem:[%s5013_s6 + $0x8] sm:$0xff]  }
 0x22f   :  { %1906 = vmatprep.subr.bf16.mxu1 %v3205_v61  ;;  %v3248_v61 = vld [vmem:[%s5013_s6 + $0x10] sm:$0xff]  }
 0x232   :  { %1907 = vmatpush1.bf16.msra.mxu1 %v3203_v60  ;;  %v3232_v60 = vld [vmem:[%s5011_s4 + $0x154] ss:$8 sps:$4 sm:$0xff]  }
 0x233   :  { %1908 = vmatprep.subr.bf16.mxu1 %v3208_v63 }
 0x236   :  { %1909 = vmatpush1.bf16.msra.mxu1 %v3206_v62 }
 0x237   :  { %1910 = vmatprep.subr.bf16.mxu1 %v3211_v1  ;;  %v3235_v1 = vld [vmem:[%s5011_s4 + $0x164] ss:$8 sps:$4 sm:$0xff]  }
 0x23a   :  { %1911 = vmatpush1.bf16.msra.mxu1 %v3209_v0  ;;  %v3230_v0 = vld [vmem:[%s5011_s4 + $0x150] ss:$8 sps:$4 sm:$0xff]  }
 0x23b   :  { %1912 = vmatprep.subr.bf16.mxu1 %v3214_v3  ;;  %v3249_v3 = vld [vmem:[%s5013_s6 + $0x18] sm:$0xff]  }
 0x23e   :  { %1913 = vmatpush1.bf16.msra.mxu1 %v3212_v2 }
 0x23f   :  { %1965 = vmatprep.subr.bf16.mxu1 %v3217_v12  ;;  %v3238_v12 = vld [vmem:[%s5011_s4 + $0x174] ss:$8 sps:$4 sm:$0xff]  }
 0x24b   :  { %v1181_v32 = vpop.f32.mrb[0].mxu1 }
 0x24c   :  { %1237 = vst.msk [vmem:[%s5012_s14] sm:$0xff] %vm1236_vm6, %v1181_v32  ;;  %1251 = vst.msk [vmem:[#allocation3] sm:$0xff] %vm1236_vm6, %v1181_v32  ;;  %v1183_v33 = vpop.f32.mrb[1].mxu1 }
 0x24d   :  { %v1184_v37 = vpop.f32.mrb[2].mxu1 }
 0x24e   :  { %1238 = vst.msk [vmem:[%s5012_s14 + $0x8] sm:$0xff] %vm1236_vm6, %v1184_v37  ;;  %1252 = vst.msk [vmem:[#allocation3 + $0x20] sm:$0xff] %vm1236_vm6, %v1184_v37  ;;  %1271 = vrot.lane.b32.xlu0 %v1184_v37, %s3303_s20  ;;  %v1186_v38 = vpop.f32.mrb[3].mxu1 }
 0x263   :  { %v1189_v54 = vpop.f32.mrb[4].mxu1 }
 0x264   :  { %1239 = vst.msk [vmem:[%s5012_s14 + $0x10] sm:$0xff] %vm1236_vm6, %v1189_v54  ;;  %1253 = vst.msk [vmem:[#allocation3 + $0x40] sm:$0xff] %vm1236_vm6, %v1189_v54  ;;  %1323 = vrot.lane.b32.xlu0 %v1189_v54, %s3304_s28  ;;  %1273 = vrot.lane.b32.xlu1 %v1189_v54, %s3303_s20  ;;  %v1191_v55 = vpop.f32.mrb[5].mxu1  ;;  %v3246_v54 = vld [vmem:[%s5013_s6] sm:$0xff]  }
 0x265   :  { %v1192_v58 = vpop.f32.mrb[6].mxu1  ;;  %v3229_v55 = vld [vmem:[%s5011_s4 + $0x144] ss:$8 sps:$4 sm:$0xff]   ;;  %2174 = vmatpush1.bf16.msra.mxu0 %v3246_v54 }
 0x266   :  { %1240 = vst.msk [vmem:[%s5012_s14 + $0x18] sm:$0xff] %vm1236_vm6, %v1192_v58  ;;  %1254 = vst.msk [vmem:[#allocation3 + $0x60] sm:$0xff] %vm1236_vm6, %v1192_v58  ;;  %v1194_v59 = vpop.f32.mrb[7].mxu1  ;;  %2175 = vmatprep.subr.bf16.mxu0 %v3302_v36 }
 0x267   :  { %v3227_v59 = vld [vmem:[%s5011_s4 + $0x140] ss:$8 sps:$4 sm:$0xff]  }
 0x268   :  { %1365 = vrot.lane.b32.xlu0 %v1192_v58, %s3305_s27  ;;  %1325 = vrot.lane.b32.xlu1 %v1192_v58, %s3304_s28 }
 0x269   :  { %2176 = vmatpush1.bf16.msra.mxu0 %v3247_v56 }
 0x26a   :  { %2177 = vmatprep.subr.bf16.mxu0 %v3302_v36 }
 0x26c   :  { %1275 = vrot.lane.b32.xlu0 %v1192_v58, %s3303_s20 }
 0x26d   :  { %2178 = vmatpush1.bf16.msra.mxu0 %v3248_v61 }
 0x26e   :  { %2179 = vmatprep.subr.bf16.mxu0 %v3302_v36 }
 0x271   :  { %2180 = vmatpush1.bf16.msra.mxu0 %v3249_v3 }
 0x272   :  { %2181 = vmatprep.subr.bf16.mxu0 %v3302_v36 }
 0x27b   :  { %v1197_v4 = vpop.f32.mrb[8].mxu1 }
 0x27c   :  { %1241 = vst.msk [vmem:[%s5012_s14 + $0x20] sm:$0xff] %vm1236_vm6, %v1197_v4  ;;  %1255 = vst.msk [vmem:[#allocation3 + $0x80] sm:$0xff] %vm1236_vm6, %v1197_v4  ;;  %1327 = vrot.lane.b32.xlu0 %v1197_v4, %s3304_s28  ;;  %1367 = vrot.lane.b32.xlu1 %v1197_v4, %s3305_s27  ;;  %v1199_v5 = vpop.f32.mrb[9].mxu1 }
 0x27d   :  { %v4435_v6 = vpop.f32.mrb[10].mxu1 }
 0x27e   :  { %1242 = vst.msk [vmem:[%s5012_s14 + $0x28] sm:$0xff] %vm1236_vm6, %v4435_v6  ;;  %1256 = vst.msk [vmem:[#allocation3 + $0xa0] sm:$0xff] %vm1236_vm6, %v4435_v6  ;;  %v1202_v7 = vpop.f32.mrb[11].mxu1 }
 0x280   :  { %1277 = vrot.lane.b32.xlu1 %v1197_v4, %s3303_s20  ;;  %1369 = vrot.lane.b32.xlu0 %v4435_v6, %s3305_s27 }
 0x284   :  { %1279 = vrot.lane.b32.xlu0 %v4435_v6, %s3303_s20  ;;  %1329 = vrot.lane.b32.xlu1 %v4435_v6, %s3304_s28 }
 0x293   :  { %v1205_v8 = vpop.f32.mrb[12].mxu1 }
 0x294   :  { %1243 = vst.msk [vmem:[%s5012_s14 + $0x30] sm:$0xff] %vm1236_vm6, %v1205_v8  ;;  %1257 = vst.msk [vmem:[#allocation3 + $0xc0] sm:$0xff] %vm1236_vm6, %v1205_v8  ;;  %1331 = vrot.lane.b32.xlu0 %v1205_v8, %s3304_s28  ;;  %1371 = vrot.lane.b32.xlu1 %v1205_v8, %s3305_s27  ;;  %v1207_v9 = vpop.f32.mrb[13].mxu1 }
 0x295   :  { %v4458_v10 = vpop.f32.mrb[14].mxu1 }
 0x296   :  { %1244 = vst.msk [vmem:[%s5012_s14 + $0x38] sm:$0xff] %vm1236_vm6, %v4458_v10  ;;  %1258 = vst.msk [vmem:[#allocation3 + $0xe0] sm:$0xff] %vm1236_vm6, %v4458_v10  ;;  %v1210_v11 = vpop.f32.mrb[15].mxu1 }
 0x298   :  { %1281 = vrot.lane.b32.xlu1 %v1205_v8, %s3303_s20  ;;  %1373 = vrot.lane.b32.xlu0 %v4458_v10, %s3305_s27 }
 0x29c   :  { %1283 = vrot.lane.b32.xlu0 %v4458_v10, %s3303_s20  ;;  %1333 = vrot.lane.b32.xlu1 %v4458_v10, %s3304_s28 }
 0x2ab   :  { %v1213_v13 = vpop.f32.mrb[16].mxu1 }
 0x2ac   :  { %1245 = vst.msk [vmem:[%s5012_s14 + $0x40] sm:$0xff] %vm1236_vm6, %v1213_v13  ;;  %1259 = vst.msk [vmem:[#allocation3 + $0x100] sm:$0xff] %vm1236_vm6, %v1213_v13  ;;  %1335 = vrot.lane.b32.xlu0 %v1213_v13, %s3304_s28  ;;  %1375 = vrot.lane.b32.xlu1 %v1213_v13, %s3305_s27  ;;  %v1215_v14 = vpop.f32.mrb[17].mxu1 }
 0x2ad   :  { %v1216_v15 = vpop.f32.mrb[18].mxu1  ;;  %v3236_v14 = vld [vmem:[%s5011_s4 + $0x170] ss:$8 sps:$4 sm:$0xff]  }
 0x2ae   :  { %1246 = vst.msk [vmem:[%s5012_s14 + $0x48] sm:$0xff] %vm1236_vm6, %v1216_v15  ;;  %1260 = vst.msk [vmem:[#allocation3 + $0x120] sm:$0xff] %vm1236_vm6, %v1216_v15  ;;  %v1218_v16 = vpop.f32.mrb[19].mxu1 }
 0x2af   :  { %v3251_v16 = vld [vmem:[%s5013_s6 + $0x28] sm:$0xff]  }
 0x2b0   :  { %1285 = vrot.lane.b32.xlu1 %v1213_v13, %s3303_s20  ;;  %1377 = vrot.lane.b32.xlu0 %v1216_v15, %s3305_s27 }
 0x2b4   :  { %1287 = vrot.lane.b32.xlu0 %v1216_v15, %s3303_s20  ;;  %1337 = vrot.lane.b32.xlu1 %v1216_v15, %s3304_s28 }
 0x2c0   :  { %v1272_v17 = vpop.permute.xlu0 %1271 }
 0x2c1   :  { %1302 = vst.msk [vmem:[#allocation3] sm:$0xff] %vm1301_vm7, %v1272_v17 }
 0x2c2   :  { %1303 = vst.msk [vmem:[#allocation3 + $0x8] sm:$0xff] %vm940_vm5, %v1272_v17  ;;  %v3239_v17 = vld [vmem:[%s5011_s4 + $0x180] ss:$8 sps:$4 sm:$0xff]  }
 0x2c3   :  { %v1221_v18 = vpop.f32.mrb[20].mxu1 }
 0x2c4   :  { %1247 = vst.msk [vmem:[%s5012_s14 + $0x50] sm:$0xff] %vm1236_vm6, %v1221_v18  ;;  %1339 = vrot.lane.b32.xlu0 %v1221_v18, %s3304_s28  ;;  %1379 = vrot.lane.b32.xlu1 %v1221_v18, %s3305_s27  ;;  %v1223_v19 = vpop.f32.mrb[21].mxu1 }
 0x2c5   :  { %v1224_v20 = vpop.f32.mrb[22].mxu1  ;;  %v1582_v19 = vld [vmem:[%s5011_s4 + $0x1a0] sm:$0x33] }
 0x2c6   :  { %1248 = vst.msk [vmem:[%s5012_s14 + $0x58] sm:$0xff] %vm1236_vm6, %v1224_v20  ;;  %v1226_v21 = vpop.f32.mrb[23].mxu1 }
 0x2c7   :  { %v3242_v21 = vld [vmem:[%s5011_s4 + $0x190] ss:$8 sps:$4 sm:$0xff]  }
 0x2c8   :  { %1289 = vrot.lane.b32.xlu1 %v1221_v18, %s3303_s20  ;;  %1381 = vrot.lane.b32.xlu0 %v1224_v20, %s3305_s27  ;;  %v1470_v40 = vld [vmem:[#allocation3] sm:$0xff]  ;;  %s3307_s20 = smov 112  }
 0x2cc   :  { %1418 = vrot.lane.b32.xlu0 %v1197_v4, %s3306_s3  ;;  %1341 = vrot.lane.b32.xlu1 %v1224_v20, %s3304_s28 }
 0x2d0   :  { %1422 = vrot.lane.b32.xlu0 %v1205_v8, %s3306_s3 }
 0x2d4   :  { %1426 = vrot.lane.b32.xlu0 %v1213_v13, %s3306_s3  ;;  %v3250_v13 = vld [vmem:[%s5013_s6 + $0x20] sm:$0xff]  }
 0x2d5   :  { %2182 = vmatpush1.bf16.msra.mxu0 %v3250_v13 }
 0x2d6   :  { %v1324_v48 = vpop.permute.xlu0 %1323  ;;  %v1274_v22 = vpop.permute.xlu1 %1273  ;;  %2183 = vmatprep.subr.bf16.mxu0 %v3302_v36 }
 0x2d7   :  { %1354 = vst.msk [vmem:[#allocation3 + $0x8] sm:$0xff] %vm1353_vm8, %v1324_v48  ;;  %v2933_v48 = vcombine.high %v1582_v19, %v1582_v19 }
 0x2d8   :  { %1304 = vst.msk [vmem:[#allocation3 + $0x20] sm:$0xff] %vm1301_vm7, %v1274_v22  ;;  %1430 = vrot.lane.b32.xlu0 %v1221_v18, %s3306_s3  ;;  %v3244_v18 = vld [vmem:[%s5011_s4 + $0x194] ss:$8 sps:$4 sm:$0xff]  }
 0x2d9   :  { %1305 = vst.msk [vmem:[#allocation3 + $0x28] sm:$0xff] %vm940_vm5, %v1274_v22  ;;  %2184 = vmatpush1.bf16.msra.mxu0 %v3251_v16  ;;  %v2932_v22 = vcombine.low %v1582_v19, %v1582_v19 }
 0x2da   :  { %v1366_v49 = vpop.permute.xlu0 %1365  ;;  %v1326_v23 = vpop.permute.xlu1 %1325  ;;  %2185 = vmatprep.subr.bf16.mxu0 %v3302_v36 }
 0x2db   :  { %1396 = vst.msk [vmem:[#allocation3 + $0x8] sm:$0xff] %vm1395_vm9, %v1366_v49  ;;  %v1229_v24 = vpop.f32.mrb[24].mxu1 }
 0x2dc   :  { %1398 = vst.msk [vmem:[#allocation3 + $0x10] sm:$0xff] %vm1397_vm10, %v1366_v49  ;;  %1434 = vrot.lane.b32.xlu0 %v1229_v24, %s3306_s3  ;;  %1383 = vrot.lane.b32.xlu1 %v1229_v24, %s3305_s27  ;;  %v1231_v25 = vpop.f32.mrb[25].mxu1  ;;  %v3253_v49 = vld [vmem:[%s5013_s6 + $0x38] sm:$0xff]  }
 0x2dd   :  { %1355 = vst.msk [vmem:[#allocation3 + $0x28] sm:$0xff] %vm1353_vm8, %v1326_v23  ;;  %v1232_v26 = vpop.f32.mrb[26].mxu1  ;;  %v1877_v25 = vsel %vm1875_vm11, %v2932_v22, 0 }
 0x2de   :  { %1249 = vst.msk [vmem:[%s5012_s14 + $0x60] sm:$0xff] %vm1236_vm6, %v1229_v24  ;;  %1250 = vst.msk [vmem:[%s5012_s14 + $0x68] sm:$0xff] %vm1236_vm6, %v1232_v26  ;;  %v1276_v27 = vpop.permute.xlu0 %1275  ;;  %v1234_v28 = vpop.f32.mrb[27].mxu1 }
 0x2df   :  { %1306 = vst.msk [vmem:[#allocation3 + $0x40] sm:$0xff] %vm1301_vm7, %v1276_v27  ;;  %v1474_v33 = vld [vmem:[#allocation3 + $0x20] sm:$0xff] }
 0x2e0   :  { %1307 = vst.msk [vmem:[#allocation3 + $0x48] sm:$0xff] %vm940_vm5, %v1276_v27  ;;  %1420 = vrot.lane.b32.xlu1 %v4435_v6, %s3306_s3  ;;  %v1510_v42 = vpack.c.bf16 %v1474_v33, %v1470_v40 }
 0x2e2   :  { %v1471_v37 = vld [vmem:[#allocation3 + $0x8] sm:$0xff] }
 0x2e4   :  { %1424 = vrot.lane.b32.xlu1 %v4458_v10, %s3306_s3  ;;  %v3233_v10 = vld [vmem:[%s5011_s4 + $0x160] ss:$8 sps:$4 sm:$0xff]  }
 0x2e6   :  { %v1478_v9 = vld [vmem:[#allocation3 + $0x40] sm:$0xff] }
 0x2e8   :  { %1428 = vrot.lane.b32.xlu1 %v1216_v15, %s3306_s3  ;;  %v3241_v15 = vld [vmem:[%s5011_s4 + $0x184] ss:$8 sps:$4 sm:$0xff]  }
 0x2ec   :  { %1432 = vrot.lane.b32.xlu1 %v1224_v20, %s3306_s3  ;;  %v3252_v20 = vld [vmem:[%s5013_s6 + $0x30] sm:$0xff]  }
 0x2ed   :  { %2186 = vmatpush1.bf16.msra.mxu0 %v3252_v20 }
 0x2ee   :  { %v1328_v29 = vpop.permute.xlu0 %1327  ;;  %v1368_v30 = vpop.permute.xlu1 %1367  ;;  %2187 = vmatprep.subr.bf16.mxu0 %v3302_v36 }
 0x2ef   :  { %1356 = vst.msk [vmem:[#allocation3 + $0x48] sm:$0xff] %vm1353_vm8, %v1328_v29 }
 0x2f0   :  { %1399 = vst.msk [vmem:[#allocation3 + $0x28] sm:$0xff] %vm1395_vm9, %v1368_v30  ;;  %1436 = vrot.lane.b32.xlu1 %v1232_v26, %s3306_s3 }
 0x2f1   :  { %1400 = vst.msk [vmem:[#allocation3 + $0x30] sm:$0xff] %vm1397_vm10, %v1368_v30  ;;  %2188 = vmatpush1.bf16.msra.mxu0 %v3253_v49 }
 0x2f2   :  { %v1278_v31 = vpop.permute.xlu1 %1277  ;;  %v1370_v32 = vpop.permute.xlu0 %1369  ;;  %2189 = vmatprep.subr.bf16.mxu0 %v3302_v36 }
 0x2f3   :  { %1308 = vst.msk [vmem:[#allocation3 + $0x60] sm:$0xff] %vm1301_vm7, %v1278_v31 }
 0x2f4   :  { %1309 = vst.msk [vmem:[#allocation3 + $0x68] sm:$0xff] %vm940_vm5, %v1278_v31 }
 0x2f5   :  { %1401 = vst.msk [vmem:[#allocation3 + $0x48] sm:$0xff] %vm1395_vm9, %v1370_v32 }
 0x2f6   :  { %1402 = vst.msk [vmem:[#allocation3 + $0x50] sm:$0xff] %vm1397_vm10, %v1370_v32  ;;  %v1280_v34 = vpop.permute.xlu0 %1279  ;;  %v1330_v35 = vpop.permute.xlu1 %1329 }
 0x2f7   :  { %v1475_v38 = vld [vmem:[#allocation3 + $0x28] sm:$0xff]  ;;  %1310 = vst.msk [vmem:[#allocation3 + $0x80] sm:$0xff] %vm1301_vm7, %v1280_v34 }
 0x2f8   :  { %1311 = vst.msk [vmem:[#allocation3 + $0x88] sm:$0xff] %vm940_vm5, %v1280_v34  ;;  %v1511_v39 = vpack.c.bf16 %v1475_v38, %v1471_v37 }
 0x2f9   :  { %1357 = vst.msk [vmem:[#allocation3 + $0x68] sm:$0xff] %vm1353_vm8, %v1330_v35 }
 0x2fa   :  { %1914 = vmatprep.mubr.bf16.mxu1 %v1511_v39  ;;  %v1482_v2 = vld [vmem:[#allocation3 + $0x60] sm:$0xff] }
 0x2fb   :  { %1915 = vmatmul.mubr.bf16.vlgmr.msra.gmra.mrb[28].mxu1 %v1510_v42  ;;  %v1514_v11 = vpack.c.bf16 %v1482_v2, %v1478_v9 }
 0x2fc   :  { %1966 = vmatpush1.bf16.msra.mxu1 %v3215_v41  ;;  %v1479_v6 = vld [vmem:[#allocation3 + $0x48] sm:$0xff] }
 0x2fd   :  { %1967 = vmatprep.subr.bf16.mxu1 %v3220_v43 }
 0x2fe   :  { %v1486_v34 = vld [vmem:[#allocation3 + $0x80] sm:$0xff] }
 0x300   :  { %1968 = vmatpush1.bf16.msra.mxu1 %v3218_v46 }
 0x301   :  { %1969 = vmatprep.subr.bf16.mxu1 %v3223_v50 }
 0x304   :  { %1970 = vmatpush1.bf16.msra.mxu1 %v3221_v51 }
 0x305   :  { %1971 = vmatprep.subr.bf16.mxu1 %v3226_v52 }
 0x306   :  { %v1332_v57 = vpop.permute.xlu0 %1331  ;;  %v1372_v58 = vpop.permute.xlu1 %1371 }
 0x307   :  { %1358 = vst.msk [vmem:[#allocation3 + $0x88] sm:$0xff] %vm1353_vm8, %v1332_v57 }
 0x308   :  { %1403 = vst.msk [vmem:[#allocation3 + $0x68] sm:$0xff] %vm1395_vm9, %v1372_v58  ;;  %1972 = vmatpush1.bf16.msra.mxu1 %v3224_v53 }
 0x309   :  { %1404 = vst.msk [vmem:[#allocation3 + $0x70] sm:$0xff] %vm1397_vm10, %v1372_v58  ;;  %1973 = vmatprep.subr.bf16.mxu1 %v3229_v55 }
 0x30a   :  { %v1282_v62 = vpop.permute.xlu1 %1281  ;;  %v1374_v63 = vpop.permute.xlu0 %1373 }
 0x30b   :  { %1312 = vst.msk [vmem:[#allocation3 + $0xa0] sm:$0xff] %vm1301_vm7, %v1282_v62 }
 0x30c   :  { %1313 = vst.msk [vmem:[#allocation3 + $0xa8] sm:$0xff] %vm940_vm5, %v1282_v62  ;;  %1974 = vmatpush1.bf16.msra.mxu1 %v3227_v59 }
 0x30d   :  { %1405 = vst.msk [vmem:[#allocation3 + $0x88] sm:$0xff] %vm1395_vm9, %v1374_v63  ;;  %1975 = vmatprep.subr.bf16.mxu1 %v3232_v60 }
 0x30e   :  { %1406 = vst.msk [vmem:[#allocation3 + $0x90] sm:$0xff] %vm1397_vm10, %v1374_v63  ;;  %v1284_v4 = vpop.permute.xlu0 %1283  ;;  %v1334_v5 = vpop.permute.xlu1 %1333 }
 0x30f   :  { %v1483_v7 = vld [vmem:[#allocation3 + $0x68] sm:$0xff]  ;;  %1314 = vst.msk [vmem:[#allocation3 + $0xc0] sm:$0xff] %vm1301_vm7, %v1284_v4 }
 0x310   :  { %1315 = vst.msk [vmem:[#allocation3 + $0xc8] sm:$0xff] %vm940_vm5, %v1284_v4  ;;  %v1515_v8 = vpack.c.bf16 %v1483_v7, %v1479_v6  ;;  %1976 = vmatpush1.bf16.msra.mxu1 %v3230_v0 }
 0x311   :  { %1359 = vst.msk [vmem:[#allocation3 + $0xa8] sm:$0xff] %vm1353_vm8, %v1334_v5  ;;  %1977 = vmatprep.subr.bf16.mxu1 %v3235_v1 }
 0x312   :  { %1924 = vmatprep.mubr.bf16.mxu1 %v1515_v8  ;;  %v1490_v28 = vld [vmem:[#allocation3 + $0xa0] sm:$0xff] }
 0x313   :  { %1925 = vmatmul.mubr.bf16.gmra.mrb[32].mxu1 %v1514_v11  ;;  %v1518_v35 = vpack.c.bf16 %v1490_v28, %v1486_v34  ;;  %v3254_v34 = vld [vmem:[%s5013_s6 + $0x40] sm:$0xff]  }
 0x314   :  { %1978 = vmatpush1.bf16.msra.mxu1 %v3233_v10  ;;  %v1487_v31 = vld [vmem:[#allocation3 + $0x88] sm:$0xff]  ;;  %2190 = vmatpush1.bf16.msra.mxu0 %v3254_v34  ;;  %v3258_v34 = vld [vmem:[%s5016_s7] sm:$0xff]  }
 0x315   :  { %1979 = vmatprep.subr.bf16.mxu1 %v3238_v12  ;;  %2191 = vmatprep.subr.bf16.mxu0 %v3302_v36 }
 0x316   :  { %v1494_v52 = vld [vmem:[#allocation3 + $0xc0] sm:$0xff] }
 0x318   :  { %1980 = vmatpush1.bf16.msra.mxu1 %v3236_v14 }
 0x319   :  { %1981 = vmatprep.subr.bf16.mxu1 %v3241_v15 }
 0x31c   :  { %1982 = vmatpush1.bf16.msra.mxu1 %v3239_v17 }
 0x31d   :  { %1983 = vmatprep.subr.bf16.mxu1 %v3244_v18 }
 0x31e   :  { %v1336_v23 = vpop.permute.xlu0 %1335  ;;  %v1376_v24 = vpop.permute.xlu1 %1375 }
 0x31f   :  { %1360 = vst.msk [vmem:[#allocation3 + $0xc8] sm:$0xff] %vm1353_vm8, %v1336_v23 }
 0x320   :  { %1407 = vst.msk [vmem:[#allocation3 + $0xa8] sm:$0xff] %vm1395_vm9, %v1376_v24  ;;  %1984 = vmatpush1.bf16.msra.mxu1 %v3242_v21 }
 0x321   :  { %1408 = vst.msk [vmem:[#allocation3 + $0xb0] sm:$0xff] %vm1397_vm10, %v1376_v24  ;;  %2934 = vmatprep.subr.msk.bf16.mxu1 %vm1875_vm11, %v2933_v48 }
 0x322   :  { %v1286_v26 = vpop.permute.xlu1 %1285  ;;  %v1378_v27 = vpop.permute.xlu0 %1377 }
 0x323   :  { %1316 = vst.msk [vmem:[#allocation3 + $0xe0] sm:$0xff] %vm1301_vm7, %v1286_v26 }
 0x324   :  { %1317 = vst.msk [vmem:[#allocation3 + $0xe8] sm:$0xff] %vm940_vm5, %v1286_v26  ;;  %1986 = vmatpush1.bf16.msra.mxu1 %v1877_v25 }
 0x325   :  { %1409 = vst.msk [vmem:[#allocation3 + $0xc8] sm:$0xff] %vm1395_vm9, %v1378_v27  ;;  %2521 = vmatprep.subr.bf16.mxu1 %v3302_v36 }
 0x326   :  { %1410 = vst.msk [vmem:[#allocation3 + $0xd0] sm:$0xff] %vm1397_vm10, %v1378_v27  ;;  %v1288_v29 = vpop.permute.xlu0 %1287  ;;  %v1338_v30 = vpop.permute.xlu1 %1337 }
 0x327   :  { %v1491_v32 = vld [vmem:[#allocation3 + $0xa8] sm:$0xff]  ;;  %1318 = vst.msk [vmem:[#allocation3 + $0x100] sm:$0xff] %vm1301_vm7, %v1288_v29 }
 0x328   :  { %1319 = vst.msk [vmem:[#allocation3 + $0x108] sm:$0xff] %vm940_vm5, %v1288_v29  ;;  %v1519_v33 = vpack.c.bf16 %v1491_v32, %v1487_v31 }
 0x329   :  { %1361 = vst.msk [vmem:[#allocation3 + $0xe8] sm:$0xff] %vm1353_vm8, %v1338_v30 }
 0x32a   :  { %1934 = vmatprep.mubr.bf16.mxu1 %v1519_v33  ;;  %v1498_v41 = vld [vmem:[#allocation3 + $0xe0] sm:$0xff] }
 0x32b   :  { %1935 = vmatmul.mubr.bf16.gmra.mrb[36].mxu1 %v1518_v35  ;;  %v1522_v53 = vpack.c.bf16 %v1498_v41, %v1494_v52  ;;  %v3255_v35 = vld [vmem:[%s5013_s6 + $0x48] sm:$0xff]  }
 0x32c   :  { %v1495_v46 = vld [vmem:[#allocation3 + $0xc8] sm:$0xff]  ;;  %2192 = vmatpush1.bf16.msra.mxu0 %v3255_v35 }
 0x32d   :  { %v3259_v35 = vld [vmem:[%s5016_s7 + $0x88] sm:$0xff]  }
 0x32e   :  { %v1502_v1 = vld [vmem:[#allocation3 + $0x100] sm:$0xff] }
 0x336   :  { %v1340_v37 = vpop.permute.xlu0 %1339  ;;  %v1380_v38 = vpop.permute.xlu1 %1379 }
 0x337   :  { %1362 = vst.msk [vmem:[#allocation3 + $0x108] sm:$0xff] %vm1353_vm8, %v1340_v37  ;;  %v1583_v37 = vld [vmem:[%s5014_s5] sm:$0x3] }
 0x338   :  { %1411 = vst.msk [vmem:[#allocation3 + $0xe8] sm:$0xff] %vm1395_vm9, %v1380_v38 }
 0x339   :  { %1412 = vst.msk [vmem:[#allocation3 + $0xf0] sm:$0xff] %vm1397_vm10, %v1380_v38  ;;  %v4709_v38 = vrot.slane %v1583_v37, %v616_v45 }
 0x33a   :  { %v1290_v39 = vpop.permute.xlu1 %1289  ;;  %v1382_v40 = vpop.permute.xlu0 %1381 }
 0x33b   :  { %1320 = vst.msk [vmem:[#allocation3 + $0x120] sm:$0xff] %vm1301_vm7, %v1290_v39  ;;  %vm2792_vm7 = vcmask 1048512  }
 0x33c   :  { %1321 = vst.msk [vmem:[#allocation3 + $0x128] sm:$0xff] %vm940_vm5, %v1290_v39  ;;  %v4713_v39 = vrot.slane %v1583_v37, %v620_v47  ;;  %v3260_v37 = vld [vmem:[%s5016_s7 + $0x48] sm:$0xff]   ;;  %vm2774_vm5 = vcmask 80896  }
 0x33d   :  { %1413 = vst.msk [vmem:[#allocation3 + $0x108] sm:$0xff] %vm1395_vm9, %v1382_v40 }
 0x33e   :  { %1414 = vst.msk [vmem:[#allocation3 + $0x110] sm:$0xff] %vm1397_vm10, %v1382_v40  ;;  %v1419_v42 = vpop.permute.xlu0 %1418  ;;  %v1342_v43 = vpop.permute.xlu1 %1341 }
 0x33f   :  { %v1499_v50 = vld [vmem:[#allocation3 + $0xe8] sm:$0xff]  ;;  %1449 = vst.msk [vmem:[#allocation3 + $0x10] sm:$0xff] %vm1448_vm12, %v1419_v42 }
 0x340   :  { %1451 = vst.msk [vmem:[#allocation3 + $0x18] sm:$0xff] %vm1450_vm13, %v1419_v42  ;;  %v1523_v51 = vpack.c.bf16 %v1499_v50, %v1495_v46 }
 0x341   :  { %1363 = vst.msk [vmem:[#allocation3 + $0x128] sm:$0xff] %vm1353_vm8, %v1342_v43  ;;  %vm2794_vm8 = vcmask 621568  }
 0x342   :  { %1944 = vmatprep.mubr.bf16.mxu1 %v1523_v51  ;;  %v1423_v54 = vpop.permute.xlu0 %1422  ;;  %v1506_v60 = vld [vmem:[#allocation3 + $0x120] sm:$0xff] }
 0x343   :  { %1945 = vmatmul.mubr.bf16.gmra.mrb[40].mxu1 %v1522_v53  ;;  %1454 = vst.msk [vmem:[#allocation3 + $0x50] sm:$0xff] %vm1448_vm12, %v1423_v54  ;;  %v1526_v2 = vpack.c.bf16 %v1506_v60, %v1502_v1 }
 0x344   :  { %1455 = vst.msk [vmem:[#allocation3 + $0x58] sm:$0xff] %vm1450_vm13, %v1423_v54  ;;  %v1503_v62 = vld [vmem:[#allocation3 + $0x108] sm:$0xff] }
 0x346   :  { %v1427_v55 = vpop.permute.xlu0 %1426  ;;  %v1472_v10 = vld [vmem:[#allocation3 + $0x10] sm:$0xff] }
 0x347   :  { %1458 = vst.msk [vmem:[#allocation3 + $0x90] sm:$0xff] %vm1448_vm12, %v1427_v55  ;;  %v1473_v4 = vld [vmem:[#allocation3 + $0x18] sm:$0xff] }
 0x348   :  { %1459 = vst.msk [vmem:[#allocation3 + $0x98] sm:$0xff] %vm1450_vm13, %v1427_v55 }
 0x34a   :  { %v1431_v56 = vpop.permute.xlu0 %1430  ;;  %v1480_v17 = vld [vmem:[#allocation3 + $0x50] sm:$0xff] }
 0x34b   :  { %1462 = vst.msk [vmem:[#allocation3 + $0xd0] sm:$0xff] %vm1448_vm12, %v1431_v56  ;;  %v1481_v12 = vld [vmem:[#allocation3 + $0x58] sm:$0xff] }
 0x34c   :  { %1463 = vst.msk [vmem:[#allocation3 + $0xd8] sm:$0xff] %vm1450_vm13, %v1431_v56 }
 0x34e   :  { %v1435_v57 = vpop.permute.xlu0 %1434  ;;  %v1384_v58 = vpop.permute.xlu1 %1383  ;;  %v1488_v22 = vld [vmem:[#allocation3 + $0x90] sm:$0xff] }
 0x34f   :  { %1466 = vst.msk [vmem:[#allocation3 + $0x110] sm:$0xff] %vm1448_vm12, %v1435_v57  ;;  %v1489_v19 = vld [vmem:[#allocation3 + $0x98] sm:$0xff] }
 0x350   :  { %1467 = vst.msk [vmem:[#allocation3 + $0x118] sm:$0xff] %vm1450_vm13, %v1435_v57 }
 0x351   :  { %1415 = vst.msk [vmem:[#allocation3 + $0x128] sm:$0xff] %vm1395_vm9, %v1384_v58  ;;  %vm2806_vm9 = vcmask 786096  }
 0x352   :  { %1416 = vst.msk [vmem:[#allocation3 + $0x130] sm:$0xff] %vm1397_vm10, %v1384_v58  ;;  %v1421_v59 = vpop.permute.xlu1 %1420  ;;  %v1496_v27 = vld [vmem:[#allocation3 + $0xd0] sm:$0xff] }
 0x353   :  { %1452 = vst.msk [vmem:[#allocation3 + $0x30] sm:$0xff] %vm1448_vm12, %v1421_v59  ;;  %v1497_v23 = vld [vmem:[#allocation3 + $0xd8] sm:$0xff] }
 0x354   :  { %1453 = vst.msk [vmem:[#allocation3 + $0x38] sm:$0xff] %vm1450_vm13, %v1421_v59 }
 0x356   :  { %v1425_v61 = vpop.permute.xlu1 %1424  ;;  %v1504_v32 = vld [vmem:[#allocation3 + $0x110] sm:$0xff] }
 0x357   :  { %1456 = vst.msk [vmem:[#allocation3 + $0x70] sm:$0xff] %vm1448_vm12, %v1425_v61  ;;  %v1505_v29 = vld [vmem:[#allocation3 + $0x118] sm:$0xff] }
 0x358   :  { %v1507_v63 = vld [vmem:[#allocation3 + $0x128] sm:$0xff]  ;;  %1457 = vst.msk [vmem:[#allocation3 + $0x78] sm:$0xff] %vm1450_vm13, %v1425_v61 }
 0x359   :  { %v1527_v0 = vpack.c.bf16 %v1507_v63, %v1503_v62 }
 0x35a   :  { %v1429_v3 = vpop.permute.xlu1 %1428  ;;  %v1476_v7 = vld [vmem:[#allocation3 + $0x30] sm:$0xff] }
 0x35b   :  { %1954 = vmatprep.mubr.bf16.mxu1 %v1527_v0  ;;  %v1477_v5 = vld [vmem:[#allocation3 + $0x38] sm:$0xff]  ;;  %1460 = vst.msk [vmem:[#allocation3 + $0xb0] sm:$0xff] %vm1448_vm12, %v1429_v3  ;;  %v1512_v11 = vpack.c.bf16 %v1476_v7, %v1472_v10 }
 0x35c   :  { %1955 = vmatmul.mubr.bf16.gmra.mrb[44].mxu1 %v1526_v2  ;;  %1461 = vst.msk [vmem:[#allocation3 + $0xb8] sm:$0xff] %vm1450_vm13, %v1429_v3  ;;  %v1513_v6 = vpack.c.bf16 %v1477_v5, %v1473_v4 }
 0x35e   :  { %2935 = vmatprep.mubr.msk.bf16.mxu1 %vm1450_vm13, %v1513_v6  ;;  %v1433_v8 = vpop.permute.xlu1 %1432  ;;  %v1484_v15 = vld [vmem:[#allocation3 + $0x70] sm:$0xff] }
 0x35f   :  { %v1485_v9 = vld [vmem:[#allocation3 + $0x78] sm:$0xff]  ;;  %1464 = vst.msk [vmem:[#allocation3 + $0xf0] sm:$0xff] %vm1448_vm12, %v1433_v8  ;;  %v1516_v18 = vpack.c.bf16 %v1484_v15, %v1480_v17 }
 0x360   :  { %1465 = vst.msk [vmem:[#allocation3 + $0xf8] sm:$0xff] %vm1450_vm13, %v1433_v8  ;;  %v1517_v13 = vpack.c.bf16 %v1485_v9, %v1481_v12 }
 0x362   :  { %v1437_v14 = vpop.permute.xlu1 %1436  ;;  %v1492_v21 = vld [vmem:[#allocation3 + $0xb0] sm:$0xff] }
 0x363   :  { %1468 = vst.msk [vmem:[#allocation3 + $0x130] sm:$0xff] %vm1448_vm12, %v1437_v14  ;;  %v1493_v16 = vld [vmem:[#allocation3 + $0xb8] sm:$0xff]  ;;  %v1520_v49 = vpack.c.bf16 %v1492_v21, %v1488_v22 }
 0x364   :  { %1998 = vmatmul.mubr.bf16.vlgmr.msra.gmra.mrb[28].mxu1 %v1512_v11  ;;  %1469 = vst.msk [vmem:[#allocation3 + $0x138] sm:$0xff] %vm1450_vm13, %v1437_v14  ;;  %v1521_v20 = vpack.c.bf16 %v1493_v16, %v1489_v19 }
 0x365   :  { %2936 = vmatprep.mubr.msk.bf16.mxu1 %vm1450_vm13, %v1517_v13 }
 0x366   :  { %v1500_v25 = vld [vmem:[#allocation3 + $0xf0] sm:$0xff] }
 0x367   :  { %v1501_v48 = vld [vmem:[#allocation3 + $0xf8] sm:$0xff]  ;;  %v1524_v28 = vpack.c.bf16 %v1500_v25, %v1496_v27 }
 0x368   :  { %v1525_v24 = vpack.c.bf16 %v1501_v48, %v1497_v23 }
 0x36a   :  { %v1508_v31 = vld [vmem:[#allocation3 + $0x130] sm:$0xff] }
 0x36b   :  { %v1509_v26 = vld [vmem:[#allocation3 + $0x138] sm:$0xff]  ;;  %v1528_v33 = vpack.c.bf16 %v1508_v31, %v1504_v32  ;;  %v3256_v32 = vld [vmem:[%s5016_s7 + $0x80] sm:$0xff]  }
 0x36c   :  { %2008 = vmatmul.mubr.bf16.gmra.mrb[32].mxu1 %v1516_v18  ;;  %v1529_v30 = vpack.c.bf16 %v1509_v26, %v1505_v29 }
 0x36d   :  { %2937 = vmatprep.mubr.msk.bf16.mxu1 %vm1450_vm13, %v1521_v20  ;;  %2522 = vmatpush1.bf16.msra.mxu1 %v3256_v32 }
 0x36e   :  { %2523 = vmatprep.subr.bf16.mxu1 %v3302_v36 }
 0x371   :  { %2524 = vmatpush1.bf16.msra.mxu1 %v3259_v35 }
 0x372   :  { %2525 = vmatprep.subr.bf16.mxu1 %v3302_v36 }
 0x374   :  { %2018 = vmatmul.mubr.bf16.gmra.mrb[36].mxu1 %v1520_v49 }
 0x375   :  { %2938 = vmatprep.mubr.msk.bf16.mxu1 %vm1450_vm13, %v1525_v24 }
 0x37c   :  { %2028 = vmatmul.mubr.bf16.gmra.mrb[40].mxu1 %v1524_v28 }
 0x37d   :  { %2939 = vmatprep.mubr.msk.bf16.mxu1 %vm1450_vm13, %v1529_v30 }
 0x384   :  { %2038 = vmatmul.mubr.bf16.gmra.mrb[44].mxu1 %v1528_v33  ;;  %v3257_v33 = vld [vmem:[%s5016_s7 + $0x40] sm:$0xff]  }
 0x385   :  { %2998 = vmatprep.subr.bf16.mxu0 %v3257_v33 }
 0x437   :  { %v1999_v40 = vpop.f32.mrb[28].mxu1 }
 0x438   :  { %v3072_v41 = vadd.f32 %v1999_v40, %v4709_v38  ;;  %v2001_v42 = vpop.f32.mrb[29].mxu1  ;;  %v3263_v40 = vld [vmem:[%s5016_s7 + $0x50] sm:$0xff]  }
 0x439   :  { %v3073_v43 = vadd.f32 %v2001_v42, %v4713_v39  ;;  %v2003_v46 = vpop.f32.mrb[30].mxu1  ;;  %v3265_v42 = vld [vmem:[%s5016_s7 + $0x58] sm:$0xff]  }
 0x43a   :  { %2048 = vst [vmem:[%s5015_s15] sm:$0xff] %v3072_v41  ;;  %v3074_v50 = vadd.f32 %v2003_v46, %v4709_v38  ;;  %v2005_v51 = vpop.f32.mrb[31].mxu1  ;;  %v3267_v46 = vld [vmem:[%s5016_s7 + $0x18] sm:$0xff]  }
 0x43b   :  { %2049 = vst.msk [vmem:[%s5015_s15 + $0x8] sm:$0xff] %vm82_vm0, %v3073_v43  ;;  %v3075_v44 = vadd.f32 %v2005_v51, %v4713_v39  ;;  %v3269_v51 = vld [vmem:[%s5016_s7 + $0xa0] sm:$0xff]  }
 0x43c   :  { %2050 = vst [vmem:[%s5015_s15 + $0x10] sm:$0xff] %v3074_v50  ;;  %v2068_v45 = vadd.f32 %v3074_v50, %v3072_v41  ;;  %v3264_v41 = vld [vmem:[%s5016_s7 + $0x10] sm:$0xff]   ;;  %v3268_v50 = vld [vmem:[%s5016_s7 + $0x60] sm:$0xff]  }
 0x43d   :  { %2051 = vst.msk [vmem:[%s5015_s15 + $0x18] sm:$0xff] %vm82_vm0, %v3075_v44  ;;  %v2069_v47 = vadd.f32 %v3075_v44, %v3073_v43  ;;  %v3266_v43 = vld [vmem:[%s5016_s7 + $0x98] sm:$0xff]   ;;  %v3270_v44 = vld [vmem:[%s5016_s7 + $0x20] sm:$0xff]  }
 0x43f   :  { %v2009_v52 = vpop.f32.mrb[32].mxu1 }
 0x440   :  { %v3076_v53 = vadd.f32 %v2009_v52, %v4709_v38  ;;  %v2011_v54 = vpop.f32.mrb[33].mxu1 }
 0x441   :  { %v3077_v55 = vadd.f32 %v2011_v54, %v4713_v39  ;;  %v2013_v56 = vpop.f32.mrb[34].mxu1  ;;  %v3271_v54 = vld [vmem:[%s5016_s7 + $0x68] sm:$0xff]  }
 0x442   :  { %2052 = vst [vmem:[%s5015_s15 + $0x20] sm:$0xff] %v3076_v53  ;;  %v3078_v57 = vadd.f32 %v2013_v56, %v4709_v38  ;;  %v2015_v58 = vpop.f32.mrb[35].mxu1  ;;  %v3273_v56 = vld [vmem:[%s5016_s7 + $0xa8] sm:$0xff]  }
 0x443   :  { %2053 = vst.msk [vmem:[%s5015_s15 + $0x28] sm:$0xff] %vm82_vm0, %v3077_v55  ;;  %v3079_v59 = vadd.f32 %v2015_v58, %v4713_v39  ;;  %v3275_v58 = vld [vmem:[%s5016_s7 + $0x30] sm:$0xff]  }
 0x444   :  { %2054 = vst [vmem:[%s5015_s15 + $0x30] sm:$0xff] %v3078_v57  ;;  %v2070_v60 = vadd.f32 %v3078_v57, %v3076_v53  ;;  %v3274_v57 = vld [vmem:[%s5016_s7 + $0x70] sm:$0xff]  }
 0x445   :  { %2055 = vst.msk [vmem:[%s5015_s15 + $0x38] sm:$0xff] %vm82_vm0, %v3079_v59  ;;  %v2071_v61 = vadd.f32 %v3079_v59, %v3077_v55  ;;  %v3272_v55 = vld [vmem:[%s5016_s7 + $0x28] sm:$0xff]   ;;  %v3276_v59 = vld [vmem:[%s5016_s7 + $0xb0] sm:$0xff]  }
 0x446   :  { %v2078_v62 = vpack.c.bf16 %v2070_v60, %v2068_v45  ;;  %v3277_v60 = vld [vmem:[%s5016_s7 + $0x78] sm:$0xff]  }
 0x447   :  { %v2079_v63 = vpack.c.bf16 %v2071_v61, %v2069_v47  ;;  %v2019_v0 = vpop.f32.mrb[36].mxu1  ;;  %v3278_v61 = vld [vmem:[%s5016_s7 + $0x38] sm:$0xff]  }
 0x448   :  { %v3080_v1 = vadd.f32 %v2019_v0, %v4709_v38  ;;  %v2021_v2 = vpop.f32.mrb[37].mxu1 }
 0x449   :  { %v3081_v3 = vadd.f32 %v2021_v2, %v4713_v39  ;;  %v2023_v4 = vpop.f32.mrb[38].mxu1  ;;  %2950 = vmatprep.mubr.msk.bf16.mxu0 %vm82_vm0, %v2079_v63 }
 0x44a   :  { %2056 = vst [vmem:[%s5015_s15 + $0x40] sm:$0xff] %v3080_v1  ;;  %v3082_v5 = vadd.f32 %v2023_v4, %v4709_v38  ;;  %v2025_v6 = vpop.f32.mrb[39].mxu1  ;;  %2206 = vmatmul.mubr.bf16.vlgmr.msra.gmra.mrb[56].mxu0 %v2078_v62  ;;  %v3279_v62 = vld [vmem:[%s5016_s7 + $0xb8] sm:$0xff]  }
 0x44b   :  { %2057 = vst.msk [vmem:[%s5015_s15 + $0x48] sm:$0xff] %vm82_vm0, %v3081_v3  ;;  %v3083_v7 = vadd.f32 %v2025_v6, %v4713_v39  ;;  %2999 = vmatpush3.bf16.msra.mxu0 %v3258_v34  ;;  %v2953_v34 = vld [vmem:[%s5020_s8] ss:$0 sm:$0xff] }
 0x44c   :  { %2058 = vst [vmem:[%s5015_s15 + $0x50] sm:$0xff] %v3082_v5  ;;  %v2072_v8 = vadd.f32 %v3082_v5, %v3080_v1  ;;  %3000 = vmatprep.subr.bf16.mxu0 %v3260_v37  ;;  %v3280_v1 = vld [vmem:[%s5016_s7 + $0xc0] sm:$0xff]   ;;  %v3308_v5 = vmov 0.0  }
 0x44d   :  { %2059 = vst.msk [vmem:[%s5015_s15 + $0x58] sm:$0xff] %vm82_vm0, %v3083_v7  ;;  %v2073_v9 = vadd.f32 %v3083_v7, %v3081_v3 }
 0x44f   :  { %v2029_v10 = vpop.f32.mrb[40].mxu1 }
 0x450   :  { %v3084_v11 = vadd.f32 %v2029_v10, %v4709_v38  ;;  %v2031_v12 = vpop.f32.mrb[41].mxu1 }
 0x451   :  { %v3085_v13 = vadd.f32 %v2031_v12, %v4713_v39  ;;  %v2033_v14 = vpop.f32.mrb[42].mxu1 }
 0x452   :  { %2060 = vst [vmem:[%s5015_s15 + $0x60] sm:$0xff] %v3084_v11  ;;  %v3086_v15 = vadd.f32 %v2033_v14, %v4709_v38  ;;  %v2035_v16 = vpop.f32.mrb[43].mxu1 }
 0x453   :  { %2061 = vst.msk [vmem:[%s5015_s15 + $0x68] sm:$0xff] %vm82_vm0, %v3085_v13  ;;  %v3087_v17 = vadd.f32 %v2035_v16, %v4713_v39 }
 0x454   :  { %2062 = vst [vmem:[%s5015_s15 + $0x70] sm:$0xff] %v3086_v15  ;;  %v2074_v18 = vadd.f32 %v3086_v15, %v3084_v11  ;;  %v3281_v15 = vld [vmem:[%s5018_s9] sm:$0xff]  }
 0x455   :  { %2063 = vst.msk [vmem:[%s5015_s15 + $0x78] sm:$0xff] %vm82_vm0, %v3087_v17  ;;  %v2075_v19 = vadd.f32 %v3087_v17, %v3085_v13  ;;  %v3282_v17 = vld [vmem:[%s5018_s9 + $0x8] sm:$0xff]  }
 0x456   :  { %v2080_v20 = vpack.c.bf16 %v2074_v18, %v2072_v8 }
 0x457   :  { %v2081_v21 = vpack.c.bf16 %v2075_v19, %v2073_v9  ;;  %v2039_v48 = vpop.f32.mrb[44].mxu1 }
 0x458   :  { %v3088_v22 = vadd.f32 %v2039_v48, %v4709_v38  ;;  %v2041_v49 = vpop.f32.mrb[45].mxu1  ;;  %v3283_v48 = vld [vmem:[%s5018_s9 + $0x10] sm:$0xff]  }
 0x459   :  { %v3089_v23 = vadd.f32 %v2041_v49, %v4713_v39  ;;  %v2043_v24 = vpop.f32.mrb[46].mxu1  ;;  %2951 = vmatprep.mubr.msk.bf16.mxu0 %vm82_vm0, %v2081_v21  ;;  %v3285_v49 = vld [vmem:[%s5018_s9 + $0x20] sm:$0xff]  }
 0x45a   :  { %2064 = vst [vmem:[%s5015_s15 + $0x80] sm:$0xff] %v3088_v22  ;;  %v3090_v25 = vadd.f32 %v2043_v24, %v4709_v38  ;;  %v2045_v26 = vpop.f32.mrb[47].mxu1  ;;  %2214 = vmatmul.mubr.bf16.gmra.mrb[60].mxu0 %v2080_v20  ;;  %v3261_v38 = vld [vmem:[%s5016_s7 + $0x8] sm:$0xff]   ;;  %v3287_v24 = vld [vmem:[%s5018_s9 + $0x30] sm:$0xff]  }
 0x45b   :  { %2065 = vst.msk [vmem:[%s5015_s15 + $0x88] sm:$0xff] %vm82_vm0, %v3089_v23  ;;  %v3091_v27 = vadd.f32 %v2045_v26, %v4713_v39  ;;  %3001 = vmatpush3.bf16.msra.mxu0 %v3261_v38  ;;  %v3262_v39 = vld [vmem:[%s5016_s7 + $0x90] sm:$0xff]  }
 0x45c   :  { %2066 = vst [vmem:[%s5015_s15 + $0x90] sm:$0xff] %v3090_v25  ;;  %v2076_v28 = vadd.f32 %v3090_v25, %v3088_v22  ;;  %2526 = vmatpush1.bf16.msra.mxu1 %v3262_v39  ;;  %3002 = vmatprep.subr.bf16.mxu0 %v3263_v40  ;;  %v3284_v22 = vld [vmem:[%s5018_s9 + $0x18] sm:$0xff]  }
 0x45d   :  { %2067 = vst.msk [vmem:[%s5015_s15 + $0x98] sm:$0xff] %vm82_vm0, %v3091_v27  ;;  %v2077_v29 = vadd.f32 %v3091_v27, %v3089_v23  ;;  %2527 = vmatprep.subr.bf16.mxu1 %v3302_v36  ;;  %v3286_v23 = vld [vmem:[%s5018_s9 + $0x28] sm:$0xff]   ;;  %v3288_v25 = vld [vmem:[%s5018_s9 + $0x38] ss:$0 sps:$4 sm:$0xff]   ;;  %v3289_v27 = vld [vmem:[%s5019_s11] sm:$0xff]   ;;  %s3311_s15 = smov 76  }
 0x45e   :  { %v2082_v31 = vpack.c.bf16 %v2076_v28, %v2076_v28  ;;  %v2634_v26 = vsel %vm1143_vm4, %v3288_v25, 0  ;;  %v3290_v28 = vld [vmem:[%s5019_s11 + $0x8] sm:$0xff]   ;;  %vm2629_vm4 = vcmask 982016  }
 0x45f   :  { %v2083_v30 = vpack.c.bf16 %v2077_v29, %v2077_v29  ;;  %3003 = vmatpush3.bf16.msra.mxu0 %v3264_v41  ;;  %v3291_v29 = vld [vmem:[%s5019_s11 + $0x10] sm:$0xff]  }
 0x460   :  { %3004 = vmatprep.subr.bf16.mxu0 %v3265_v42  ;;  %2528 = vmatpush1.bf16.msra.mxu1 %v3266_v43 }
 0x461   :  { %2952 = vmatprep.mubr.msk.bf16.mxu0 %vm82_vm0, %v2083_v30  ;;  %2529 = vmatprep.subr.bf16.mxu1 %v3302_v36  ;;  %v3292_v30 = vld [vmem:[%s5019_s11 + $0x18] sm:$0xff]  }
 0x462   :  { %2222 = vmatmul.mubr.bf16.gmra.mrb[64].mxu0 %v2082_v31  ;;  %v3293_v31 = vld [vmem:[%s5019_s11 + $0x20] sm:$0xff]  }
 0x463   :  { %3005 = vmatpush3.bf16.msra.mxu0 %v3267_v46 }
 0x464   :  { %3006 = vmatprep.subr.bf16.mxu0 %v3268_v50  ;;  %2530 = vmatpush1.bf16.msra.mxu1 %v3269_v51  ;;  %v3294_v51 = vld [vmem:[%s5019_s11 + $0x28] ss:$0 sps:$4 sm:$0x33]  }
 0x465   :  { %2531 = vmatprep.subr.bf16.mxu1 %v3302_v36 }
 0x467   :  { %3007 = vmatpush3.bf16.msra.mxu0 %v3270_v44  ;;  %v2732_v44 = vsel %vm1875_vm11, %v3294_v51, 0 }
 0x468   :  { %3008 = vmatprep.subr.bf16.mxu0 %v3271_v54  ;;  %2532 = vmatpush1.bf16.msra.mxu1 %v3273_v56 }
 0x469   :  { %2533 = vmatprep.subr.bf16.mxu1 %v3302_v36 }
 0x46b   :  { %3009 = vmatpush3.bf16.msra.mxu0 %v3272_v55 }
 0x46c   :  { %3010 = vmatprep.subr.bf16.mxu0 %v3274_v57  ;;  %2534 = vmatpush1.bf16.msra.mxu1 %v3276_v59  ;;  %v2990_v57 = vld [vmem:[%s5023_s12] ss:$0 sm:$0xff] }
 0x46d   :  { %2535 = vmatprep.subr.bf16.mxu1 %v3302_v36 }
 0x46f   :  { %3011 = vmatpush3.bf16.msra.mxu0 %v3275_v58 }
 0x470   :  { %3012 = vmatprep.subr.bf16.mxu0 %v3277_v60  ;;  %2536 = vmatpush1.bf16.msra.mxu1 %v3279_v62 }
 0x471   :  { %2537 = vmatprep.subr.bf16.mxu1 %v3302_v36 }
 0x473   :  { %3013 = vmatpush3.bf16.msra.mxu0 %v3278_v61 }
 0x474   :  { %2538 = vmatpush1.bf16.msra.mxu1 %v3280_v1  ;;  %3036 = vmatprep.subr.bf16.mxu0 %v3308_v5 }
 0x475   :  { %3056 = vmatprep.subr.bf16.mxu1 %v3308_v5 }
 0x51d   :  { %v2207_v45 = vpop.f32.mrb[56].mxu0 }
 0x51e   :  { %2229 = vst.msk [vmem:[%s5017_s16] sm:$0xff] %vm1397_vm10, %v2207_v45  ;;  %2234 = vst.msk [vmem:[#allocation4] sm:$0xff] %vm1397_vm10, %v2207_v45  ;;  %v2209_v47 = vpop.f32.mrb[57].mxu0  ;;  %v2980_v45 = vld [vmem:[%s5022_s10] ss:$0 sm:$0xff]  ;;  %s3310_s10 = smov 120  }
 0x51f   :  { %v2210_v52 = vpop.f32.mrb[58].mxu0 }
 0x520   :  { %2230 = vst.msk [vmem:[%s5017_s16 + $0x8] sm:$0xff] %vm1397_vm10, %v2210_v52  ;;  %2236 = vrot.lane.b32.xlu0 %v2210_v52, %s3306_s3  ;;  %v2212_v53 = vpop.f32.mrb[59].mxu0 }
 0x52d   :  { %v2215_v63 = vpop.f32.mrb[60].mxu0 }
 0x52e   :  { %2231 = vst.msk [vmem:[%s5017_s16 + $0x10] sm:$0xff] %vm1397_vm10, %v2215_v63  ;;  %2242 = vrot.lane.b32.xlu1 %v2215_v63, %s3300_s18  ;;  %v2217_v0 = vpop.f32.mrb[61].mxu0 }
 0x52f   :  { %v2218_v2 = vpop.f32.mrb[62].mxu0 }
 0x530   :  { %2232 = vst.msk [vmem:[%s5017_s16 + $0x18] sm:$0xff] %vm1397_vm10, %v2218_v2  ;;  %2248 = vrot.lane.b32.xlu0 %v2218_v2, %s3307_s20  ;;  %v2220_v3 = vpop.f32.mrb[63].mxu0 }
 0x535   :  { %v2223_v4 = vpop.f32.mrb[64].mxu0 }
 0x536   :  { %2233 = vst.msk [vmem:[%s5017_s16 + $0x20] sm:$0xff] %vm1397_vm10, %v2223_v4  ;;  %2256 = vrot.lane.b32.xlu1 %v2223_v4, %s3299_s30  ;;  %v2225_v36 = vpop.f32.mrb[65].mxu0 }
 0x537   :  { %v2226_v6 = vpop.f32.mrb[66].mxu0 }
 0x538   :  { %v2227_v7 = vpop.f32.mrb[67].mxu0 }
 0x592   :  { %v2237_v8 = vpop.permute.xlu0 %2236 }
 0x593   :  { %2239 = vst.msk [vmem:[#allocation4] sm:$0xff] %vm1448_vm12, %v2237_v8 }
 0x594   :  { %2240 = vst.msk [vmem:[#allocation4 + $0x8] sm:$0xff] %vm82_vm0, %v2237_v8  ;;  %vm3309_vm0 = vmmov 0  }
 0x59a   :  { %v2263_v12 = vld [vmem:[#allocation4] sm:$0xff] }
 0x59b   :  { %v2267_v16 = vpack.c.bf16 %v2263_v12, %v2263_v12 }
 0x5a0   :  { %v2243_v9 = vpop.permute.xlu1 %2242 }
 0x5a1   :  { %2246 = vst.msk [vmem:[#allocation4 + $0x8] sm:$0xff] %vm2245_vm14, %v2243_v9 }
 0x5a2   :  { %v2249_v10 = vpop.permute.xlu0 %2248 }
 0x5a3   :  { %2252 = vst.msk [vmem:[#allocation4 + $0x8] sm:$0xff] %vm2251_vm15, %v2249_v10 }
 0x5a4   :  { %2254 = vst.msk [vmem:[#allocation4 + $0x10] sm:$0xff] %vm2253_vm1, %v2249_v10 }
 0x5a8   :  { %v2257_v11 = vpop.permute.xlu1 %2256 }
 0x5a9   :  { %2260 = vst.msk [vmem:[#allocation4 + $0x10] sm:$0xff] %vm2259_vm2, %v2257_v11 }
 0x5aa   :  { %2262 = vst.msk [vmem:[#allocation4 + $0x18] sm:$0xff] %vm2261_vm3, %v2257_v11  ;;  %v2264_v13 = vld [vmem:[#allocation4 + $0x8] sm:$0xff] }
 0x5ab   :  { %v2268_v14 = vpack.c.bf16 %v2264_v13, %v2264_v13 }
 0x5ad   :  { %2513 = vmatprep.mubr.bf16.mxu0 %v2268_v14 }
 0x5ae   :  { %2514 = vmatmul.mubr.bf16.vlgmr.msra.gmra.mrb[68].mxu0 %v2267_v16 }
 0x5af   :  { %3037 = vmatpush3.bf16.msra.mxu0 %v3281_v15  ;;  %3052 = vmatprep.mubr.msk.bf16.mxu0 %vm3309_vm0, %v3308_v5 }
 0x5b0   :  { %v2265_v19 = vld [vmem:[#allocation4 + $0x10] sm:$0xff]  ;;  %3038 = vmatprep.subr.bf16.mxu0 %v3308_v5 }
 0x5b1   :  { %v2266_v18 = vld [vmem:[#allocation4 + $0x18] sm:$0xff]  ;;  %v2269_v21 = vpack.c.bf16 %v2265_v19, %v2265_v19 }
 0x5b2   :  { %v2270_v20 = vpack.c.bf16 %v2266_v18, %v2266_v18 }
 0x5b3   :  { %3039 = vmatpush3.bf16.msra.mxu0 %v3282_v17 }
 0x5b4   :  { %2979 = vmatprep.mubr.msk.bf16.mxu1 %vm2261_vm3, %v2270_v20  ;;  %3040 = vmatprep.subr.bf16.mxu0 %v3308_v5 }
 0x5b5   :  { %2554 = vmatmul.mubr.bf16.vlgmr.msra.gmra.mrb[48].mxu1 %v2269_v21 }
 0x5b6   :  { %3068 = vmatprep.mubr.msk.bf16.mxu1 %vm3309_vm0, %v3308_v5  ;;  %3057 = vmatpush3.bf16.msra.mxu1 %v3289_v27 }
 0x5b7   :  { %3041 = vmatpush3.bf16.msra.mxu0 %v3283_v48  ;;  %3058 = vmatprep.subr.bf16.mxu1 %v3308_v5 }
 0x5b8   :  { %3042 = vmatprep.subr.bf16.mxu0 %v3308_v5 }
 0x5ba   :  { %3059 = vmatpush3.bf16.msra.mxu1 %v3290_v28 }
 0x5bb   :  { %3043 = vmatpush3.bf16.msra.mxu0 %v3284_v22  ;;  %3060 = vmatprep.subr.bf16.mxu1 %v3308_v5 }
 0x5bc   :  { %3044 = vmatprep.subr.bf16.mxu0 %v3308_v5 }
 0x5be   :  { %3061 = vmatpush3.bf16.msra.mxu1 %v3291_v29 }
 0x5bf   :  { %3045 = vmatpush3.bf16.msra.mxu0 %v3285_v49  ;;  %3062 = vmatprep.subr.bf16.mxu1 %v3308_v5 }
 0x5c0   :  { %3046 = vmatprep.subr.bf16.mxu0 %v3308_v5 }
 0x5c2   :  { %3063 = vmatpush3.bf16.msra.mxu1 %v3292_v30 }
 0x5c3   :  { %3047 = vmatpush3.bf16.msra.mxu0 %v3286_v23  ;;  %3064 = vmatprep.subr.bf16.mxu1 %v3308_v5 }
 0x5c4   :  { %3048 = vmatprep.subr.bf16.mxu0 %v3308_v5 }
 0x5c6   :  { %3065 = vmatpush3.bf16.msra.mxu1 %v3293_v31 }
 0x5c7   :  { %3049 = vmatpush3.bf16.msra.mxu0 %v3287_v24  ;;  %3066 = vmatprep.subr.bf16.mxu1 %v3308_v5 }
 0x5c8   :  { %3050 = vmatprep.subr.bf16.mxu0 %v3308_v5 }
 0x5ca   :  { %3067 = vmatpush3.bf16.msra.mxu1 %v2732_v44 }
 0x5cb   :  { %3051 = vmatpush3.bf16.msra.mxu0 %v2634_v26 }
 0x681   :  { %v3014_v32 = vpop.f32.mrb[68].mxu0 }
 0x682   :  { %v3015_v33 = vpop.f32.mrb[69].mxu0 }
 0x683   :  { %v3016_v35 = vadd.f32 %v3015_v33, %v3014_v32  ;;  %v3017_v37 = vpop.f32.mrb[70].mxu0 }
 0x684   :  { %v3018_v38 = vpop.f32.mrb[71].mxu0 }
 0x685   :  { %v2516_v39 = vadd.f32 %v3016_v35, %v2953_v34 }
 0x688   :  { %v2555_v40 = vpop.f32.mrb[48].mxu1 }
 0x689   :  { %v2556_v41 = vadd.f32 %v2555_v40, %v2516_v39  ;;  %v2557_v42 = vpop.f32.mrb[49].mxu1 }
 0x68a   :  { %v2558_v43 = vpop.f32.mrb[50].mxu1 }
 0x68b   :  { %v2561_v46 = vpack.c.bf16 %v2556_v41, %v2556_v41  ;;  %2787 = vst.msk [vmem:[%s5021_s17] sm:$0xff] %vm2629_vm4, %v2556_v41  ;;  %v2559_v50 = vpop.f32.mrb[51].mxu1 }
 0x68d   :  { %3053 = vmatmul.mubr.msk.bf16.vlgmr.msra.gmra.mrb[72].mxu0 %vm2629_vm4, %v2561_v46 }
 0x760   :  { %v2670_v47 = vpop.f32.mrb[72].mxu0 }
 0x761   :  { %v2671_v52 = vadd.f32 %v2980_v45, %v2670_v47  ;;  %v3054_v53 = vpop.f32.mrb[73].mxu0 }
 0x762   :  { %v2673_v54 = vpop.f32.mrb[74].mxu0 }
 0x763   :  { %v2676_v55 = vpack.c.bf16 %v2671_v52, %v2671_v52  ;;  %v3055_v56 = vpop.f32.mrb[75].mxu0 }
 0x765   :  { %3069 = vmatmul.mubr.msk.bf16.vlgmr.msra.gmra.mrb[52].mxu1 %vm1236_vm6, %v2676_v55  ;;  %vm2800_vm6 = vcmask 704096  }
 0x838   :  { %v2768_v58 = vpop.f32.mrb[52].mxu1 }
 0x839   :  { %v2769_v59 = vadd.f32 %v2990_v57, %v2768_v58  ;;  %v3070_v60 = vpop.f32.mrb[53].mxu1 }
 0x83a   :  { %v2771_v61 = vpop.f32.mrb[54].mxu1 }
 0x83b   :  { %v3071_v62 = vpop.f32.mrb[55].mxu1  ;;  %v2775_v63 = vsel %vm2774_vm5, %v2769_v59, -inf }
 0x83c   :  { %2776 = vmax.xlane.f32.xlu0 %v2775_v63 }
 0x852   :  { %2789 = vrot.lane.b32.xlu0 %v2671_v52, %s3310_s10 }
 0x8c9   :  { %v2777_v0 = vpop.xlane.xlu0 %2776 }
 0x8ca   :  { %v2778_v1 = vsub.f32 %v2769_v59, %v2777_v0 }
 0x8cc   :  { %v2779_v2 = vmul.f32 1.442695, %v2778_v1 }
 0x8cd   :  { %v2790_v3 = vpop.permute.xlu0 %2789 }
 0x8ce   :  { %3295 = vpow2.f32 %v2779_v2  ;;  %2793 = vst.msk [vmem:[%s5021_s17] sm:$0xff] %vm2792_vm7, %v2790_v3 }
 0x8cf   :  { %2795 = vst.msk [vmem:[%s5021_s17 + $0x8] sm:$0xff] %vm2794_vm8, %v2790_v3 }
 0x8d8   :  { %v3296_v4 = vpop.eup %3295 }
 0x8d9   :  { %v2781_v5 = vsel %vm2774_vm5, %v3296_v4, 0.0 }
 0x8da   :  { %2782 = vadd.xlane.f32.xlu1 %v2781_v5 }
 0x8eb   :  { %2797 = vrot.lane.b32.xlu1 %v2769_v59, %s3311_s15 }
 0x967   :  { %v2783_v36 = vpop.xlane.xlu1 %2782 }
 0x968   :  { %3297 = vlog2.f32 %v2783_v36 }
 0x96b   :  { %v2798_v6 = vpop.permute.xlu1 %2797 }
 0x96c   :  { %2801 = vst.msk [vmem:[%s5021_s17 + $0x8] sm:$0xff] %vm2800_vm6, %v2798_v6 }
 0x972   :  { %v3298_v7 = vpop.eup %3297 }
 0x973   :  { %v2785_v8 = vmul.f32 0.6931472, %v3298_v7 }
 0x975   :  { %v2786_v9 = vsub.f32 %v2778_v1, %v2785_v8 }
 0x977   :  { %2803 = vrot.lane.b32.xlu0 %v2786_v9, %s3312_s21 }
 0x9e9   :  { %v2804_v10 = vpop.permute.xlu0 %2803 }
 0x9ea   :  { %2807 = vst.msk [vmem:[%s5021_s17 + $0x8] sm:$0xff] %vm2806_vm9, %v2804_v10 }

</bundles_post_ra>
